<compile_context>
chip_gen: v7x
topology: tpu7x:2x2x1
jax: 0.10.0
libtpu: 0.0.40
codegen_flags: <defaults>
</compile_context>

<pallas_src>
import functools

import numpy as np
import jax
import jax.numpy as jnp
from jax.experimental import pallas as pl
from jax.experimental.pallas import tpu as pltpu


def _round_up(x, m):
    return (x + m - 1) // m * m


def _pick_tile(m):
    return 256 if m >= 256 else _round_up(m, 16)


_COMPILER_PARAMS = pltpu.CompilerParams(
    dimension_semantics=("parallel",),
    vmem_limit_bytes=32 * 1024 * 1024,
)


# -----------------------------------------------------------------------------
# Pallas kernels
# -----------------------------------------------------------------------------
def _matmul_bn_kernel(x_ref, w_ref, scale_ref, bias_ref, o_ref, *, relu):
    """One fused conv tile: im2col-matmul + folded BN (+ReLU)."""
    y = jnp.dot(x_ref[...], w_ref[...], preferred_element_type=jnp.float32)
    y = y * scale_ref[...] + bias_ref[...]
    if relu:
        y = jnp.maximum(y, 0.0)
    o_ref[...] = y.astype(o_ref.dtype)


def _matmul_bn_res_kernel(x_ref, w_ref, scale_ref, bias_ref, res_ref, o_ref, *,
                          relu):
    """Conv tile with fused residual add (residual before ReLU)."""
    y = jnp.dot(x_ref[...], w_ref[...], preferred_element_type=jnp.float32)
    y = y * scale_ref[...] + bias_ref[...] + res_ref[...]
    if relu:
        y = jnp.maximum(y, 0.0)
    o_ref[...] = y.astype(o_ref.dtype)


def _gap_conv_kernel(x_ref, w_ref, scale_ref, bias_ref, o_ref, *, inv_hw):
    """Global average pool over spatial axis fused with 1x1 conv + BN + ReLU."""
    pooled = jnp.sum(x_ref[...], axis=1) * inv_hw          # [N, Cin]
    y = jnp.dot(pooled, w_ref[...], preferred_element_type=jnp.float32)
    y = y * scale_ref[...] + bias_ref[...]
    o_ref[...] = jnp.maximum(y, 0.0).astype(o_ref.dtype)


def _aspp_head_kernel(x_ref, w3_ref, s3_ref, b3_ref, w4_ref, s4_ref, b4_ref,
                      o_ref):
    """Fused ASPP tail: 1x1 conv+BN+ReLU then 1x1 classifier, one tile."""
    h = jnp.dot(x_ref[...], w3_ref[...], preferred_element_type=jnp.float32)
    h = jnp.maximum(h * s3_ref[...] + b3_ref[...], 0.0)
    y = jnp.dot(h, w4_ref[...], preferred_element_type=jnp.float32)
    o_ref[...] = (y * s4_ref[...] + b4_ref[...]).astype(o_ref.dtype)


def _matmul_kernel(a_ref, b_ref, o_ref):
    """Plain matmul (used for the batched bilinear interpolation stages)."""
    o_ref[...] = jnp.dot(a_ref[...], b_ref[...],
                         preferred_element_type=jnp.float32).astype(o_ref.dtype)


# -----------------------------------------------------------------------------
# Pallas call wrappers
# -----------------------------------------------------------------------------
def _matmul_bn_pallas(xcols, w, scale, bias, res, relu, tm):
    """xcols: [Mp, Kp] bf16, w: [Kp, Cp] bf16, scale/bias: [1, Cp] f32,
    res: [Mp, Cp] f32 or None. Grid over M tiles only."""
    mp, kp = xcols.shape
    cp = w.shape[1]
    in_specs = [
        pl.BlockSpec((tm, kp), lambda i: (i, 0)),
        pl.BlockSpec((kp, cp), lambda i: (0, 0)),
        pl.BlockSpec((1, cp), lambda i: (0, 0)),
        pl.BlockSpec((1, cp), lambda i: (0, 0)),
    ]
    args = [xcols, w, scale, bias]
    if res is not None:
        in_specs.append(pl.BlockSpec((tm, cp), lambda i: (i, 0)))
        args.append(res)
        kernel = functools.partial(_matmul_bn_res_kernel, relu=relu)
    else:
        kernel = functools.partial(_matmul_bn_kernel, relu=relu)
    return pl.pallas_call(
        kernel,
        out_shape=jax.ShapeDtypeStruct((mp, cp), jnp.float32),
        grid_spec=pltpu.PrefetchScalarGridSpec(
            num_scalar_prefetch=0,
            grid=(mp // tm,),
            in_specs=in_specs,
            out_specs=pl.BlockSpec((tm, cp), lambda i: (i, 0)),
        ),
        compiler_params=_COMPILER_PARAMS,
    )(*args)


def conv_bn_act(x, p, *, stride=1, dilation=1, padding=0, relu=True,
                residual=None):
    """x: [N,H,W,Cin] NHWC;  p['w']: [KH,KW,Cin,Cout];  folded BN scale/bias.

    Taps are folded into the contraction dim (im2col built as JAX glue), K and
    Cout are padded to multiples of 128 for lane-dense MXU tiles; operands are
    cast to bf16 (f32 accumulation)."""
    w = p['w']
    N, H, W, Cin = x.shape
    KH, KW, _, Cout = w.shape
    Hout = (H + 2 * padding - dilation * (KH - 1) - 1) // stride + 1
    Wout = (W + 2 * padding - dilation * (KW - 1) - 1) // stride + 1
    M = N * Hout * Wout
    K = KH * KW * Cin

    xp = jnp.pad(x, ((0, 0), (padding, padding), (padding, padding), (0, 0)))
    cols = []
    for kh in range(KH):
        for kw in range(KW):
            h0, w0 = kh * dilation, kw * dilation
            cols.append(xp[:, h0:h0 + stride * (Hout - 1) + 1:stride,
                              w0:w0 + stride * (Wout - 1) + 1:stride, :])
    xcols = jnp.concatenate(cols, axis=-1).reshape(M, K)    # [M, KH*KW*Cin]

    kp_ = _round_up(K, 128)
    cp_ = _round_up(Cout, 128)
    tm = _pick_tile(M)
    mp_ = _round_up(M, tm)

    xcols = jnp.pad(xcols, ((0, mp_ - M), (0, kp_ - K))).astype(jnp.bfloat16)
    w2 = jnp.pad(w.reshape(K, Cout),
                 ((0, kp_ - K), (0, cp_ - Cout))).astype(jnp.bfloat16)
    scale = jnp.pad(p['scale'], ((0, 0), (0, cp_ - Cout)))
    bias = jnp.pad(p['bias'], ((0, 0), (0, cp_ - Cout)))

    if residual is not None:
        res = jnp.pad(residual.reshape(M, Cout).astype(jnp.float32),
                      ((0, mp_ - M), (0, cp_ - Cout)))
    else:
        res = None

    out = _matmul_bn_pallas(xcols, w2, scale, bias, res, relu, tm)
    return out[:M, :Cout].reshape(N, Hout, Wout, Cout)


def gap_conv(x, p):
    """ASPP image-pooling branch: AdaptiveAvgPool2d(1) -> 1x1 conv -> BN -> ReLU."""
    # TODO(synk): for very large feature maps this single-block spec should tile
    # H*W over a reduction grid axis (fine at demo shapes).
    N, H, W, Cin = x.shape
    Cout = p['w'].shape[-1]
    cp_ = _round_up(Cout, 128)
    xr = x.reshape(N, H * W, Cin)
    w2 = jnp.pad(p['w'].reshape(Cin, Cout), ((0, 0), (0, cp_ - Cout)))
    scale = jnp.pad(p['scale'], ((0, 0), (0, cp_ - Cout)))
    bias = jnp.pad(p['bias'], ((0, 0), (0, cp_ - Cout)))
    kernel = functools.partial(_gap_conv_kernel, inv_hw=1.0 / float(H * W))
    out = pl.pallas_call(
        kernel,
        out_shape=jax.ShapeDtypeStruct((N, cp_), jnp.float32),
        grid_spec=pltpu.PrefetchScalarGridSpec(
            num_scalar_prefetch=0,
            grid=(1,),
            in_specs=[
                pl.BlockSpec((N, H * W, Cin), lambda i: (0, 0, 0)),
                pl.BlockSpec((Cin, cp_), lambda i: (0, 0)),
                pl.BlockSpec((1, cp_), lambda i: (0, 0)),
                pl.BlockSpec((1, cp_), lambda i: (0, 0)),
            ],
            out_specs=pl.BlockSpec((N, cp_), lambda i: (0, 0)),
        ),
        compiler_params=_COMPILER_PARAMS,
    )(xr, w2, scale, bias)
    return out[:, :Cout]


def aspp_head(xcat, p3, p4):
    """Fused ASPP tail: xcat [M, 5*C_ASPP] -> 1x1 conv+BN+ReLU -> 1x1 classifier."""
    M, K = xcat.shape
    C3 = p3['w'].shape[-1]
    C4 = p4['w'].shape[-1]
    kp_ = _round_up(K, 128)
    c3p = _round_up(C3, 128)
    c4p = _round_up(C4, 128)
    tm = _pick_tile(M)
    mp_ = _round_up(M, tm)

    xpd = jnp.pad(xcat, ((0, mp_ - M), (0, kp_ - K))).astype(jnp.bfloat16)
    w3 = jnp.pad(p3['w'].reshape(K, C3),
                 ((0, kp_ - K), (0, c3p - C3))).astype(jnp.bfloat16)
    s3 = jnp.pad(p3['scale'], ((0, 0), (0, c3p - C3)))
    b3 = jnp.pad(p3['bias'], ((0, 0), (0, c3p - C3)))
    w4 = jnp.pad(p4['w'].reshape(C3, C4), ((0, c3p - C3), (0, c4p - C4)))
    s4 = jnp.pad(p4['scale'], ((0, 0), (0, c4p - C4)))
    b4 = jnp.pad(p4['bias'], ((0, 0), (0, c4p - C4)))

    out = pl.pallas_call(
        _aspp_head_kernel,
        out_shape=jax.ShapeDtypeStruct((mp_, c4p), jnp.float32),
        grid_spec=pltpu.PrefetchScalarGridSpec(
            num_scalar_prefetch=0,
            grid=(mp_ // tm,),
            in_specs=[
                pl.BlockSpec((tm, kp_), lambda i: (i, 0)),
                pl.BlockSpec((kp_, c3p), lambda i: (0, 0)),
                pl.BlockSpec((1, c3p), lambda i: (0, 0)),
                pl.BlockSpec((1, c3p), lambda i: (0, 0)),
                pl.BlockSpec((c3p, c4p), lambda i: (0, 0)),
                pl.BlockSpec((1, c4p), lambda i: (0, 0)),
                pl.BlockSpec((1, c4p), lambda i: (0, 0)),
            ],
            out_specs=pl.BlockSpec((tm, c4p), lambda i: (i, 0)),
        ),
        compiler_params=_COMPILER_PARAMS,
    )(xpd, w3, s3, b3, w4, s4, b4)
    return out[:M, :C4]


def _bilinear_matrix(out_size, in_size):
    """Row-stochastic interpolation matrix (align_corners=False)."""
    m = np.zeros((out_size, in_size), np.float32)
    if in_size == 1:
        m[:, 0] = 1.0
        return m
    scale = in_size / out_size
    for o in range(out_size):
        src = max((o + 0.5) * scale - 0.5, 0.0)
        i0 = min(int(np.floor(src)), in_size - 1)
        frac = src - i0
        i1 = min(i0 + 1, in_size - 1)
        m[o, i0] += 1.0 - frac
        m[o, i1] += frac
    return m


def _single_matmul(a, b):
    """One-step Pallas matmul on full (small) operands."""
    ma, ka = a.shape
    _, nb = b.shape
    return pl.pallas_call(
        _matmul_kernel,
        out_shape=jax.ShapeDtypeStruct((ma, nb), jnp.float32),
        grid_spec=pltpu.PrefetchScalarGridSpec(
            num_scalar_prefetch=0,
            grid=(1,),
            in_specs=[
                pl.BlockSpec((ma, ka), lambda i: (0, 0)),
                pl.BlockSpec((ka, nb), lambda i: (0, 0)),
            ],
            out_specs=pl.BlockSpec((ma, nb), lambda i: (0, 0)),
        ),
        compiler_params=_COMPILER_PARAMS,
    )(a, b)


def bilinear_upsample_nhwc_to_nchw(x_nhwc, out_h, out_w):
    """Batched bilinear upsample of all N*C planes; returns NCHW."""
    N, Hin, Win, C = x_nhwc.shape
    rh = jnp.asarray(_bilinear_matrix(out_h, Hin))        # [Hout, Hin]
    rwt = jnp.asarray(_bilinear_matrix(out_w, Win)).T     # [Win, Wout]
    wp_ = _round_up(out_w, 128)
    rwt_p = jnp.pad(rwt, ((0, 0), (0, wp_ - out_w)))      # lane-dense output

    # Stage 1: contract H over all planes at once: [Hout, N*C*Win]
    xr = jnp.transpose(x_nhwc, (1, 0, 3, 2)).reshape(Hin, N * C * Win)
    t1 = _single_matmul(rh, xr)                           # [Hout, N*C*Win]
    # Stage 2: contract W: rows ordered (hout, n, c)
    t1r = t1.reshape(out_h * N * C, Win)
    t2 = _single_matmul(t1r, rwt_p)                       # [Hout*N*C, Wp]
    out = t2.reshape(out_h, N, C, wp_)[..., :out_w]
    return jnp.transpose(out, (1, 2, 0, 3))               # [N, C, Hout, Wout]


# -----------------------------------------------------------------------------
# Model (ResNet18-OS8 backbone + ASPP), scaled-down channel widths
# -----------------------------------------------------------------------------
NUM_CLASSES = 20
C_STEM, C_L1, C_L2, C_L3, C_L4 = 8, 8, 16, 32, 64
C_ASPP = 32
LAYER_CFG = [                      # (name, cin, cout, first_stride, dilation)
    ('layer1', C_STEM, C_L1, 1, 1),
    ('layer2', C_L1, C_L2, 2, 1),
    ('layer3', C_L2, C_L3, 1, 2),  # OS8: stride replaced by dilation
    ('layer4', C_L3, C_L4, 1, 4),
]


def _fold_bn(gamma, beta, mean, var, conv_bias=None, eps=1e-5):
    scale = gamma / jnp.sqrt(var + eps)
    bias = beta - mean * scale
    if conv_bias is not None:
        bias = bias + conv_bias * scale
    return scale[None, :], bias[None, :]


def _init_conv_bn(key, kh, kw, cin, cout, with_conv_bias=False):
    ks = jax.random.split(key, 6)
    fan_in = kh * kw * cin
    w = jax.random.normal(ks[0], (kh, kw, cin, cout), jnp.float32) / np.sqrt(fan_in)
    gamma = 1.0 + 0.1 * jax.random.normal(ks[1], (cout,), jnp.float32)
    beta = 0.1 * jax.random.normal(ks[2], (cout,), jnp.float32)
    mean = 0.1 * jax.random.normal(ks[3], (cout,), jnp.float32)
    var = 1.0 + 0.1 * jnp.abs(jax.random.normal(ks[4], (cout,), jnp.float32))
    cbias = (0.1 * jax.random.normal(ks[5], (cout,), jnp.float32)
             if with_conv_bias else None)
    scale, bias = _fold_bn(gamma, beta, mean, var, cbias)
    return {'w': w, 'scale': scale, 'bias': bias}


def _init_conv(key, kh, kw, cin, cout):
    k1, k2 = jax.random.split(key)
    fan_in = kh * kw * cin
    w = jax.random.normal(k1, (kh, kw, cin, cout), jnp.float32) / np.sqrt(fan_in)
    b = 0.1 * jax.random.normal(k2, (cout,), jnp.float32)
    return {'w': w, 'scale': jnp.ones((1, cout), jnp.float32), 'bias': b[None, :]}


def init_params(key):
    keys = iter(jax.random.split(key, 64))
    p = {'stem': _init_conv_bn(next(keys), 7, 7, 3, C_STEM)}

    def make_block(cin, cout, stride):
        blk = {'conv1': _init_conv_bn(next(keys), 3, 3, cin, cout),
               'conv2': _init_conv_bn(next(keys), 3, 3, cout, cout)}
        if stride != 1 or cin != cout:
            blk['down'] = _init_conv_bn(next(keys), 1, 1, cin, cout)
        return blk

    for name, cin, cout, stride, _dil in LAYER_CFG:
        p[name] = [make_block(cin, cout, stride), make_block(cout, cout, 1)]

    p['aspp'] = {
        'c1x1_1': _init_conv_bn(next(keys), 1, 1, C_L4, C_ASPP, True),
        'c3x3_1': _init_conv_bn(next(keys), 3, 3, C_L4, C_ASPP, True),
        'c3x3_2': _init_conv_bn(next(keys), 3, 3, C_L4, C_ASPP, True),
        'c3x3_3': _init_conv_bn(next(keys), 3, 3, C_L4, C_ASPP, True),
        'c1x1_2': _init_conv_bn(next(keys), 1, 1, C_L4, C_ASPP, True),
        'c1x1_3': _init_conv_bn(next(keys), 1, 1, 5 * C_ASPP, C_ASPP, True),
        'c1x1_4': _init_conv(next(keys), 1, 1, C_ASPP, NUM_CLASSES),
    }
    return p


def basic_block(x, p, *, stride, dilation):
    out = conv_bn_act(x, p['conv1'], stride=stride, dilation=dilation,
                      padding=dilation, relu=True)
    if 'down' in p:
        sc = conv_bn_act(x, p['down'], stride=stride, dilation=1, padding=0,
                         relu=False)
    else:
        sc = x
    out = conv_bn_act(out, p['conv2'], stride=1, dilation=dilation,
                      padding=dilation, relu=True, residual=sc)
    return out


def maxpool_3x3_s2_p1(x):
    # Plain-JAX glue (cheap window max); matches nn.MaxPool2d(3, 2, 1).
    return jax.lax.reduce_window(
        x, -jnp.inf, jax.lax.max, (1, 3, 3, 1), (1, 2, 2, 1),
        padding=((0, 0), (1, 1), (1, 1), (0, 0)))


def resnet_forward(x, p):
    x = conv_bn_act(x, p['stem'], stride=2, dilation=1, padding=3, relu=True)
    x = maxpool_3x3_s2_p1(x)
    for name, _cin, _cout, stride, dil in LAYER_CFG:
        x = basic_block(x, p[name][0], stride=stride, dilation=dil)
        x = basic_block(x, p[name][1], stride=1, dilation=dil)
    return x


def aspp_forward(feat, p):
    N, H, W, _ = feat.shape
    b1 = conv_bn_act(feat, p['c1x1_1'], padding=0, relu=True)
    b2 = conv_bn_act(feat, p['c3x3_1'], dilation=6, padding=6, relu=True)
    b3 = conv_bn_act(feat, p['c3x3_2'], dilation=12, padding=12, relu=True)
    b4 = conv_bn_act(feat, p['c3x3_3'], dilation=18, padding=18, relu=True)
    pooled = gap_conv(feat, p['c1x1_2'])                       # [N, C_ASPP]
    b5 = jnp.broadcast_to(pooled[:, None, None, :], (N, H, W, C_ASPP))
    xcat = jnp.concatenate([b1, b2, b3, b4, b5], axis=-1)      # [N,H,W,5*C_ASPP]
    logits = aspp_head(xcat.reshape(N * H * W, 5 * C_ASPP),
                       p['c1x1_3'], p['c1x1_4'])               # [M, NUM_CLASSES]
    return logits.reshape(N, H, W, NUM_CLASSES)


def deeplabv3_forward(params, x_nchw):
    N, _, H, W = x_nchw.shape
    x = jnp.transpose(x_nchw, (0, 2, 3, 1))                    # NCHW -> NHWC
    feat = resnet_forward(x, params)                           # [N, H/8, W/8, 64]
    logits = aspp_forward(feat, params['aspp'])                # [N, H/8, W/8, 20]
    return bilinear_upsample_nhwc_to_nchw(logits, H, W)        # [N, 20, H, W]


if __name__ == "__main__":
    key = jax.random.PRNGKey(0)
    kparam, kx = jax.random.split(key)
    params = init_params(kparam)
    x = jax.random.normal(kx, (2, 3, 32, 32), jnp.float32)     # NCHW like PyTorch

    fwd = jax.jit(deeplabv3_forward)
    out = fwd(params, x)
    jax.block_until_ready(out)
    assert out.shape == (2, NUM_CLASSES, 32, 32), out.shape
    assert bool(jnp.all(jnp.isfinite(out)))
    print("KERNEL_OK")
</pallas_src>

<mosaic_0001>
module attributes {stable_mosaic.version = 11 : i64} {
  func.func @_matmul_bn_kernel(%arg0: i32, %arg1: memref<256x256xbf16, #tpu.memory_space<vmem>>, %arg2: memref<256x128xbf16, #tpu.memory_space<vmem>>, %arg3: memref<1x128xf32, #tpu.memory_space<vmem>>, %arg4: memref<1x128xf32, #tpu.memory_space<vmem>>, %arg5: memref<256x128xf32, #tpu.memory_space<vmem>>) attributes {dimension_semantics = [#tpu.dimension_semantics<parallel>], iteration_bounds = array<i64: 2>, scalar_prefetch = 0 : i64, scratch_operands = 0 : i64, tpu.core_type = #tpu.core_type<tc>, window_params = [{transform_indices = @transform_0, window_bounds = array<i64: 256, 256>}, {pipeline_mode = #tpu.pipeline_mode<synchronous>, transform_indices = @transform_1, window_bounds = array<i64: 256, 128>}, {pipeline_mode = #tpu.pipeline_mode<synchronous>, transform_indices = @transform_2, window_bounds = array<i64: 1, 128>}, {pipeline_mode = #tpu.pipeline_mode<synchronous>, transform_indices = @transform_3, window_bounds = array<i64: 1, 128>}, {transform_indices = @transform_4, window_bounds = array<i64: 256, 128>}]} {
    %c0 = arith.constant 0 : index
    %c0_0 = arith.constant 0 : index
    %0 = vector.load %arg1[%c0, %c0_0] : memref<256x256xbf16, #tpu.memory_space<vmem>>, vector<256x256xbf16>
    %c0_1 = arith.constant 0 : index
    %c0_2 = arith.constant 0 : index
    %1 = vector.load %arg2[%c0_1, %c0_2] : memref<256x128xbf16, #tpu.memory_space<vmem>>, vector<256x128xbf16>
    %cst = arith.constant dense<0.000000e+00> : vector<256x128xf32>
    %2 = tpu.matmul %0, %1, %cst {dimension_numbers = #tpu.dot_dimension_numbers<[1], [0], [0], [1], [0, 0, 1, 1], [], []>} : vector<256x256xbf16>, vector<256x128xbf16>, vector<256x128xf32> -> vector<256x128xf32>
    %c0_3 = arith.constant 0 : index
    %c0_4 = arith.constant 0 : index
    %3 = vector.load %arg3[%c0_3, %c0_4] : memref<1x128xf32, #tpu.memory_space<vmem>>, vector<1x128xf32>
    %4 = vector.broadcast %3 : vector<1x128xf32> to vector<256x128xf32>
    %5 = arith.mulf %2, %4 : vector<256x128xf32>
    %c0_5 = arith.constant 0 : index
    %c0_6 = arith.constant 0 : index
    %6 = vector.load %arg4[%c0_5, %c0_6] : memref<1x128xf32, #tpu.memory_space<vmem>>, vector<1x128xf32>
    %7 = vector.broadcast %6 : vector<1x128xf32> to vector<256x128xf32>
    %8 = arith.addf %5, %7 : vector<256x128xf32>
    %cst_7 = arith.constant 0.000000e+00 : f32
    %9 = vector.broadcast %cst_7 : f32 to vector<256x128xf32>
    %10 = arith.maximumf %8, %9 : vector<256x128xf32>
    %c0_8 = arith.constant 0 : index
    %c0_9 = arith.constant 0 : index
    %11 = vector.load %arg5[%c0_8, %c0_9] : memref<256x128xf32, #tpu.memory_space<vmem>>, vector<256x128xf32>
    tpu.vector_store %arg5[%c0_8, %c0_9], %10 {strides = array<i32>} : memref<256x128xf32, #tpu.memory_space<vmem>>, vector<256x128xf32>,
    return
  }
  func.func @transform_0(%arg0: i32) -> (i32, i32) {
    %c0_i32 = arith.constant 0 : i32
    %c0_i32_0 = arith.constant 0 : i32
    return %arg0, %c0_i32 : i32, i32
  }
  func.func @transform_1(%arg0: i32) -> (i32, i32) {
    %c0_i32 = arith.constant 0 : i32
    %c0_i32_0 = arith.constant 0 : i32
    %c0_i32_1 = arith.constant 0 : i32
    return %c0_i32, %c0_i32_0 : i32, i32
  }
  func.func @transform_2(%arg0: i32) -> (i32, i32) {
    %c0_i32 = arith.constant 0 : i32
    %c0_i32_0 = arith.constant 0 : i32
    %c0_i32_1 = arith.constant 0 : i32
    return %c0_i32, %c0_i32_0 : i32, i32
  }
  func.func @transform_3(%arg0: i32) -> (i32, i32) {
    %c0_i32 = arith.constant 0 : i32
    %c0_i32_0 = arith.constant 0 : i32
    %c0_i32_1 = arith.constant 0 : i32
    return %c0_i32, %c0_i32_0 : i32, i32
  }
  func.func @transform_4(%arg0: i32) -> (i32, i32) {
    %c0_i32 = arith.constant 0 : i32
    %c0_i32_0 = arith.constant 0 : i32
    return %arg0, %c0_i32 : i32, i32
  }
}

module attributes {stable_mosaic.version = 11 : i64} {
  func.func @_matmul_bn_kernel(%arg0: i32, %arg1: memref<128x128xbf16, #tpu.memory_space<vmem>>, %arg2: memref<128x128xbf16, #tpu.memory_space<vmem>>, %arg3: memref<1x128xf32, #tpu.memory_space<vmem>>, %arg4: memref<1x128xf32, #tpu.memory_space<vmem>>, %arg5: memref<128x128xf32, #tpu.memory_space<vmem>>) attributes {dimension_semantics = [#tpu.dimension_semantics<parallel>], iteration_bounds = array<i64: 1>, scalar_prefetch = 0 : i64, scratch_operands = 0 : i64, tpu.core_type = #tpu.core_type<tc>, window_params = [{transform_indices = @transform_0, window_bounds = array<i64: 128, 128>}, {pipeline_mode = #tpu.pipeline_mode<synchronous>, transform_indices = @transform_1, window_bounds = array<i64: 128, 128>}, {pipeline_mode = #tpu.pipeline_mode<synchronous>, transform_indices = @transform_2, window_bounds = array<i64: 1, 128>}, {pipeline_mode = #tpu.pipeline_mode<synchronous>, transform_indices = @transform_3, window_bounds = array<i64: 1, 128>}, {transform_indices = @transform_4, window_bounds = array<i64: 128, 128>}]} {
    %c0 = arith.constant 0 : index
    %c0_0 = arith.constant 0 : index
    %0 = vector.load %arg1[%c0, %c0_0] : memref<128x128xbf16, #tpu.memory_space<vmem>>, vector<128x128xbf16>
    %c0_1 = arith.constant 0 : index
    %c0_2 = arith.constant 0 : index
    %1 = vector.load %arg2[%c0_1, %c0_2] : memref<128x128xbf16, #tpu.memory_space<vmem>>, vector<128x128xbf16>
    %cst = arith.constant dense<0.000000e+00> : vector<128x128xf32>
    %2 = tpu.matmul %0, %1, %cst {dimension_numbers = #tpu.dot_dimension_numbers<[1], [0], [0], [1], [0, 0, 1, 1], [], []>} : vector<128x128xbf16>, vector<128x128xbf16>, vector<128x128xf32> -> vector<128x128xf32>
    %c0_3 = arith.constant 0 : index
    %c0_4 = arith.constant 0 : index
    %3 = vector.load %arg3[%c0_3, %c0_4] : memref<1x128xf32, #tpu.memory_space<vmem>>, vector<1x128xf32>
    %4 = vector.broadcast %3 : vector<1x128xf32> to vector<128x128xf32>
    %5 = arith.mulf %2, %4 : vector<128x128xf32>
    %c0_5 = arith.constant 0 : index
    %c0_6 = arith.constant 0 : index
    %6 = vector.load %arg4[%c0_5, %c0_6] : memref<1x128xf32, #tpu.memory_space<vmem>>, vector<1x128xf32>
    %7 = vector.broadcast %6 : vector<1x128xf32> to vector<128x128xf32>
    %8 = arith.addf %5, %7 : vector<128x128xf32>
    %cst_7 = arith.constant 0.000000e+00 : f32
    %9 = vector.broadcast %cst_7 : f32 to vector<128x128xf32>
    %10 = arith.maximumf %8, %9 : vector<128x128xf32>
    %c0_8 = arith.constant 0 : index
    %c0_9 = arith.constant 0 : index
    %11 = vector.load %arg5[%c0_8, %c0_9] : memref<128x128xf32, #tpu.memory_space<vmem>>, vector<128x128xf32>
    tpu.vector_store %arg5[%c0_8, %c0_9], %10 {strides = array<i32>} : memref<128x128xf32, #tpu.memory_space<vmem>>, vector<128x128xf32>,
    return
  }
  func.func @transform_0(%arg0: i32) -> (i32, i32) {
    %c0_i32 = arith.constant 0 : i32
    %c0_i32_0 = arith.constant 0 : i32
    return %arg0, %c0_i32 : i32, i32
  }
  func.func @transform_1(%arg0: i32) -> (i32, i32) {
    %c0_i32 = arith.constant 0 : i32
    %c0_i32_0 = arith.constant 0 : i32
    %c0_i32_1 = arith.constant 0 : i32
    return %c0_i32, %c0_i32_0 : i32, i32
  }
  func.func @transform_2(%arg0: i32) -> (i32, i32) {
    %c0_i32 = arith.constant 0 : i32
    %c0_i32_0 = arith.constant 0 : i32
    %c0_i32_1 = arith.constant 0 : i32
    return %c0_i32, %c0_i32_0 : i32, i32
  }
  func.func @transform_3(%arg0: i32) -> (i32, i32) {
    %c0_i32 = arith.constant 0 : i32
    %c0_i32_0 = arith.constant 0 : i32
    %c0_i32_1 = arith.constant 0 : i32
    return %c0_i32, %c0_i32_0 : i32, i32
  }
  func.func @transform_4(%arg0: i32) -> (i32, i32) {
    %c0_i32 = arith.constant 0 : i32
    %c0_i32_0 = arith.constant 0 : i32
    return %arg0, %c0_i32 : i32, i32
  }
}

module attributes {stable_mosaic.version = 11 : i64} {
  func.func @_matmul_bn_res_kernel(%arg0: i32, %arg1: memref<128x128xbf16, #tpu.memory_space<vmem>>, %arg2: memref<128x128xbf16, #tpu.memory_space<vmem>>, %arg3: memref<1x128xf32, #tpu.memory_space<vmem>>, %arg4: memref<1x128xf32, #tpu.memory_space<vmem>>, %arg5: memref<128x128xf32, #tpu.memory_space<vmem>>, %arg6: memref<128x128xf32, #tpu.memory_space<vmem>>) attributes {dimension_semantics = [#tpu.dimension_semantics<parallel>], iteration_bounds = array<i64: 1>, scalar_prefetch = 0 : i64, scratch_operands = 0 : i64, tpu.core_type = #tpu.core_type<tc>, window_params = [{transform_indices = @transform_0, window_bounds = array<i64: 128, 128>}, {pipeline_mode = #tpu.pipeline_mode<synchronous>, transform_indices = @transform_1, window_bounds = array<i64: 128, 128>}, {pipeline_mode = #tpu.pipeline_mode<synchronous>, transform_indices = @transform_2, window_bounds = array<i64: 1, 128>}, {pipeline_mode = #tpu.pipeline_mode<synchronous>, transform_indices = @transform_3, window_bounds = array<i64: 1, 128>}, {transform_indices = @transform_4, window_bounds = array<i64: 128, 128>}, {transform_indices = @transform_5, window_bounds = array<i64: 128, 128>}]} {
    %c0 = arith.constant 0 : index
    %c0_0 = arith.constant 0 : index
    %0 = vector.load %arg1[%c0, %c0_0] : memref<128x128xbf16, #tpu.memory_space<vmem>>, vector<128x128xbf16>
    %c0_1 = arith.constant 0 : index
    %c0_2 = arith.constant 0 : index
    %1 = vector.load %arg2[%c0_1, %c0_2] : memref<128x128xbf16, #tpu.memory_space<vmem>>, vector<128x128xbf16>
    %cst = arith.constant dense<0.000000e+00> : vector<128x128xf32>
    %2 = tpu.matmul %0, %1, %cst {dimension_numbers = #tpu.dot_dimension_numbers<[1], [0], [0], [1], [0, 0, 1, 1], [], []>} : vector<128x128xbf16>, vector<128x128xbf16>, vector<128x128xf32> -> vector<128x128xf32>
    %c0_3 = arith.constant 0 : index
    %c0_4 = arith.constant 0 : index
    %3 = vector.load %arg3[%c0_3, %c0_4] : memref<1x128xf32, #tpu.memory_space<vmem>>, vector<1x128xf32>
    %4 = vector.broadcast %3 : vector<1x128xf32> to vector<128x128xf32>
    %5 = arith.mulf %2, %4 : vector<128x128xf32>
    %c0_5 = arith.constant 0 : index
    %c0_6 = arith.constant 0 : index
    %6 = vector.load %arg4[%c0_5, %c0_6] : memref<1x128xf32, #tpu.memory_space<vmem>>, vector<1x128xf32>
    %7 = vector.broadcast %6 : vector<1x128xf32> to vector<128x128xf32>
    %8 = arith.addf %5, %7 : vector<128x128xf32>
    %c0_7 = arith.constant 0 : index
    %c0_8 = arith.constant 0 : index
    %9 = vector.load %arg5[%c0_7, %c0_8] : memref<128x128xf32, #tpu.memory_space<vmem>>, vector<128x128xf32>
    %10 = arith.addf %8, %9 : vector<128x128xf32>
    %cst_9 = arith.constant 0.000000e+00 : f32
    %11 = vector.broadcast %cst_9 : f32 to vector<128x128xf32>
    %12 = arith.maximumf %10, %11 : vector<128x128xf32>
    %c0_10 = arith.constant 0 : index
    %c0_11 = arith.constant 0 : index
    %13 = vector.load %arg6[%c0_10, %c0_11] : memref<128x128xf32, #tpu.memory_space<vmem>>, vector<128x128xf32>
    tpu.vector_store %arg6[%c0_10, %c0_11], %12 {strides = array<i32>} : memref<128x128xf32, #tpu.memory_space<vmem>>, vector<128x128xf32>,
    return
  }
  func.func @transform_0(%arg0: i32) -> (i32, i32) {
    %c0_i32 = arith.constant 0 : i32
    %c0_i32_0 = arith.constant 0 : i32
    return %arg0, %c0_i32 : i32, i32
  }
  func.func @transform_1(%arg0: i32) -> (i32, i32) {
    %c0_i32 = arith.constant 0 : i32
    %c0_i32_0 = arith.constant 0 : i32
    %c0_i32_1 = arith.constant 0 : i32
    return %c0_i32, %c0_i32_0 : i32, i32
  }
  func.func @transform_2(%arg0: i32) -> (i32, i32) {
    %c0_i32 = arith.constant 0 : i32
    %c0_i32_0 = arith.constant 0 : i32
    %c0_i32_1 = arith.constant 0 : i32
    return %c0_i32, %c0_i32_0 : i32, i32
  }
  func.func @transform_3(%arg0: i32) -> (i32, i32) {
    %c0_i32 = arith.constant 0 : i32
    %c0_i32_0 = arith.constant 0 : i32
    %c0_i32_1 = arith.constant 0 : i32
    return %c0_i32, %c0_i32_0 : i32, i32
  }
  func.func @transform_4(%arg0: i32) -> (i32, i32) {
    %c0_i32 = arith.constant 0 : i32
    %c0_i32_0 = arith.constant 0 : i32
    return %arg0, %c0_i32 : i32, i32
  }
  func.func @transform_5(%arg0: i32) -> (i32, i32) {
    %c0_i32 = arith.constant 0 : i32
    %c0_i32_0 = arith.constant 0 : i32
    return %arg0, %c0_i32 : i32, i32
  }
}

module attributes {stable_mosaic.version = 11 : i64} {
  func.func @_matmul_bn_kernel(%arg0: i32, %arg1: memref<32x128xbf16, #tpu.memory_space<vmem>>, %arg2: memref<128x128xbf16, #tpu.memory_space<vmem>>, %arg3: memref<1x128xf32, #tpu.memory_space<vmem>>, %arg4: memref<1x128xf32, #tpu.memory_space<vmem>>, %arg5: memref<32x128xf32, #tpu.memory_space<vmem>>) attributes {dimension_semantics = [#tpu.dimension_semantics<parallel>], iteration_bounds = array<i64: 1>, scalar_prefetch = 0 : i64, scratch_operands = 0 : i64, tpu.core_type = #tpu.core_type<tc>, window_params = [{transform_indices = @transform_0, window_bounds = array<i64: 32, 128>}, {pipeline_mode = #tpu.pipeline_mode<synchronous>, transform_indices = @transform_1, window_bounds = array<i64: 128, 128>}, {pipeline_mode = #tpu.pipeline_mode<synchronous>, transform_indices = @transform_2, window_bounds = array<i64: 1, 128>}, {pipeline_mode = #tpu.pipeline_mode<synchronous>, transform_indices = @transform_3, window_bounds = array<i64: 1, 128>}, {transform_indices = @transform_4, window_bounds = array<i64: 32, 128>}]} {
    %c0 = arith.constant 0 : index
    %c0_0 = arith.constant 0 : index
    %0 = vector.load %arg1[%c0, %c0_0] : memref<32x128xbf16, #tpu.memory_space<vmem>>, vector<32x128xbf16>
    %c0_1 = arith.constant 0 : index
    %c0_2 = arith.constant 0 : index
    %1 = vector.load %arg2[%c0_1, %c0_2] : memref<128x128xbf16, #tpu.memory_space<vmem>>, vector<128x128xbf16>
    %cst = arith.constant dense<0.000000e+00> : vector<32x128xf32>
    %2 = tpu.matmul %0, %1, %cst {dimension_numbers = #tpu.dot_dimension_numbers<[1], [0], [0], [1], [0, 0, 1, 1], [], []>} : vector<32x128xbf16>, vector<128x128xbf16>, vector<32x128xf32> -> vector<32x128xf32>
    %c0_3 = arith.constant 0 : index
    %c0_4 = arith.constant 0 : index
    %3 = vector.load %arg3[%c0_3, %c0_4] : memref<1x128xf32, #tpu.memory_space<vmem>>, vector<1x128xf32>
    %4 = vector.broadcast %3 : vector<1x128xf32> to vector<32x128xf32>
    %5 = arith.mulf %2, %4 : vector<32x128xf32>
    %c0_5 = arith.constant 0 : index
    %c0_6 = arith.constant 0 : index
    %6 = vector.load %arg4[%c0_5, %c0_6] : memref<1x128xf32, #tpu.memory_space<vmem>>, vector<1x128xf32>
    %7 = vector.broadcast %6 : vector<1x128xf32> to vector<32x128xf32>
    %8 = arith.addf %5, %7 : vector<32x128xf32>
    %cst_7 = arith.constant 0.000000e+00 : f32
    %9 = vector.broadcast %cst_7 : f32 to vector<32x128xf32>
    %10 = arith.maximumf %8, %9 : vector<32x128xf32>
    %c0_8 = arith.constant 0 : index
    %c0_9 = arith.constant 0 : index
    %11 = vector.load %arg5[%c0_8, %c0_9] : memref<32x128xf32, #tpu.memory_space<vmem>>, vector<32x128xf32>
    tpu.vector_store %arg5[%c0_8, %c0_9], %10 {strides = array<i32>} : memref<32x128xf32, #tpu.memory_space<vmem>>, vector<32x128xf32>,
    return
  }
  func.func @transform_0(%arg0: i32) -> (i32, i32) {
    %c0_i32 = arith.constant 0 : i32
    %c0_i32_0 = arith.constant 0 : i32
    return %arg0, %c0_i32 : i32, i32
  }
  func.func @transform_1(%arg0: i32) -> (i32, i32) {
    %c0_i32 = arith.constant 0 : i32
    %c0_i32_0 = arith.constant 0 : i32
    %c0_i32_1 = arith.constant 0 : i32
    return %c0_i32, %c0_i32_0 : i32, i32
  }
  func.func @transform_2(%arg0: i32) -> (i32, i32) {
    %c0_i32 = arith.constant 0 : i32
    %c0_i32_0 = arith.constant 0 : i32
    %c0_i32_1 = arith.constant 0 : i32
    return %c0_i32, %c0_i32_0 : i32, i32
  }
  func.func @transform_3(%arg0: i32) -> (i32, i32) {
    %c0_i32 = arith.constant 0 : i32
    %c0_i32_0 = arith.constant 0 : i32
    %c0_i32_1 = arith.constant 0 : i32
    return %c0_i32, %c0_i32_0 : i32, i32
  }
  func.func @transform_4(%arg0: i32) -> (i32, i32) {
    %c0_i32 = arith.constant 0 : i32
    %c0_i32_0 = arith.constant 0 : i32
    return %arg0, %c0_i32 : i32, i32
  }
}

module attributes {stable_mosaic.version = 11 : i64} {
  func.func @_matmul_bn_kernel(%arg0: i32, %arg1: memref<32x256xbf16, #tpu.memory_space<vmem>>, %arg2: memref<256x128xbf16, #tpu.memory_space<vmem>>, %arg3: memref<1x128xf32, #tpu.memory_space<vmem>>, %arg4: memref<1x128xf32, #tpu.memory_space<vmem>>, %arg5: memref<32x128xf32, #tpu.memory_space<vmem>>) attributes {dimension_semantics = [#tpu.dimension_semantics<parallel>], iteration_bounds = array<i64: 1>, scalar_prefetch = 0 : i64, scratch_operands = 0 : i64, tpu.core_type = #tpu.core_type<tc>, window_params = [{transform_indices = @transform_0, window_bounds = array<i64: 32, 256>}, {pipeline_mode = #tpu.pipeline_mode<synchronous>, transform_indices = @transform_1, window_bounds = array<i64: 256, 128>}, {pipeline_mode = #tpu.pipeline_mode<synchronous>, transform_indices = @transform_2, window_bounds = array<i64: 1, 128>}, {pipeline_mode = #tpu.pipeline_mode<synchronous>, transform_indices = @transform_3, window_bounds = array<i64: 1, 128>}, {transform_indices = @transform_4, window_bounds = array<i64: 32, 128>}]} {
    %c0 = arith.constant 0 : index
    %c0_0 = arith.constant 0 : index
    %0 = vector.load %arg1[%c0, %c0_0] : memref<32x256xbf16, #tpu.memory_space<vmem>>, vector<32x256xbf16>
    %c0_1 = arith.constant 0 : index
    %c0_2 = arith.constant 0 : index
    %1 = vector.load %arg2[%c0_1, %c0_2] : memref<256x128xbf16, #tpu.memory_space<vmem>>, vector<256x128xbf16>
    %cst = arith.constant dense<0.000000e+00> : vector<32x128xf32>
    %2 = tpu.matmul %0, %1, %cst {dimension_numbers = #tpu.dot_dimension_numbers<[1], [0], [0], [1], [0, 0, 1, 1], [], []>} : vector<32x256xbf16>, vector<256x128xbf16>, vector<32x128xf32> -> vector<32x128xf32>
    %c0_3 = arith.constant 0 : index
    %c0_4 = arith.constant 0 : index
    %3 = vector.load %arg3[%c0_3, %c0_4] : memref<1x128xf32, #tpu.memory_space<vmem>>, vector<1x128xf32>
    %4 = vector.broadcast %3 : vector<1x128xf32> to vector<32x128xf32>
    %5 = arith.mulf %2, %4 : vector<32x128xf32>
    %c0_5 = arith.constant 0 : index
    %c0_6 = arith.constant 0 : index
    %6 = vector.load %arg4[%c0_5, %c0_6] : memref<1x128xf32, #tpu.memory_space<vmem>>, vector<1x128xf32>
    %7 = vector.broadcast %6 : vector<1x128xf32> to vector<32x128xf32>
    %8 = arith.addf %5, %7 : vector<32x128xf32>
    %cst_7 = arith.constant 0.000000e+00 : f32
    %9 = vector.broadcast %cst_7 : f32 to vector<32x128xf32>
    %10 = arith.maximumf %8, %9 : vector<32x128xf32>
    %c0_8 = arith.constant 0 : index
    %c0_9 = arith.constant 0 : index
    %11 = vector.load %arg5[%c0_8, %c0_9] : memref<32x128xf32, #tpu.memory_space<vmem>>, vector<32x128xf32>
    tpu.vector_store %arg5[%c0_8, %c0_9], %10 {strides = array<i32>} : memref<32x128xf32, #tpu.memory_space<vmem>>, vector<32x128xf32>,
    return
  }
  func.func @transform_0(%arg0: i32) -> (i32, i32) {
    %c0_i32 = arith.constant 0 : i32
    %c0_i32_0 = arith.constant 0 : i32
    return %arg0, %c0_i32 : i32, i32
  }
  func.func @transform_1(%arg0: i32) -> (i32, i32) {
    %c0_i32 = arith.constant 0 : i32
    %c0_i32_0 = arith.constant 0 : i32
    %c0_i32_1 = arith.constant 0 : i32
    return %c0_i32, %c0_i32_0 : i32, i32
  }
  func.func @transform_2(%arg0: i32) -> (i32, i32) {
    %c0_i32 = arith.constant 0 : i32
    %c0_i32_0 = arith.constant 0 : i32
    %c0_i32_1 = arith.constant 0 : i32
    return %c0_i32, %c0_i32_0 : i32, i32
  }
  func.func @transform_3(%arg0: i32) -> (i32, i32) {
    %c0_i32 = arith.constant 0 : i32
    %c0_i32_0 = arith.constant 0 : i32
    %c0_i32_1 = arith.constant 0 : i32
    return %c0_i32, %c0_i32_0 : i32, i32
  }
  func.func @transform_4(%arg0: i32) -> (i32, i32) {
    %c0_i32 = arith.constant 0 : i32
    %c0_i32_0 = arith.constant 0 : i32
    return %arg0, %c0_i32 : i32, i32
  }
}

module attributes {stable_mosaic.version = 11 : i64} {
  func.func @_matmul_bn_kernel(%arg0: i32, %arg1: memref<32x128xbf16, #tpu.memory_space<vmem>>, %arg2: memref<128x128xbf16, #tpu.memory_space<vmem>>, %arg3: memref<1x128xf32, #tpu.memory_space<vmem>>, %arg4: memref<1x128xf32, #tpu.memory_space<vmem>>, %arg5: memref<32x128xf32, #tpu.memory_space<vmem>>) attributes {dimension_semantics = [#tpu.dimension_semantics<parallel>], iteration_bounds = array<i64: 1>, scalar_prefetch = 0 : i64, scratch_operands = 0 : i64, tpu.core_type = #tpu.core_type<tc>, window_params = [{transform_indices = @transform_0, window_bounds = array<i64: 32, 128>}, {pipeline_mode = #tpu.pipeline_mode<synchronous>, transform_indices = @transform_1, window_bounds = array<i64: 128, 128>}, {pipeline_mode = #tpu.pipeline_mode<synchronous>, transform_indices = @transform_2, window_bounds = array<i64: 1, 128>}, {pipeline_mode = #tpu.pipeline_mode<synchronous>, transform_indices = @transform_3, window_bounds = array<i64: 1, 128>}, {transform_indices = @transform_4, window_bounds = array<i64: 32, 128>}]} {
    %c0 = arith.constant 0 : index
    %c0_0 = arith.constant 0 : index
    %0 = vector.load %arg1[%c0, %c0_0] : memref<32x128xbf16, #tpu.memory_space<vmem>>, vector<32x128xbf16>
    %c0_1 = arith.constant 0 : index
    %c0_2 = arith.constant 0 : index
    %1 = vector.load %arg2[%c0_1, %c0_2] : memref<128x128xbf16, #tpu.memory_space<vmem>>, vector<128x128xbf16>
    %cst = arith.constant dense<0.000000e+00> : vector<32x128xf32>
    %2 = tpu.matmul %0, %1, %cst {dimension_numbers = #tpu.dot_dimension_numbers<[1], [0], [0], [1], [0, 0, 1, 1], [], []>} : vector<32x128xbf16>, vector<128x128xbf16>, vector<32x128xf32> -> vector<32x128xf32>
    %c0_3 = arith.constant 0 : index
    %c0_4 = arith.constant 0 : index
    %3 = vector.load %arg3[%c0_3, %c0_4] : memref<1x128xf32, #tpu.memory_space<vmem>>, vector<1x128xf32>
    %4 = vector.broadcast %3 : vector<1x128xf32> to vector<32x128xf32>
    %5 = arith.mulf %2, %4 : vector<32x128xf32>
    %c0_5 = arith.constant 0 : index
    %c0_6 = arith.constant 0 : index
    %6 = vector.load %arg4[%c0_5, %c0_6] : memref<1x128xf32, #tpu.memory_space<vmem>>, vector<1x128xf32>
    %7 = vector.broadcast %6 : vector<1x128xf32> to vector<32x128xf32>
    %8 = arith.addf %5, %7 : vector<32x128xf32>
    %c0_7 = arith.constant 0 : index
    %c0_8 = arith.constant 0 : index
    %9 = vector.load %arg5[%c0_7, %c0_8] : memref<32x128xf32, #tpu.memory_space<vmem>>, vector<32x128xf32>
    tpu.vector_store %arg5[%c0_7, %c0_8], %8 {strides = array<i32>} : memref<32x128xf32, #tpu.memory_space<vmem>>, vector<32x128xf32>,
    return
  }
  func.func @transform_0(%arg0: i32) -> (i32, i32) {
    %c0_i32 = arith.constant 0 : i32
    %c0_i32_0 = arith.constant 0 : i32
    return %arg0, %c0_i32 : i32, i32
  }
  func.func @transform_1(%arg0: i32) -> (i32, i32) {
    %c0_i32 = arith.constant 0 : i32
    %c0_i32_0 = arith.constant 0 : i32
    %c0_i32_1 = arith.constant 0 : i32
    return %c0_i32, %c0_i32_0 : i32, i32
  }
  func.func @transform_2(%arg0: i32) -> (i32, i32) {
    %c0_i32 = arith.constant 0 : i32
    %c0_i32_0 = arith.constant 0 : i32
    %c0_i32_1 = arith.constant 0 : i32
    return %c0_i32, %c0_i32_0 : i32, i32
  }
  func.func @transform_3(%arg0: i32) -> (i32, i32) {
    %c0_i32 = arith.constant 0 : i32
    %c0_i32_0 = arith.constant 0 : i32
    %c0_i32_1 = arith.constant 0 : i32
    return %c0_i32, %c0_i32_0 : i32, i32
  }
  func.func @transform_4(%arg0: i32) -> (i32, i32) {
    %c0_i32 = arith.constant 0 : i32
    %c0_i32_0 = arith.constant 0 : i32
    return %arg0, %c0_i32 : i32, i32
  }
}

module attributes {stable_mosaic.version = 11 : i64} {
  func.func @_matmul_bn_res_kernel(%arg0: i32, %arg1: memref<32x256xbf16, #tpu.memory_space<vmem>>, %arg2: memref<256x128xbf16, #tpu.memory_space<vmem>>, %arg3: memref<1x128xf32, #tpu.memory_space<vmem>>, %arg4: memref<1x128xf32, #tpu.memory_space<vmem>>, %arg5: memref<32x128xf32, #tpu.memory_space<vmem>>, %arg6: memref<32x128xf32, #tpu.memory_space<vmem>>) attributes {dimension_semantics = [#tpu.dimension_semantics<parallel>], iteration_bounds = array<i64: 1>, scalar_prefetch = 0 : i64, scratch_operands = 0 : i64, tpu.core_type = #tpu.core_type<tc>, window_params = [{transform_indices = @transform_0, window_bounds = array<i64: 32, 256>}, {pipeline_mode = #tpu.pipeline_mode<synchronous>, transform_indices = @transform_1, window_bounds = array<i64: 256, 128>}, {pipeline_mode = #tpu.pipeline_mode<synchronous>, transform_indices = @transform_2, window_bounds = array<i64: 1, 128>}, {pipeline_mode = #tpu.pipeline_mode<synchronous>, transform_indices = @transform_3, window_bounds = array<i64: 1, 128>}, {transform_indices = @transform_4, window_bounds = array<i64: 32, 128>}, {transform_indices = @transform_5, window_bounds = array<i64: 32, 128>}]} {
    %c0 = arith.constant 0 : index
    %c0_0 = arith.constant 0 : index
    %0 = vector.load %arg1[%c0, %c0_0] : memref<32x256xbf16, #tpu.memory_space<vmem>>, vector<32x256xbf16>
    %c0_1 = arith.constant 0 : index
    %c0_2 = arith.constant 0 : index
    %1 = vector.load %arg2[%c0_1, %c0_2] : memref<256x128xbf16, #tpu.memory_space<vmem>>, vector<256x128xbf16>
    %cst = arith.constant dense<0.000000e+00> : vector<32x128xf32>
    %2 = tpu.matmul %0, %1, %cst {dimension_numbers = #tpu.dot_dimension_numbers<[1], [0], [0], [1], [0, 0, 1, 1], [], []>} : vector<32x256xbf16>, vector<256x128xbf16>, vector<32x128xf32> -> vector<32x128xf32>
    %c0_3 = arith.constant 0 : index
    %c0_4 = arith.constant 0 : index
    %3 = vector.load %arg3[%c0_3, %c0_4] : memref<1x128xf32, #tpu.memory_space<vmem>>, vector<1x128xf32>
    %4 = vector.broadcast %3 : vector<1x128xf32> to vector<32x128xf32>
    %5 = arith.mulf %2, %4 : vector<32x128xf32>
    %c0_5 = arith.constant 0 : index
    %c0_6 = arith.constant 0 : index
    %6 = vector.load %arg4[%c0_5, %c0_6] : memref<1x128xf32, #tpu.memory_space<vmem>>, vector<1x128xf32>
    %7 = vector.broadcast %6 : vector<1x128xf32> to vector<32x128xf32>
    %8 = arith.addf %5, %7 : vector<32x128xf32>
    %c0_7 = arith.constant 0 : index
    %c0_8 = arith.constant 0 : index
    %9 = vector.load %arg5[%c0_7, %c0_8] : memref<32x128xf32, #tpu.memory_space<vmem>>, vector<32x128xf32>
    %10 = arith.addf %8, %9 : vector<32x128xf32>
    %cst_9 = arith.constant 0.000000e+00 : f32
    %11 = vector.broadcast %cst_9 : f32 to vector<32x128xf32>
    %12 = arith.maximumf %10, %11 : vector<32x128xf32>
    %c0_10 = arith.constant 0 : index
    %c0_11 = arith.constant 0 : index
    %13 = vector.load %arg6[%c0_10, %c0_11] : memref<32x128xf32, #tpu.memory_space<vmem>>, vector<32x128xf32>
    tpu.vector_store %arg6[%c0_10, %c0_11], %12 {strides = array<i32>} : memref<32x128xf32, #tpu.memory_space<vmem>>, vector<32x128xf32>,
    return
  }
  func.func @transform_0(%arg0: i32) -> (i32, i32) {
    %c0_i32 = arith.constant 0 : i32
    %c0_i32_0 = arith.constant 0 : i32
    return %arg0, %c0_i32 : i32, i32
  }
  func.func @transform_1(%arg0: i32) -> (i32, i32) {
    %c0_i32 = arith.constant 0 : i32
    %c0_i32_0 = arith.constant 0 : i32
    %c0_i32_1 = arith.constant 0 : i32
    return %c0_i32, %c0_i32_0 : i32, i32
  }
  func.func @transform_2(%arg0: i32) -> (i32, i32) {
    %c0_i32 = arith.constant 0 : i32
    %c0_i32_0 = arith.constant 0 : i32
    %c0_i32_1 = arith.constant 0 : i32
    return %c0_i32, %c0_i32_0 : i32, i32
  }
  func.func @transform_3(%arg0: i32) -> (i32, i32) {
    %c0_i32 = arith.constant 0 : i32
    %c0_i32_0 = arith.constant 0 : i32
    %c0_i32_1 = arith.constant 0 : i32
    return %c0_i32, %c0_i32_0 : i32, i32
  }
  func.func @transform_4(%arg0: i32) -> (i32, i32) {
    %c0_i32 = arith.constant 0 : i32
    %c0_i32_0 = arith.constant 0 : i32
    return %arg0, %c0_i32 : i32, i32
  }
  func.func @transform_5(%arg0: i32) -> (i32, i32) {
    %c0_i32 = arith.constant 0 : i32
    %c0_i32_0 = arith.constant 0 : i32
    return %arg0, %c0_i32 : i32, i32
  }
}

module attributes {stable_mosaic.version = 11 : i64} {
  func.func @_matmul_bn_kernel(%arg0: i32, %arg1: memref<32x384xbf16, #tpu.memory_space<vmem>>, %arg2: memref<384x128xbf16, #tpu.memory_space<vmem>>, %arg3: memref<1x128xf32, #tpu.memory_space<vmem>>, %arg4: memref<1x128xf32, #tpu.memory_space<vmem>>, %arg5: memref<32x128xf32, #tpu.memory_space<vmem>>) attributes {dimension_semantics = [#tpu.dimension_semantics<parallel>], iteration_bounds = array<i64: 1>, scalar_prefetch = 0 : i64, scratch_operands = 0 : i64, tpu.core_type = #tpu.core_type<tc>, window_params = [{transform_indices = @transform_0, window_bounds = array<i64: 32, 384>}, {pipeline_mode = #tpu.pipeline_mode<synchronous>, transform_indices = @transform_1, window_bounds = array<i64: 384, 128>}, {pipeline_mode = #tpu.pipeline_mode<synchronous>, transform_indices = @transform_2, window_bounds = array<i64: 1, 128>}, {pipeline_mode = #tpu.pipeline_mode<synchronous>, transform_indices = @transform_3, window_bounds = array<i64: 1, 128>}, {transform_indices = @transform_4, window_bounds = array<i64: 32, 128>}]} {
    %c0 = arith.constant 0 : index
    %c0_0 = arith.constant 0 : index
    %0 = vector.load %arg1[%c0, %c0_0] : memref<32x384xbf16, #tpu.memory_space<vmem>>, vector<32x384xbf16>
    %c0_1 = arith.constant 0 : index
    %c0_2 = arith.constant 0 : index
    %1 = vector.load %arg2[%c0_1, %c0_2] : memref<384x128xbf16, #tpu.memory_space<vmem>>, vector<384x128xbf16>
    %cst = arith.constant dense<0.000000e+00> : vector<32x128xf32>
    %2 = tpu.matmul %0, %1, %cst {dimension_numbers = #tpu.dot_dimension_numbers<[1], [0], [0], [1], [0, 0, 1, 1], [], []>} : vector<32x384xbf16>, vector<384x128xbf16>, vector<32x128xf32> -> vector<32x128xf32>
    %c0_3 = arith.constant 0 : index
    %c0_4 = arith.constant 0 : index
    %3 = vector.load %arg3[%c0_3, %c0_4] : memref<1x128xf32, #tpu.memory_space<vmem>>, vector<1x128xf32>
    %4 = vector.broadcast %3 : vector<1x128xf32> to vector<32x128xf32>
    %5 = arith.mulf %2, %4 : vector<32x128xf32>
    %c0_5 = arith.constant 0 : index
    %c0_6 = arith.constant 0 : index
    %6 = vector.load %arg4[%c0_5, %c0_6] : memref<1x128xf32, #tpu.memory_space<vmem>>, vector<1x128xf32>
    %7 = vector.broadcast %6 : vector<1x128xf32> to vector<32x128xf32>
    %8 = arith.addf %5, %7 : vector<32x128xf32>
    %cst_7 = arith.constant 0.000000e+00 : f32
    %9 = vector.broadcast %cst_7 : f32 to vector<32x128xf32>
    %10 = arith.maximumf %8, %9 : vector<32x128xf32>
    %c0_8 = arith.constant 0 : index
    %c0_9 = arith.constant 0 : index
    %11 = vector.load %arg5[%c0_8, %c0_9] : memref<32x128xf32, #tpu.memory_space<vmem>>, vector<32x128xf32>
    tpu.vector_store %arg5[%c0_8, %c0_9], %10 {strides = array<i32>} : memref<32x128xf32, #tpu.memory_space<vmem>>, vector<32x128xf32>,
    return
  }
  func.func @transform_0(%arg0: i32) -> (i32, i32) {
    %c0_i32 = arith.constant 0 : i32
    %c0_i32_0 = arith.constant 0 : i32
    return %arg0, %c0_i32 : i32, i32
  }
  func.func @transform_1(%arg0: i32) -> (i32, i32) {
    %c0_i32 = arith.constant 0 : i32
    %c0_i32_0 = arith.constant 0 : i32
    %c0_i32_1 = arith.constant 0 : i32
    return %c0_i32, %c0_i32_0 : i32, i32
  }
  func.func @transform_2(%arg0: i32) -> (i32, i32) {
    %c0_i32 = arith.constant 0 : i32
    %c0_i32_0 = arith.constant 0 : i32
    %c0_i32_1 = arith.constant 0 : i32
    return %c0_i32, %c0_i32_0 : i32, i32
  }
  func.func @transform_3(%arg0: i32) -> (i32, i32) {
    %c0_i32 = arith.constant 0 : i32
    %c0_i32_0 = arith.constant 0 : i32
    %c0_i32_1 = arith.constant 0 : i32
    return %c0_i32, %c0_i32_0 : i32, i32
  }
  func.func @transform_4(%arg0: i32) -> (i32, i32) {
    %c0_i32 = arith.constant 0 : i32
    %c0_i32_0 = arith.constant 0 : i32
    return %arg0, %c0_i32 : i32, i32
  }
}

module attributes {stable_mosaic.version = 11 : i64} {
  func.func @_matmul_bn_res_kernel(%arg0: i32, %arg1: memref<32x384xbf16, #tpu.memory_space<vmem>>, %arg2: memref<384x128xbf16, #tpu.memory_space<vmem>>, %arg3: memref<1x128xf32, #tpu.memory_space<vmem>>, %arg4: memref<1x128xf32, #tpu.memory_space<vmem>>, %arg5: memref<32x128xf32, #tpu.memory_space<vmem>>, %arg6: memref<32x128xf32, #tpu.memory_space<vmem>>) attributes {dimension_semantics = [#tpu.dimension_semantics<parallel>], iteration_bounds = array<i64: 1>, scalar_prefetch = 0 : i64, scratch_operands = 0 : i64, tpu.core_type = #tpu.core_type<tc>, window_params = [{transform_indices = @transform_0, window_bounds = array<i64: 32, 384>}, {pipeline_mode = #tpu.pipeline_mode<synchronous>, transform_indices = @transform_1, window_bounds = array<i64: 384, 128>}, {pipeline_mode = #tpu.pipeline_mode<synchronous>, transform_indices = @transform_2, window_bounds = array<i64: 1, 128>}, {pipeline_mode = #tpu.pipeline_mode<synchronous>, transform_indices = @transform_3, window_bounds = array<i64: 1, 128>}, {transform_indices = @transform_4, window_bounds = array<i64: 32, 128>}, {transform_indices = @transform_5, window_bounds = array<i64: 32, 128>}]} {
    %c0 = arith.constant 0 : index
    %c0_0 = arith.constant 0 : index
    %0 = vector.load %arg1[%c0, %c0_0] : memref<32x384xbf16, #tpu.memory_space<vmem>>, vector<32x384xbf16>
    %c0_1 = arith.constant 0 : index
    %c0_2 = arith.constant 0 : index
    %1 = vector.load %arg2[%c0_1, %c0_2] : memref<384x128xbf16, #tpu.memory_space<vmem>>, vector<384x128xbf16>
    %cst = arith.constant dense<0.000000e+00> : vector<32x128xf32>
    %2 = tpu.matmul %0, %1, %cst {dimension_numbers = #tpu.dot_dimension_numbers<[1], [0], [0], [1], [0, 0, 1, 1], [], []>} : vector<32x384xbf16>, vector<384x128xbf16>, vector<32x128xf32> -> vector<32x128xf32>
    %c0_3 = arith.constant 0 : index
    %c0_4 = arith.constant 0 : index
    %3 = vector.load %arg3[%c0_3, %c0_4] : memref<1x128xf32, #tpu.memory_space<vmem>>, vector<1x128xf32>
    %4 = vector.broadcast %3 : vector<1x128xf32> to vector<32x128xf32>
    %5 = arith.mulf %2, %4 : vector<32x128xf32>
    %c0_5 = arith.constant 0 : index
    %c0_6 = arith.constant 0 : index
    %6 = vector.load %arg4[%c0_5, %c0_6] : memref<1x128xf32, #tpu.memory_space<vmem>>, vector<1x128xf32>
    %7 = vector.broadcast %6 : vector<1x128xf32> to vector<32x128xf32>
    %8 = arith.addf %5, %7 : vector<32x128xf32>
    %c0_7 = arith.constant 0 : index
    %c0_8 = arith.constant 0 : index
    %9 = vector.load %arg5[%c0_7, %c0_8] : memref<32x128xf32, #tpu.memory_space<vmem>>, vector<32x128xf32>
    %10 = arith.addf %8, %9 : vector<32x128xf32>
    %cst_9 = arith.constant 0.000000e+00 : f32
    %11 = vector.broadcast %cst_9 : f32 to vector<32x128xf32>
    %12 = arith.maximumf %10, %11 : vector<32x128xf32>
    %c0_10 = arith.constant 0 : index
    %c0_11 = arith.constant 0 : index
    %13 = vector.load %arg6[%c0_10, %c0_11] : memref<32x128xf32, #tpu.memory_space<vmem>>, vector<32x128xf32>
    tpu.vector_store %arg6[%c0_10, %c0_11], %12 {strides = array<i32>} : memref<32x128xf32, #tpu.memory_space<vmem>>, vector<32x128xf32>,
    return
  }
  func.func @transform_0(%arg0: i32) -> (i32, i32) {
    %c0_i32 = arith.constant 0 : i32
    %c0_i32_0 = arith.constant 0 : i32
    return %arg0, %c0_i32 : i32, i32
  }
  func.func @transform_1(%arg0: i32) -> (i32, i32) {
    %c0_i32 = arith.constant 0 : i32
    %c0_i32_0 = arith.constant 0 : i32
    %c0_i32_1 = arith.constant 0 : i32
    return %c0_i32, %c0_i32_0 : i32, i32
  }
  func.func @transform_2(%arg0: i32) -> (i32, i32) {
    %c0_i32 = arith.constant 0 : i32
    %c0_i32_0 = arith.constant 0 : i32
    %c0_i32_1 = arith.constant 0 : i32
    return %c0_i32, %c0_i32_0 : i32, i32
  }
  func.func @transform_3(%arg0: i32) -> (i32, i32) {
    %c0_i32 = arith.constant 0 : i32
    %c0_i32_0 = arith.constant 0 : i32
    %c0_i32_1 = arith.constant 0 : i32
    return %c0_i32, %c0_i32_0 : i32, i32
  }
  func.func @transform_4(%arg0: i32) -> (i32, i32) {
    %c0_i32 = arith.constant 0 : i32
    %c0_i32_0 = arith.constant 0 : i32
    return %arg0, %c0_i32 : i32, i32
  }
  func.func @transform_5(%arg0: i32) -> (i32, i32) {
    %c0_i32 = arith.constant 0 : i32
    %c0_i32_0 = arith.constant 0 : i32
    return %arg0, %c0_i32 : i32, i32
  }
}

module attributes {stable_mosaic.version = 11 : i64} {
  func.func @_matmul_bn_res_kernel(%arg0: i32, %arg1: memref<32x640xbf16, #tpu.memory_space<vmem>>, %arg2: memref<640x128xbf16, #tpu.memory_space<vmem>>, %arg3: memref<1x128xf32, #tpu.memory_space<vmem>>, %arg4: memref<1x128xf32, #tpu.memory_space<vmem>>, %arg5: memref<32x128xf32, #tpu.memory_space<vmem>>, %arg6: memref<32x128xf32, #tpu.memory_space<vmem>>) attributes {dimension_semantics = [#tpu.dimension_semantics<parallel>], iteration_bounds = array<i64: 1>, scalar_prefetch = 0 : i64, scratch_operands = 0 : i64, tpu.core_type = #tpu.core_type<tc>, window_params = [{transform_indices = @transform_0, window_bounds = array<i64: 32, 640>}, {pipeline_mode = #tpu.pipeline_mode<synchronous>, transform_indices = @transform_1, window_bounds = array<i64: 640, 128>}, {pipeline_mode = #tpu.pipeline_mode<synchronous>, transform_indices = @transform_2, window_bounds = array<i64: 1, 128>}, {pipeline_mode = #tpu.pipeline_mode<synchronous>, transform_indices = @transform_3, window_bounds = array<i64: 1, 128>}, {transform_indices = @transform_4, window_bounds = array<i64: 32, 128>}, {transform_indices = @transform_5, window_bounds = array<i64: 32, 128>}]} {
    %c0 = arith.constant 0 : index
    %c0_0 = arith.constant 0 : index
    %0 = vector.load %arg1[%c0, %c0_0] : memref<32x640xbf16, #tpu.memory_space<vmem>>, vector<32x640xbf16>
    %c0_1 = arith.constant 0 : index
    %c0_2 = arith.constant 0 : index
    %1 = vector.load %arg2[%c0_1, %c0_2] : memref<640x128xbf16, #tpu.memory_space<vmem>>, vector<640x128xbf16>
    %cst = arith.constant dense<0.000000e+00> : vector<32x128xf32>
    %2 = tpu.matmul %0, %1, %cst {dimension_numbers = #tpu.dot_dimension_numbers<[1], [0], [0], [1], [0, 0, 1, 1], [], []>} : vector<32x640xbf16>, vector<640x128xbf16>, vector<32x128xf32> -> vector<32x128xf32>
    %c0_3 = arith.constant 0 : index
    %c0_4 = arith.constant 0 : index
    %3 = vector.load %arg3[%c0_3, %c0_4] : memref<1x128xf32, #tpu.memory_space<vmem>>, vector<1x128xf32>
    %4 = vector.broadcast %3 : vector<1x128xf32> to vector<32x128xf32>
    %5 = arith.mulf %2, %4 : vector<32x128xf32>
    %c0_5 = arith.constant 0 : index
    %c0_6 = arith.constant 0 : index
    %6 = vector.load %arg4[%c0_5, %c0_6] : memref<1x128xf32, #tpu.memory_space<vmem>>, vector<1x128xf32>
    %7 = vector.broadcast %6 : vector<1x128xf32> to vector<32x128xf32>
    %8 = arith.addf %5, %7 : vector<32x128xf32>
    %c0_7 = arith.constant 0 : index
    %c0_8 = arith.constant 0 : index
    %9 = vector.load %arg5[%c0_7, %c0_8] : memref<32x128xf32, #tpu.memory_space<vmem>>, vector<32x128xf32>
    %10 = arith.addf %8, %9 : vector<32x128xf32>
    %cst_9 = arith.constant 0.000000e+00 : f32
    %11 = vector.broadcast %cst_9 : f32 to vector<32x128xf32>
    %12 = arith.maximumf %10, %11 : vector<32x128xf32>
    %c0_10 = arith.constant 0 : index
    %c0_11 = arith.constant 0 : index
    %13 = vector.load %arg6[%c0_10, %c0_11] : memref<32x128xf32, #tpu.memory_space<vmem>>, vector<32x128xf32>
    tpu.vector_store %arg6[%c0_10, %c0_11], %12 {strides = array<i32>} : memref<32x128xf32, #tpu.memory_space<vmem>>, vector<32x128xf32>,
    return
  }
  func.func @transform_0(%arg0: i32) -> (i32, i32) {
    %c0_i32 = arith.constant 0 : i32
    %c0_i32_0 = arith.constant 0 : i32
    return %arg0, %c0_i32 : i32, i32
  }
  func.func @transform_1(%arg0: i32) -> (i32, i32) {
    %c0_i32 = arith.constant 0 : i32
    %c0_i32_0 = arith.constant 0 : i32
    %c0_i32_1 = arith.constant 0 : i32
    return %c0_i32, %c0_i32_0 : i32, i32
  }
  func.func @transform_2(%arg0: i32) -> (i32, i32) {
    %c0_i32 = arith.constant 0 : i32
    %c0_i32_0 = arith.constant 0 : i32
    %c0_i32_1 = arith.constant 0 : i32
    return %c0_i32, %c0_i32_0 : i32, i32
  }
  func.func @transform_3(%arg0: i32) -> (i32, i32) {
    %c0_i32 = arith.constant 0 : i32
    %c0_i32_0 = arith.constant 0 : i32
    %c0_i32_1 = arith.constant 0 : i32
    return %c0_i32, %c0_i32_0 : i32, i32
  }
  func.func @transform_4(%arg0: i32) -> (i32, i32) {
    %c0_i32 = arith.constant 0 : i32
    %c0_i32_0 = arith.constant 0 : i32
    return %arg0, %c0_i32 : i32, i32
  }
  func.func @transform_5(%arg0: i32) -> (i32, i32) {
    %c0_i32 = arith.constant 0 : i32
    %c0_i32_0 = arith.constant 0 : i32
    return %arg0, %c0_i32 : i32, i32
  }
}

module attributes {stable_mosaic.version = 11 : i64} {
  func.func @_matmul_bn_kernel(%arg0: i32, %arg1: memref<32x640xbf16, #tpu.memory_space<vmem>>, %arg2: memref<640x128xbf16, #tpu.memory_space<vmem>>, %arg3: memref<1x128xf32, #tpu.memory_space<vmem>>, %arg4: memref<1x128xf32, #tpu.memory_space<vmem>>, %arg5: memref<32x128xf32, #tpu.memory_space<vmem>>) attributes {dimension_semantics = [#tpu.dimension_semantics<parallel>], iteration_bounds = array<i64: 1>, scalar_prefetch = 0 : i64, scratch_operands = 0 : i64, tpu.core_type = #tpu.core_type<tc>, window_params = [{transform_indices = @transform_0, window_bounds = array<i64: 32, 640>}, {pipeline_mode = #tpu.pipeline_mode<synchronous>, transform_indices = @transform_1, window_bounds = array<i64: 640, 128>}, {pipeline_mode = #tpu.pipeline_mode<synchronous>, transform_indices = @transform_2, window_bounds = array<i64: 1, 128>}, {pipeline_mode = #tpu.pipeline_mode<synchronous>, transform_indices = @transform_3, window_bounds = array<i64: 1, 128>}, {transform_indices = @transform_4, window_bounds = array<i64: 32, 128>}]} {
    %c0 = arith.constant 0 : index
    %c0_0 = arith.constant 0 : index
    %0 = vector.load %arg1[%c0, %c0_0] : memref<32x640xbf16, #tpu.memory_space<vmem>>, vector<32x640xbf16>
    %c0_1 = arith.constant 0 : index
    %c0_2 = arith.constant 0 : index
    %1 = vector.load %arg2[%c0_1, %c0_2] : memref<640x128xbf16, #tpu.memory_space<vmem>>, vector<640x128xbf16>
    %cst = arith.constant dense<0.000000e+00> : vector<32x128xf32>
    %2 = tpu.matmul %0, %1, %cst {dimension_numbers = #tpu.dot_dimension_numbers<[1], [0], [0], [1], [0, 0, 1, 1], [], []>} : vector<32x640xbf16>, vector<640x128xbf16>, vector<32x128xf32> -> vector<32x128xf32>
    %c0_3 = arith.constant 0 : index
    %c0_4 = arith.constant 0 : index
    %3 = vector.load %arg3[%c0_3, %c0_4] : memref<1x128xf32, #tpu.memory_space<vmem>>, vector<1x128xf32>
    %4 = vector.broadcast %3 : vector<1x128xf32> to vector<32x128xf32>
    %5 = arith.mulf %2, %4 : vector<32x128xf32>
    %c0_5 = arith.constant 0 : index
    %c0_6 = arith.constant 0 : index
    %6 = vector.load %arg4[%c0_5, %c0_6] : memref<1x128xf32, #tpu.memory_space<vmem>>, vector<1x128xf32>
    %7 = vector.broadcast %6 : vector<1x128xf32> to vector<32x128xf32>
    %8 = arith.addf %5, %7 : vector<32x128xf32>
    %cst_7 = arith.constant 0.000000e+00 : f32
    %9 = vector.broadcast %cst_7 : f32 to vector<32x128xf32>
    %10 = arith.maximumf %8, %9 : vector<32x128xf32>
    %c0_8 = arith.constant 0 : index
    %c0_9 = arith.constant 0 : index
    %11 = vector.load %arg5[%c0_8, %c0_9] : memref<32x128xf32, #tpu.memory_space<vmem>>, vector<32x128xf32>
    tpu.vector_store %arg5[%c0_8, %c0_9], %10 {strides = array<i32>} : memref<32x128xf32, #tpu.memory_space<vmem>>, vector<32x128xf32>,
    return
  }
  func.func @transform_0(%arg0: i32) -> (i32, i32) {
    %c0_i32 = arith.constant 0 : i32
    %c0_i32_0 = arith.constant 0 : i32
    return %arg0, %c0_i32 : i32, i32
  }
  func.func @transform_1(%arg0: i32) -> (i32, i32) {
    %c0_i32 = arith.constant 0 : i32
    %c0_i32_0 = arith.constant 0 : i32
    %c0_i32_1 = arith.constant 0 : i32
    return %c0_i32, %c0_i32_0 : i32, i32
  }
  func.func @transform_2(%arg0: i32) -> (i32, i32) {
    %c0_i32 = arith.constant 0 : i32
    %c0_i32_0 = arith.constant 0 : i32
    %c0_i32_1 = arith.constant 0 : i32
    return %c0_i32, %c0_i32_0 : i32, i32
  }
  func.func @transform_3(%arg0: i32) -> (i32, i32) {
    %c0_i32 = arith.constant 0 : i32
    %c0_i32_0 = arith.constant 0 : i32
    %c0_i32_1 = arith.constant 0 : i32
    return %c0_i32, %c0_i32_0 : i32, i32
  }
  func.func @transform_4(%arg0: i32) -> (i32, i32) {
    %c0_i32 = arith.constant 0 : i32
    %c0_i32_0 = arith.constant 0 : i32
    return %arg0, %c0_i32 : i32, i32
  }
}

module attributes {stable_mosaic.version = 11 : i64} {
  func.func @_gap_conv_kernel(%arg0: i32, %arg1: memref<2x16x64xf32, #tpu.memory_space<vmem>>, %arg2: memref<64x128xf32, #tpu.memory_space<vmem>>, %arg3: memref<1x128xf32, #tpu.memory_space<vmem>>, %arg4: memref<1x128xf32, #tpu.memory_space<vmem>>, %arg5: memref<2x128xf32, #tpu.memory_space<vmem>>) attributes {dimension_semantics = [#tpu.dimension_semantics<parallel>], iteration_bounds = array<i64: 1>, scalar_prefetch = 0 : i64, scratch_operands = 0 : i64, tpu.core_type = #tpu.core_type<tc>, window_params = [{pipeline_mode = #tpu.pipeline_mode<synchronous>, transform_indices = @transform_0, window_bounds = array<i64: 2, 16, 64>}, {pipeline_mode = #tpu.pipeline_mode<synchronous>, transform_indices = @transform_1, window_bounds = array<i64: 64, 128>}, {pipeline_mode = #tpu.pipeline_mode<synchronous>, transform_indices = @transform_2, window_bounds = array<i64: 1, 128>}, {pipeline_mode = #tpu.pipeline_mode<synchronous>, transform_indices = @transform_3, window_bounds = array<i64: 1, 128>}, {pipeline_mode = #tpu.pipeline_mode<synchronous>, transform_indices = @transform_4, window_bounds = array<i64: 2, 128>}]} {
    %c0 = arith.constant 0 : index
    %c0_0 = arith.constant 0 : index
    %c0_1 = arith.constant 0 : index
    %0 = vector.load %arg1[%c0, %c0_0, %c0_1] : memref<2x16x64xf32, #tpu.memory_space<vmem>>, vector<2x16x64xf32>
    %cst = arith.constant dense<0.000000e+00> : vector<2x64xf32>
    %1 = vector.multi_reduction <add>, %0, %cst [1] : vector<2x16x64xf32> to vector<2x64xf32>
    %cst_2 = arith.constant 6.250000e-02 : f32
    %2 = vector.broadcast %cst_2 : f32 to vector<2x64xf32>
    %3 = arith.mulf %1, %2 : vector<2x64xf32>
    %c0_3 = arith.constant 0 : index
    %c0_4 = arith.constant 0 : index
    %4 = vector.load %arg2[%c0_3, %c0_4] : memref<64x128xf32, #tpu.memory_space<vmem>>, vector<64x128xf32>
    %cst_5 = arith.constant dense<0.000000e+00> : vector<2x128xf32>
    %5 = tpu.matmul %3, %4, %cst_5 {dimension_numbers = #tpu.dot_dimension_numbers<[1], [0], [0], [1], [0, 0, 1, 1], [], []>} : vector<2x64xf32>, vector<64x128xf32>, vector<2x128xf32> -> vector<2x128xf32>
    %c0_6 = arith.constant 0 : index
    %c0_7 = arith.constant 0 : index
    %6 = vector.load %arg3[%c0_6, %c0_7] : memref<1x128xf32, #tpu.memory_space<vmem>>, vector<1x128xf32>
    %7 = vector.broadcast %6 : vector<1x128xf32> to vector<2x128xf32>
    %8 = arith.mulf %5, %7 : vector<2x128xf32>
    %c0_8 = arith.constant 0 : index
    %c0_9 = arith.constant 0 : index
    %9 = vector.load %arg4[%c0_8, %c0_9] : memref<1x128xf32, #tpu.memory_space<vmem>>, vector<1x128xf32>
    %10 = vector.broadcast %9 : vector<1x128xf32> to vector<2x128xf32>
    %11 = arith.addf %8, %10 : vector<2x128xf32>
    %cst_10 = arith.constant 0.000000e+00 : f32
    %12 = vector.broadcast %cst_10 : f32 to vector<2x128xf32>
    %13 = arith.maximumf %11, %12 : vector<2x128xf32>
    %c0_11 = arith.constant 0 : index
    %c0_12 = arith.constant 0 : index
    %14 = vector.load %arg5[%c0_11, %c0_12] : memref<2x128xf32, #tpu.memory_space<vmem>>, vector<2x128xf32>
    tpu.vector_store %arg5[%c0_11, %c0_12], %13 {strides = array<i32>} : memref<2x128xf32, #tpu.memory_space<vmem>>, vector<2x128xf32>,
    return
  }
  func.func @transform_0(%arg0: i32) -> (i32, i32, i32) {
    %c0_i32 = arith.constant 0 : i32
    %c0_i32_0 = arith.constant 0 : i32
    %c0_i32_1 = arith.constant 0 : i32
    %c0_i32_2 = arith.constant 0 : i32
    return %c0_i32, %c0_i32_0, %c0_i32_1 : i32, i32, i32
  }
  func.func @transform_1(%arg0: i32) -> (i32, i32) {
    %c0_i32 = arith.constant 0 : i32
    %c0_i32_0 = arith.constant 0 : i32
    %c0_i32_1 = arith.constant 0 : i32
    return %c0_i32, %c0_i32_0 : i32, i32
  }
  func.func @transform_2(%arg0: i32) -> (i32, i32) {
    %c0_i32 = arith.constant 0 : i32
    %c0_i32_0 = arith.constant 0 : i32
    %c0_i32_1 = arith.constant 0 : i32
    return %c0_i32, %c0_i32_0 : i32, i32
  }
  func.func @transform_3(%arg0: i32) -> (i32, i32) {
    %c0_i32 = arith.constant 0 : i32
    %c0_i32_0 = arith.constant 0 : i32
    %c0_i32_1 = arith.constant 0 : i32
    return %c0_i32, %c0_i32_0 : i32, i32
  }
  func.func @transform_4(%arg0: i32) -> (i32, i32) {
    %c0_i32 = arith.constant 0 : i32
    %c0_i32_0 = arith.constant 0 : i32
    %c0_i32_1 = arith.constant 0 : i32
    return %c0_i32, %c0_i32_0 : i32, i32
  }
}

module attributes {stable_mosaic.version = 11 : i64} {
  func.func @_aspp_head_kernel(%arg0: i32, %arg1: memref<32x256xbf16, #tpu.memory_space<vmem>>, %arg2: memref<256x128xbf16, #tpu.memory_space<vmem>>, %arg3: memref<1x128xf32, #tpu.memory_space<vmem>>, %arg4: memref<1x128xf32, #tpu.memory_space<vmem>>, %arg5: memref<128x128xf32, #tpu.memory_space<vmem>>, %arg6: memref<1x128xf32, #tpu.memory_space<vmem>>, %arg7: memref<1x128xf32, #tpu.memory_space<vmem>>, %arg8: memref<32x128xf32, #tpu.memory_space<vmem>>) attributes {dimension_semantics = [#tpu.dimension_semantics<parallel>], iteration_bounds = array<i64: 1>, scalar_prefetch = 0 : i64, scratch_operands = 0 : i64, tpu.core_type = #tpu.core_type<tc>, window_params = [{transform_indices = @transform_0, window_bounds = array<i64: 32, 256>}, {pipeline_mode = #tpu.pipeline_mode<synchronous>, transform_indices = @transform_1, window_bounds = array<i64: 256, 128>}, {pipeline_mode = #tpu.pipeline_mode<synchronous>, transform_indices = @transform_2, window_bounds = array<i64: 1, 128>}, {pipeline_mode = #tpu.pipeline_mode<synchronous>, transform_indices = @transform_3, window_bounds = array<i64: 1, 128>}, {pipeline_mode = #tpu.pipeline_mode<synchronous>, transform_indices = @transform_4, window_bounds = array<i64: 128, 128>}, {pipeline_mode = #tpu.pipeline_mode<synchronous>, transform_indices = @transform_5, window_bounds = array<i64: 1, 128>}, {pipeline_mode = #tpu.pipeline_mode<synchronous>, transform_indices = @transform_6, window_bounds = array<i64: 1, 128>}, {transform_indices = @transform_7, window_bounds = array<i64: 32, 128>}]} {
    %c0 = arith.constant 0 : index
    %c0_0 = arith.constant 0 : index
    %0 = vector.load %arg1[%c0, %c0_0] : memref<32x256xbf16, #tpu.memory_space<vmem>>, vector<32x256xbf16>
    %c0_1 = arith.constant 0 : index
    %c0_2 = arith.constant 0 : index
    %1 = vector.load %arg2[%c0_1, %c0_2] : memref<256x128xbf16, #tpu.memory_space<vmem>>, vector<256x128xbf16>
    %cst = arith.constant dense<0.000000e+00> : vector<32x128xf32>
    %2 = tpu.matmul %0, %1, %cst {dimension_numbers = #tpu.dot_dimension_numbers<[1], [0], [0], [1], [0, 0, 1, 1], [], []>} : vector<32x256xbf16>, vector<256x128xbf16>, vector<32x128xf32> -> vector<32x128xf32>
    %c0_3 = arith.constant 0 : index
    %c0_4 = arith.constant 0 : index
    %3 = vector.load %arg3[%c0_3, %c0_4] : memref<1x128xf32, #tpu.memory_space<vmem>>, vector<1x128xf32>
    %4 = vector.broadcast %3 : vector<1x128xf32> to vector<32x128xf32>
    %5 = arith.mulf %2, %4 : vector<32x128xf32>
    %c0_5 = arith.constant 0 : index
    %c0_6 = arith.constant 0 : index
    %6 = vector.load %arg4[%c0_5, %c0_6] : memref<1x128xf32, #tpu.memory_space<vmem>>, vector<1x128xf32>
    %7 = vector.broadcast %6 : vector<1x128xf32> to vector<32x128xf32>
    %8 = arith.addf %5, %7 : vector<32x128xf32>
    %cst_7 = arith.constant 0.000000e+00 : f32
    %9 = vector.broadcast %cst_7 : f32 to vector<32x128xf32>
    %10 = arith.maximumf %8, %9 : vector<32x128xf32>
    %c0_8 = arith.constant 0 : index
    %c0_9 = arith.constant 0 : index
    %11 = vector.load %arg5[%c0_8, %c0_9] : memref<128x128xf32, #tpu.memory_space<vmem>>, vector<128x128xf32>
    %cst_10 = arith.constant dense<0.000000e+00> : vector<32x128xf32>
    %12 = tpu.matmul %10, %11, %cst_10 {dimension_numbers = #tpu.dot_dimension_numbers<[1], [0], [0], [1], [0, 0, 1, 1], [], []>} : vector<32x128xf32>, vector<128x128xf32>, vector<32x128xf32> -> vector<32x128xf32>
    %c0_11 = arith.constant 0 : index
    %c0_12 = arith.constant 0 : index
    %13 = vector.load %arg6[%c0_11, %c0_12] : memref<1x128xf32, #tpu.memory_space<vmem>>, vector<1x128xf32>
    %14 = vector.broadcast %13 : vector<1x128xf32> to vector<32x128xf32>
    %15 = arith.mulf %12, %14 : vector<32x128xf32>
    %c0_13 = arith.constant 0 : index
    %c0_14 = arith.constant 0 : index
    %16 = vector.load %arg7[%c0_13, %c0_14] : memref<1x128xf32, #tpu.memory_space<vmem>>, vector<1x128xf32>
    %17 = vector.broadcast %16 : vector<1x128xf32> to vector<32x128xf32>
    %18 = arith.addf %15, %17 : vector<32x128xf32>
    %c0_15 = arith.constant 0 : index
    %c0_16 = arith.constant 0 : index
    %19 = vector.load %arg8[%c0_15, %c0_16] : memref<32x128xf32, #tpu.memory_space<vmem>>, vector<32x128xf32>
    tpu.vector_store %arg8[%c0_15, %c0_16], %18 {strides = array<i32>} : memref<32x128xf32, #tpu.memory_space<vmem>>, vector<32x128xf32>,
    return
  }
  func.func @transform_0(%arg0: i32) -> (i32, i32) {
    %c0_i32 = arith.constant 0 : i32
    %c0_i32_0 = arith.constant 0 : i32
    return %arg0, %c0_i32 : i32, i32
  }
  func.func @transform_1(%arg0: i32) -> (i32, i32) {
    %c0_i32 = arith.constant 0 : i32
    %c0_i32_0 = arith.constant 0 : i32
    %c0_i32_1 = arith.constant 0 : i32
    return %c0_i32, %c0_i32_0 : i32, i32
  }
  func.func @transform_2(%arg0: i32) -> (i32, i32) {
    %c0_i32 = arith.constant 0 : i32
    %c0_i32_0 = arith.constant 0 : i32
    %c0_i32_1 = arith.constant 0 : i32
    return %c0_i32, %c0_i32_0 : i32, i32
  }
  func.func @transform_3(%arg0: i32) -> (i32, i32) {
    %c0_i32 = arith.constant 0 : i32
    %c0_i32_0 = arith.constant 0 : i32
    %c0_i32_1 = arith.constant 0 : i32
    return %c0_i32, %c0_i32_0 : i32, i32
  }
  func.func @transform_4(%arg0: i32) -> (i32, i32) {
    %c0_i32 = arith.constant 0 : i32
    %c0_i32_0 = arith.constant 0 : i32
    %c0_i32_1 = arith.constant 0 : i32
    return %c0_i32, %c0_i32_0 : i32, i32
  }
  func.func @transform_5(%arg0: i32) -> (i32, i32) {
    %c0_i32 = arith.constant 0 : i32
    %c0_i32_0 = arith.constant 0 : i32
    %c0_i32_1 = arith.constant 0 : i32
    return %c0_i32, %c0_i32_0 : i32, i32
  }
  func.func @transform_6(%arg0: i32) -> (i32, i32) {
    %c0_i32 = arith.constant 0 : i32
    %c0_i32_0 = arith.constant 0 : i32
    %c0_i32_1 = arith.constant 0 : i32
    return %c0_i32, %c0_i32_0 : i32, i32
  }
  func.func @transform_7(%arg0: i32) -> (i32, i32) {
    %c0_i32 = arith.constant 0 : i32
    %c0_i32_0 = arith.constant 0 : i32
    return %arg0, %c0_i32 : i32, i32
  }
}

module attributes {stable_mosaic.version = 11 : i64} {
  func.func @_matmul_kernel(%arg0: i32, %arg1: memref<32x4xf32, #tpu.memory_space<vmem>>, %arg2: memref<4x160xf32, #tpu.memory_space<vmem>>, %arg3: memref<32x160xf32, #tpu.memory_space<vmem>>) attributes {dimension_semantics = [#tpu.dimension_semantics<parallel>], iteration_bounds = array<i64: 1>, scalar_prefetch = 0 : i64, scratch_operands = 0 : i64, tpu.core_type = #tpu.core_type<tc>, window_params = [{pipeline_mode = #tpu.pipeline_mode<synchronous>, transform_indices = @transform_0, window_bounds = array<i64: 32, 4>}, {pipeline_mode = #tpu.pipeline_mode<synchronous>, transform_indices = @transform_1, window_bounds = array<i64: 4, 160>}, {pipeline_mode = #tpu.pipeline_mode<synchronous>, transform_indices = @transform_2, window_bounds = array<i64: 32, 160>}]} {
    %c0 = arith.constant 0 : index
    %c0_0 = arith.constant 0 : index
    %0 = vector.load %arg1[%c0, %c0_0] : memref<32x4xf32, #tpu.memory_space<vmem>>, vector<32x4xf32>
    %c0_1 = arith.constant 0 : index
    %c0_2 = arith.constant 0 : index
    %1 = vector.load %arg2[%c0_1, %c0_2] : memref<4x160xf32, #tpu.memory_space<vmem>>, vector<4x160xf32>
    %cst = arith.constant dense<0.000000e+00> : vector<32x160xf32>
    %2 = tpu.matmul %0, %1, %cst {dimension_numbers = #tpu.dot_dimension_numbers<[1], [0], [0], [1], [0, 0, 1, 1], [], []>} : vector<32x4xf32>, vector<4x160xf32>, vector<32x160xf32> -> vector<32x160xf32>
    %c0_3 = arith.constant 0 : index
    %c0_4 = arith.constant 0 : index
    %3 = vector.load %arg3[%c0_3, %c0_4] : memref<32x160xf32, #tpu.memory_space<vmem>>, vector<32x160xf32>
    tpu.vector_store %arg3[%c0_3, %c0_4], %2 {strides = array<i32>} : memref<32x160xf32, #tpu.memory_space<vmem>>, vector<32x160xf32>,
    return
  }
  func.func @transform_0(%arg0: i32) -> (i32, i32) {
    %c0_i32 = arith.constant 0 : i32
    %c0_i32_0 = arith.constant 0 : i32
    %c0_i32_1 = arith.constant 0 : i32
    return %c0_i32, %c0_i32_0 : i32, i32
  }
  func.func @transform_1(%arg0: i32) -> (i32, i32) {
    %c0_i32 = arith.constant 0 : i32
    %c0_i32_0 = arith.constant 0 : i32
    %c0_i32_1 = arith.constant 0 : i32
    return %c0_i32, %c0_i32_0 : i32, i32
  }
  func.func @transform_2(%arg0: i32) -> (i32, i32) {
    %c0_i32 = arith.constant 0 : i32
    %c0_i32_0 = arith.constant 0 : i32
    %c0_i32_1 = arith.constant 0 : i32
    return %c0_i32, %c0_i32_0 : i32, i32
  }
}

module attributes {stable_mosaic.version = 11 : i64} {
  func.func @_matmul_kernel(%arg0: i32, %arg1: memref<1280x4xf32, #tpu.memory_space<vmem>>, %arg2: memref<4x128xf32, #tpu.memory_space<vmem>>, %arg3: memref<1280x128xf32, #tpu.memory_space<vmem>>) attributes {dimension_semantics = [#tpu.dimension_semantics<parallel>], iteration_bounds = array<i64: 1>, scalar_prefetch = 0 : i64, scratch_operands = 0 : i64, tpu.core_type = #tpu.core_type<tc>, window_params = [{pipeline_mode = #tpu.pipeline_mode<synchronous>, transform_indices = @transform_0, window_bounds = array<i64: 1280, 4>}, {pipeline_mode = #tpu.pipeline_mode<synchronous>, transform_indices = @transform_1, window_bounds = array<i64: 4, 128>}, {pipeline_mode = #tpu.pipeline_mode<synchronous>, transform_indices = @transform_2, window_bounds = array<i64: 1280, 128>}]} {
    %c0 = arith.constant 0 : index
    %c0_0 = arith.constant 0 : index
    %0 = vector.load %arg1[%c0, %c0_0] : memref<1280x4xf32, #tpu.memory_space<vmem>>, vector<1280x4xf32>
    %c0_1 = arith.constant 0 : index
    %c0_2 = arith.constant 0 : index
    %1 = vector.load %arg2[%c0_1, %c0_2] : memref<4x128xf32, #tpu.memory_space<vmem>>, vector<4x128xf32>
    %cst = arith.constant dense<0.000000e+00> : vector<1280x128xf32>
    %2 = tpu.matmul %0, %1, %cst {dimension_numbers = #tpu.dot_dimension_numbers<[1], [0], [0], [1], [0, 0, 1, 1], [], []>} : vector<1280x4xf32>, vector<4x128xf32>, vector<1280x128xf32> -> vector<1280x128xf32>
    %c0_3 = arith.constant 0 : index
    %c0_4 = arith.constant 0 : index
    %3 = vector.load %arg3[%c0_3, %c0_4] : memref<1280x128xf32, #tpu.memory_space<vmem>>, vector<1280x128xf32>
    tpu.vector_store %arg3[%c0_3, %c0_4], %2 {strides = array<i32>} : memref<1280x128xf32, #tpu.memory_space<vmem>>, vector<1280x128xf32>,
    return
  }
  func.func @transform_0(%arg0: i32) -> (i32, i32) {
    %c0_i32 = arith.constant 0 : i32
    %c0_i32_0 = arith.constant 0 : i32
    %c0_i32_1 = arith.constant 0 : i32
    return %c0_i32, %c0_i32_0 : i32, i32
  }
  func.func @transform_1(%arg0: i32) -> (i32, i32) {
    %c0_i32 = arith.constant 0 : i32
    %c0_i32_0 = arith.constant 0 : i32
    %c0_i32_1 = arith.constant 0 : i32
    return %c0_i32, %c0_i32_0 : i32, i32
  }
  func.func @transform_2(%arg0: i32) -> (i32, i32) {
    %c0_i32 = arith.constant 0 : i32
    %c0_i32_0 = arith.constant 0 : i32
    %c0_i32_1 = arith.constant 0 : i32
    return %c0_i32, %c0_i32_0 : i32, i32
  }
}

</mosaic_0001>

<bundles_post_ra>
// kernel: deeplabv3_forward.28
= control target key start
LH: loop header
LB: loop body
LE: loop exit
PB: predicated region body
PF: predicated region fallthrough
CT: control target
= control target key end

     0   :  { %s1180_s15 = smov 0   ;;  %s1394_s0 = inlined_call_operand.vmem [shape: bf16[512,256], index: 0, kind: input, shape index: {}]   ;;  %s1395_s1 = inlined_call_operand.vmem [shape: bf16[256,128], index: 1, kind: input, shape index: {}]   ;;  %s1396_s2 = inlined_call_operand.vmem [shape: f32[1,128], index: 2, kind: input, shape index: {}]   ;;  %s1397_s3 = inlined_call_operand.vmem [shape: f32[1,128], index: 3, kind: input, shape index: {}]   ;;  %s1398_s4 = inlined_call_operand.vmem [shape: f32[512,128], index: 4, kind: output, shape index: {}]  }
   0x1 LB: > { %s884_s16 = sadd.s32 4294967295, %s1153_s15   ;;  %p888_p0 = scmp.ge.s32.totalorder %s1153_s15, 1  ;;  %s1153_s15 = sphi %s1180_s15, %s14_s15  }
   0x2   : > { %p164_p1 = scmp.lt.s32.totalorder %s1153_s15, 3 }
   0x4   : > { %p165_p2 = pnand %p888_p0, %p164_p1 }
   0x5   : > { %v1083_v0 = vld [vmem:[%s1395_s1 + $0x40] sm:$0xff] (!%p165_p2)   ;;  %s889_s19 = sshll.u32 (!%p165_p2), %s884_s16, 5  ;;  %v1085_v2 = vld [vmem:[%s1395_s1 + $0x48] sm:$0xff] (!%p165_p2)   ;;  %v1087_v4 = vld [vmem:[%s1395_s1 + $0x50] sm:$0xff] (!%p165_p2)  }
   0x6   : > { %168 = sbr.rel (%p165_p2) target bundleno = 319 (0x13f), region = 36  ;;  %v1084_v1 = vld [vmem:[%s1395_s1] sm:$0xff] (!%p165_p2)   ;;  %947 = vmatprep.subr.bf16.mxu0 (!%p165_p2), %v1083_v0  ;;  %1059 = vmatprep.subr.bf16.mxu1 (!%p165_p2), %v1083_v0  ;;  %v1086_v3 = vld [vmem:[%s1395_s1 + $0x8] sm:$0xff] (!%p165_p2)   ;;  %p192_p3 = scmp.lt.s32.totalorder (!%p165_p2), %s889_s19, 63  ;;  %v1088_v5 = vld [vmem:[%s1395_s1 + $0x10] sm:$0xff] (!%p165_p2)  }
   0x7   : > { %948 = vmatpush3.bf16.msra.mxu0 (!%p165_p2), %v1084_v1  ;;  %1067 = vmatpush3.bf16.msra.mxu1 (!%p165_p2), %v1084_v1  ;;  %v1089_v6 = vld [vmem:[%s1395_s1 + $0x58] sm:$0xff] (!%p165_p2)   ;;  %v1091_v8 = vld [vmem:[%s1395_s1 + $0x60] sm:$0xff] (!%p165_p2)   ;;  %v1093_v10 = vld [vmem:[%s1395_s1 + $0x68] sm:$0xff] (!%p165_p2)  }
   0x8   : > { %949 = vmatprep.subr.bf16.mxu0 (!%p165_p2), %v1085_v2  ;;  %1060 = vmatprep.subr.bf16.mxu1 (!%p165_p2), %v1085_v2  ;;  %v1090_v7 = vld [vmem:[%s1395_s1 + $0x18] sm:$0xff] (!%p165_p2)   ;;  %v1092_v9 = vld [vmem:[%s1395_s1 + $0x20] sm:$0xff] (!%p165_p2)   ;;  %v1094_v13 = vld [vmem:[%s1395_s1 + $0x28] sm:$0xff] (!%p165_p2)  }
   0x9   : > { %v1095_v14 = vld [vmem:[%s1395_s1 + $0x70] sm:$0xff] (!%p165_p2)   ;;  %v1097_v16 = vld [vmem:[%s1395_s1 + $0x78] sm:$0xff] (!%p165_p2)   ;;  %v1281_v51 = vld [vmem:[%s1396_s2] ss:$0 sm:$0xff] (!%p165_p2) }
   0xa   : > { %v1096_v15 = vld [vmem:[%s1395_s1 + $0x30] sm:$0xff] (!%p165_p2)   ;;  %v1098_v17 = vld [vmem:[%s1395_s1 + $0x38] sm:$0xff] (!%p165_p2)   ;;  %v1286_v57 = vld [vmem:[%s1397_s3] ss:$0 sm:$0xff] (!%p165_p2) }
   0xb   : > { %950 = vmatpush3.bf16.msra.mxu0 (!%p165_p2), %v1086_v3  ;;  %1068 = vmatpush3.bf16.msra.mxu1 (!%p165_p2), %v1086_v3 }
   0xc   : > { %951 = vmatprep.subr.bf16.mxu0 (!%p165_p2), %v1087_v4  ;;  %1061 = vmatprep.subr.bf16.mxu1 (!%p165_p2), %v1087_v4 }
   0xd   : > { %s1400_s19 = smov (!%p192_p3, %s889_s19), 63 }
   0xe   : > { %s946_s8 = sshll.u32 %s1400_s19, 3 }
   0xf   : > { %952 = vmatpush3.bf16.msra.mxu0 %v1088_v5  ;;  %1069 = vmatpush3.bf16.msra.mxu1 %v1088_v5  ;;  %s1223_s13 = scalar_lea.vmem %s1394_s0, %s946_s8  ;;  %s1299_s11 = scalar_lea.vmem %s1398_s4, %s946_s8 }
  0x10   : > { %953 = vmatprep.subr.bf16.mxu0 %v1089_v6  ;;  %1062 = vmatprep.subr.bf16.mxu1 %v1089_v6  ;;  %v1101_v11 = vld [vmem:[%s1223_s13 + $0x4] ss:$8 sps:$4 sm:$0xff]   ;;  %v1099_v18 = vld [vmem:[%s1223_s13] ss:$8 sps:$4 sm:$0xff]   ;;  %v1105_v20 = vld [vmem:[%s1223_s13 + $0x14] ss:$8 sps:$4 sm:$0xff]  }
  0x11   : > { %v1104_v12 = vld [vmem:[%s1223_s13 + $0x84] ss:$8 sps:$4 sm:$0xff]   ;;  %557 = vmatprep.mubr.bf16.mxu0 %v1101_v11  ;;  %v1102_v19 = vld [vmem:[%s1223_s13 + $0x80] ss:$8 sps:$4 sm:$0xff]   ;;  %v1107_v21 = vld [vmem:[%s1223_s13 + $0x94] ss:$8 sps:$4 sm:$0xff]  }
  0x12   : > { %621 = vmatprep.mubr.bf16.mxu1 %v1104_v12  ;;  %v1109_v22 = vld [vmem:[%s1223_s13 + $0x10] ss:$8 sps:$4 sm:$0xff]   ;;  %v1111_v24 = vld [vmem:[%s1223_s13 + $0x24] ss:$8 sps:$4 sm:$0xff]   ;;  %v1115_v26 = vld [vmem:[%s1223_s13 + $0x20] ss:$8 sps:$4 sm:$0xff]  }
  0x13   : > { %954 = vmatpush3.bf16.msra.mxu0 %v1090_v7  ;;  %1070 = vmatpush3.bf16.msra.mxu1 %v1090_v7  ;;  %v1110_v23 = vld [vmem:[%s1223_s13 + $0x90] ss:$8 sps:$4 sm:$0xff]   ;;  %v1113_v25 = vld [vmem:[%s1223_s13 + $0xa4] ss:$8 sps:$4 sm:$0xff]   ;;  %v1116_v27 = vld [vmem:[%s1223_s13 + $0xa0] ss:$8 sps:$4 sm:$0xff]  }
  0x14   : > { %955 = vmatprep.subr.bf16.mxu0 %v1091_v8  ;;  %1063 = vmatprep.subr.bf16.mxu1 %v1091_v8  ;;  %v1117_v28 = vld [vmem:[%s1223_s13 + $0x34] ss:$8 sps:$4 sm:$0xff]   ;;  %v1121_v30 = vld [vmem:[%s1223_s13 + $0x30] ss:$8 sps:$4 sm:$0xff]   ;;  %v1123_v32 = vld [vmem:[%s1223_s13 + $0x44] ss:$8 sps:$4 sm:$0xff]  }
  0x15   : > { %v1119_v29 = vld [vmem:[%s1223_s13 + $0xb4] ss:$8 sps:$4 sm:$0xff]   ;;  %v1122_v31 = vld [vmem:[%s1223_s13 + $0xb0] ss:$8 sps:$4 sm:$0xff]   ;;  %v1125_v33 = vld [vmem:[%s1223_s13 + $0xc4] ss:$8 sps:$4 sm:$0xff]  }
  0x16   : > { %v1127_v34 = vld [vmem:[%s1223_s13 + $0x40] ss:$8 sps:$4 sm:$0xff]   ;;  %v1129_v36 = vld [vmem:[%s1223_s13 + $0x54] ss:$8 sps:$4 sm:$0xff]   ;;  %v1133_v38 = vld [vmem:[%s1223_s13 + $0x50] ss:$8 sps:$4 sm:$0xff]  }
  0x17   : > { %956 = vmatpush3.bf16.msra.mxu0 %v1092_v9  ;;  %1071 = vmatpush3.bf16.msra.mxu1 %v1092_v9  ;;  %v1128_v35 = vld [vmem:[%s1223_s13 + $0xc0] ss:$8 sps:$4 sm:$0xff]   ;;  %v1131_v37 = vld [vmem:[%s1223_s13 + $0xd4] ss:$8 sps:$4 sm:$0xff]   ;;  %v1134_v39 = vld [vmem:[%s1223_s13 + $0xd0] ss:$8 sps:$4 sm:$0xff]  }
  0x18   : > { %957 = vmatprep.subr.bf16.mxu0 %v1093_v10  ;;  %1064 = vmatprep.subr.bf16.mxu1 %v1093_v10  ;;  %v1135_v40 = vld [vmem:[%s1223_s13 + $0x64] ss:$8 sps:$4 sm:$0xff]   ;;  %v1139_v42 = vld [vmem:[%s1223_s13 + $0x60] ss:$8 sps:$4 sm:$0xff]   ;;  %v1141_v44 = vld [vmem:[%s1223_s13 + $0x74] ss:$8 sps:$4 sm:$0xff]  }
  0x19   : > { %v1137_v41 = vld [vmem:[%s1223_s13 + $0xe4] ss:$8 sps:$4 sm:$0xff]   ;;  %v1140_v43 = vld [vmem:[%s1223_s13 + $0xe0] ss:$8 sps:$4 sm:$0xff]   ;;  %v1143_v45 = vld [vmem:[%s1223_s13 + $0xf4] ss:$8 sps:$4 sm:$0xff]  }
  0x1a   : > { %v1145_v46 = vld [vmem:[%s1223_s13 + $0x70] ss:$8 sps:$4 sm:$0xff]  }
  0x1b   : > { %958 = vmatpush3.bf16.msra.mxu0 %v1094_v13  ;;  %1072 = vmatpush3.bf16.msra.mxu1 %v1094_v13  ;;  %v1146_v47 = vld [vmem:[%s1223_s13 + $0xf0] ss:$8 sps:$4 sm:$0xff]  }
  0x1c   : > { %959 = vmatprep.subr.bf16.mxu0 %v1095_v14  ;;  %1065 = vmatprep.subr.bf16.mxu1 %v1095_v14 }
  0x1f   : > { %960 = vmatpush3.bf16.msra.mxu0 %v1096_v15  ;;  %1073 = vmatpush3.bf16.msra.mxu1 %v1096_v15 }
  0x20   : > { %961 = vmatprep.subr.bf16.mxu0 %v1097_v16  ;;  %1066 = vmatprep.subr.bf16.mxu1 %v1097_v16 }
  0x23   : > { %962 = vmatpush3.bf16.msra.mxu0 %v1098_v17  ;;  %1074 = vmatpush3.bf16.msra.mxu1 %v1098_v17 }
  0x26   : > { %558 = vmatmul.mubr.bf16.vlgmr.msra.gmra.mrb[0].mxu0 %v1099_v18  ;;  %622 = vmatmul.mubr.bf16.vlgmr.msra.gmra.mrb[0].mxu1 %v1102_v19 }
  0x27   : > { %565 = vmatprep.mubr.bf16.mxu0 %v1105_v20  ;;  %629 = vmatprep.mubr.bf16.mxu1 %v1107_v21 }
  0x2e   : > { %566 = vmatmul.mubr.bf16.gmra.mrb[4].mxu0 %v1109_v22  ;;  %630 = vmatmul.mubr.bf16.gmra.mrb[4].mxu1 %v1110_v23 }
  0x2f   : > { %573 = vmatprep.mubr.bf16.mxu0 %v1111_v24  ;;  %637 = vmatprep.mubr.bf16.mxu1 %v1113_v25 }
  0x36   : > { %574 = vmatmul.mubr.bf16.gmra.mrb[8].mxu0 %v1115_v26  ;;  %638 = vmatmul.mubr.bf16.gmra.mrb[8].mxu1 %v1116_v27 }
  0x37   : > { %581 = vmatprep.mubr.bf16.mxu0 %v1117_v28  ;;  %645 = vmatprep.mubr.bf16.mxu1 %v1119_v29 }
  0x3e   : > { %582 = vmatmul.mubr.bf16.gmra.mrb[12].mxu0 %v1121_v30  ;;  %646 = vmatmul.mubr.bf16.gmra.mrb[12].mxu1 %v1122_v31 }
  0x3f   : > { %589 = vmatprep.mubr.bf16.mxu0 %v1123_v32  ;;  %653 = vmatprep.mubr.bf16.mxu1 %v1125_v33 }
  0x46   : > { %590 = vmatmul.mubr.bf16.gmra.mrb[16].mxu0 %v1127_v34  ;;  %654 = vmatmul.mubr.bf16.gmra.mrb[16].mxu1 %v1128_v35 }
  0x47   : > { %597 = vmatprep.mubr.bf16.mxu0 %v1129_v36  ;;  %661 = vmatprep.mubr.bf16.mxu1 %v1131_v37 }
  0x4e   : > { %598 = vmatmul.mubr.bf16.gmra.mrb[20].mxu0 %v1133_v38  ;;  %662 = vmatmul.mubr.bf16.gmra.mrb[20].mxu1 %v1134_v39 }
  0x4f   : > { %605 = vmatprep.mubr.bf16.mxu0 %v1135_v40  ;;  %669 = vmatprep.mubr.bf16.mxu1 %v1137_v41 }
  0x56   : > { %606 = vmatmul.mubr.bf16.gmra.mrb[24].mxu0 %v1139_v42  ;;  %670 = vmatmul.mubr.bf16.gmra.mrb[24].mxu1 %v1140_v43 }
  0x57   : > { %613 = vmatprep.mubr.bf16.mxu0 %v1141_v44  ;;  %677 = vmatprep.mubr.bf16.mxu1 %v1143_v45 }
  0x5e   : > { %614 = vmatmul.mubr.bf16.gmra.mrb[28].mxu0 %v1145_v46  ;;  %678 = vmatmul.mubr.bf16.gmra.mrb[28].mxu1 %v1146_v47 }
  0xf9   : > { %v963_v48 = vpop.f32.mrb[0].mxu0  ;;  %v1011_v49 = vpop.f32.mrb[0].mxu1 }
  0xfa   : > { %v964_v50 = vpop.f32.mrb[1].mxu0  ;;  %v1012_v52 = vpop.f32.mrb[1].mxu1 }
  0xfb   : > { %v965_v53 = vadd.f32 %v964_v50, %v963_v48  ;;  %v1013_v54 = vadd.f32 %v1012_v52, %v1011_v49  ;;  %v966_v55 = vpop.f32.mrb[2].mxu0  ;;  %v1014_v56 = vpop.f32.mrb[2].mxu1 }
  0xfc   : > { %v967_v58 = vpop.f32.mrb[3].mxu0  ;;  %v1015_v59 = vpop.f32.mrb[3].mxu1 }
  0xfd   : > { %v693_v60 = vmul.f32 %v965_v53, %v1281_v51  ;;  %v709_v61 = vmul.f32 %v1013_v54, %v1281_v51  ;;  %v968_v62 = vadd.f32 %v967_v58, %v966_v55  ;;  %v1016_v63 = vadd.f32 %v1015_v59, %v1014_v56 }
  0xff   : > { %v732_v0 = vadd.f32 %v1286_v57, %v693_v60  ;;  %v748_v1 = vadd.f32 %v1286_v57, %v709_v61  ;;  %v694_v2 = vmul.f32 %v968_v62, %v1281_v51  ;;  %v710_v3 = vmul.f32 %v1016_v63, %v1281_v51 }
 0x101   : > { %v764_v4 = vmax.f32 %v732_v0, 0.0  ;;  %v780_v5 = vmax.f32 %v748_v1, 0.0  ;;  %v733_v6 = vadd.f32 %v1286_v57, %v694_v2  ;;  %v749_v7 = vadd.f32 %v1286_v57, %v710_v3  ;;  %v969_v8 = vpop.f32.mrb[4].mxu0  ;;  %v1017_v9 = vpop.f32.mrb[4].mxu1 }
 0x102   : > { %v970_v10 = vpop.f32.mrb[5].mxu0  ;;  %v1018_v11 = vpop.f32.mrb[5].mxu1 }
 0x103   : > { %796 = vst [vmem:[%s1299_s11] sm:$0xff] %v764_v4  ;;  %812 = vst [vmem:[%s1299_s11 + $0x80] sm:$0xff] %v780_v5  ;;  %v765_v12 = vmax.f32 %v733_v6, 0.0  ;;  %v781_v13 = vmax.f32 %v749_v7, 0.0  ;;  %v971_v14 = vadd.f32 %v970_v10, %v969_v8  ;;  %v1019_v15 = vadd.f32 %v1018_v11, %v1017_v9  ;;  %v972_v16 = vpop.f32.mrb[6].mxu0  ;;  %v1020_v17 = vpop.f32.mrb[6].mxu1 }
 0x104   : > { %v973_v18 = vpop.f32.mrb[7].mxu0  ;;  %v1021_v19 = vpop.f32.mrb[7].mxu1 }
 0x105   : > { %797 = vst [vmem:[%s1299_s11 + $0x8] sm:$0xff] %v765_v12  ;;  %813 = vst [vmem:[%s1299_s11 + $0x88] sm:$0xff] %v781_v13  ;;  %v695_v20 = vmul.f32 %v971_v14, %v1281_v51  ;;  %v711_v21 = vmul.f32 %v1019_v15, %v1281_v51  ;;  %v974_v22 = vadd.f32 %v973_v18, %v972_v16 }
 0x106   : > { %v1022_v23 = vadd.f32 %v1021_v19, %v1020_v17 }
 0x107   : > { %v734_v24 = vadd.f32 %v1286_v57, %v695_v20  ;;  %v750_v25 = vadd.f32 %v1286_v57, %v711_v21  ;;  %v696_v26 = vmul.f32 %v974_v22, %v1281_v51 }
 0x108   : > { %v712_v27 = vmul.f32 %v1022_v23, %v1281_v51 }
 0x109   : > { %v766_v28 = vmax.f32 %v734_v24, 0.0  ;;  %v782_v29 = vmax.f32 %v750_v25, 0.0  ;;  %v735_v30 = vadd.f32 %v1286_v57, %v696_v26  ;;  %v975_v32 = vpop.f32.mrb[8].mxu0  ;;  %v1023_v33 = vpop.f32.mrb[8].mxu1 }
 0x10a   : > { %v751_v31 = vadd.f32 %v1286_v57, %v712_v27  ;;  %v976_v34 = vpop.f32.mrb[9].mxu0  ;;  %v1024_v35 = vpop.f32.mrb[9].mxu1 }
 0x10b   : > { %798 = vst [vmem:[%s1299_s11 + $0x10] sm:$0xff] %v766_v28  ;;  %814 = vst [vmem:[%s1299_s11 + $0x90] sm:$0xff] %v782_v29  ;;  %v767_v36 = vmax.f32 %v735_v30, 0.0  ;;  %v977_v38 = vadd.f32 %v976_v34, %v975_v32  ;;  %v1025_v39 = vadd.f32 %v1024_v35, %v1023_v33  ;;  %v978_v40 = vpop.f32.mrb[10].mxu0  ;;  %v1026_v41 = vpop.f32.mrb[10].mxu1 }
 0x10c   : > { %v783_v37 = vmax.f32 %v751_v31, 0.0  ;;  %v979_v42 = vpop.f32.mrb[11].mxu0  ;;  %v1027_v43 = vpop.f32.mrb[11].mxu1 }
 0x10d   : > { %799 = vst [vmem:[%s1299_s11 + $0x18] sm:$0xff] %v767_v36  ;;  %v697_v44 = vmul.f32 %v977_v38, %v1281_v51  ;;  %v713_v45 = vmul.f32 %v1025_v39, %v1281_v51  ;;  %v980_v46 = vadd.f32 %v979_v42, %v978_v40  ;;  %v1028_v47 = vadd.f32 %v1027_v43, %v1026_v41 }
 0x10e   : > { %815 = vst [vmem:[%s1299_s11 + $0x98] sm:$0xff] %v783_v37 }
 0x10f   : > { %v736_v48 = vadd.f32 %v1286_v57, %v697_v44  ;;  %v752_v49 = vadd.f32 %v1286_v57, %v713_v45  ;;  %v698_v50 = vmul.f32 %v980_v46, %v1281_v51  ;;  %v714_v52 = vmul.f32 %v1028_v47, %v1281_v51 }
 0x111   : > { %v768_v53 = vmax.f32 %v736_v48, 0.0  ;;  %v784_v54 = vmax.f32 %v752_v49, 0.0  ;;  %v737_v55 = vadd.f32 %v1286_v57, %v698_v50  ;;  %v753_v56 = vadd.f32 %v1286_v57, %v714_v52  ;;  %v981_v58 = vpop.f32.mrb[12].mxu0  ;;  %v1029_v59 = vpop.f32.mrb[12].mxu1 }
 0x112   : > { %v982_v60 = vpop.f32.mrb[13].mxu0  ;;  %v1030_v61 = vpop.f32.mrb[13].mxu1 }
 0x113   : > { %800 = vst [vmem:[%s1299_s11 + $0x20] sm:$0xff] %v768_v53  ;;  %816 = vst [vmem:[%s1299_s11 + $0xa0] sm:$0xff] %v784_v54  ;;  %v769_v62 = vmax.f32 %v737_v55, 0.0  ;;  %v785_v63 = vmax.f32 %v753_v56, 0.0  ;;  %v983_v0 = vadd.f32 %v982_v60, %v981_v58  ;;  %v1031_v1 = vadd.f32 %v1030_v61, %v1029_v59  ;;  %v984_v2 = vpop.f32.mrb[14].mxu0  ;;  %v1032_v3 = vpop.f32.mrb[14].mxu1 }
 0x114   : > { %v985_v4 = vpop.f32.mrb[15].mxu0  ;;  %v1033_v5 = vpop.f32.mrb[15].mxu1 }
 0x115   : > { %801 = vst [vmem:[%s1299_s11 + $0x28] sm:$0xff] %v769_v62  ;;  %817 = vst [vmem:[%s1299_s11 + $0xa8] sm:$0xff] %v785_v63  ;;  %v699_v6 = vmul.f32 %v983_v0, %v1281_v51  ;;  %v715_v7 = vmul.f32 %v1031_v1, %v1281_v51  ;;  %v986_v8 = vadd.f32 %v985_v4, %v984_v2 }
 0x116   : > { %v1034_v9 = vadd.f32 %v1033_v5, %v1032_v3 }
 0x117   : > { %v738_v10 = vadd.f32 %v1286_v57, %v699_v6  ;;  %v754_v11 = vadd.f32 %v1286_v57, %v715_v7  ;;  %v700_v12 = vmul.f32 %v986_v8, %v1281_v51 }
 0x118   : > { %v716_v13 = vmul.f32 %v1034_v9, %v1281_v51 }
 0x119   : > { %v770_v14 = vmax.f32 %v738_v10, 0.0  ;;  %v786_v15 = vmax.f32 %v754_v11, 0.0  ;;  %v739_v16 = vadd.f32 %v1286_v57, %v700_v12  ;;  %v987_v18 = vpop.f32.mrb[16].mxu0  ;;  %v1035_v19 = vpop.f32.mrb[16].mxu1 }
 0x11a   : > { %v755_v17 = vadd.f32 %v1286_v57, %v716_v13  ;;  %v988_v20 = vpop.f32.mrb[17].mxu0  ;;  %v1036_v21 = vpop.f32.mrb[17].mxu1 }
 0x11b   : > { %802 = vst [vmem:[%s1299_s11 + $0x30] sm:$0xff] %v770_v14  ;;  %818 = vst [vmem:[%s1299_s11 + $0xb0] sm:$0xff] %v786_v15  ;;  %v771_v22 = vmax.f32 %v739_v16, 0.0  ;;  %v989_v24 = vadd.f32 %v988_v20, %v987_v18  ;;  %v1037_v25 = vadd.f32 %v1036_v21, %v1035_v19  ;;  %v990_v26 = vpop.f32.mrb[18].mxu0  ;;  %v1038_v27 = vpop.f32.mrb[18].mxu1 }
 0x11c   : > { %v787_v23 = vmax.f32 %v755_v17, 0.0  ;;  %v991_v28 = vpop.f32.mrb[19].mxu0  ;;  %v1039_v29 = vpop.f32.mrb[19].mxu1 }
 0x11d   : > { %803 = vst [vmem:[%s1299_s11 + $0x38] sm:$0xff] %v771_v22  ;;  %v701_v30 = vmul.f32 %v989_v24, %v1281_v51  ;;  %v717_v31 = vmul.f32 %v1037_v25, %v1281_v51  ;;  %v992_v32 = vadd.f32 %v991_v28, %v990_v26  ;;  %v1040_v33 = vadd.f32 %v1039_v29, %v1038_v27 }
 0x11e   : > { %819 = vst [vmem:[%s1299_s11 + $0xb8] sm:$0xff] %v787_v23 }
 0x11f   : > { %v740_v34 = vadd.f32 %v1286_v57, %v701_v30  ;;  %v756_v35 = vadd.f32 %v1286_v57, %v717_v31  ;;  %v702_v36 = vmul.f32 %v992_v32, %v1281_v51  ;;  %v718_v37 = vmul.f32 %v1040_v33, %v1281_v51 }
 0x121   : > { %v772_v38 = vmax.f32 %v740_v34, 0.0  ;;  %v788_v39 = vmax.f32 %v756_v35, 0.0  ;;  %v741_v40 = vadd.f32 %v1286_v57, %v702_v36  ;;  %v757_v41 = vadd.f32 %v1286_v57, %v718_v37  ;;  %v993_v42 = vpop.f32.mrb[20].mxu0  ;;  %v1041_v43 = vpop.f32.mrb[20].mxu1 }
 0x122   : > { %v994_v44 = vpop.f32.mrb[21].mxu0  ;;  %v1042_v45 = vpop.f32.mrb[21].mxu1 }
 0x123   : > { %804 = vst [vmem:[%s1299_s11 + $0x40] sm:$0xff] %v772_v38  ;;  %820 = vst [vmem:[%s1299_s11 + $0xc0] sm:$0xff] %v788_v39  ;;  %v773_v46 = vmax.f32 %v741_v40, 0.0  ;;  %v789_v47 = vmax.f32 %v757_v41, 0.0  ;;  %v995_v48 = vadd.f32 %v994_v44, %v993_v42  ;;  %v1043_v49 = vadd.f32 %v1042_v45, %v1041_v43  ;;  %v996_v50 = vpop.f32.mrb[22].mxu0  ;;  %v1044_v52 = vpop.f32.mrb[22].mxu1 }
 0x124   : > { %v997_v53 = vpop.f32.mrb[23].mxu0  ;;  %v1045_v54 = vpop.f32.mrb[23].mxu1 }
 0x125   : > { %805 = vst [vmem:[%s1299_s11 + $0x48] sm:$0xff] %v773_v46  ;;  %821 = vst [vmem:[%s1299_s11 + $0xc8] sm:$0xff] %v789_v47  ;;  %v703_v55 = vmul.f32 %v995_v48, %v1281_v51  ;;  %v719_v56 = vmul.f32 %v1043_v49, %v1281_v51  ;;  %v998_v58 = vadd.f32 %v997_v53, %v996_v50 }
 0x126   : > { %v1046_v59 = vadd.f32 %v1045_v54, %v1044_v52 }
 0x127   : > { %v742_v60 = vadd.f32 %v1286_v57, %v703_v55  ;;  %v758_v61 = vadd.f32 %v1286_v57, %v719_v56  ;;  %v704_v62 = vmul.f32 %v998_v58, %v1281_v51 }
 0x128   : > { %v720_v63 = vmul.f32 %v1046_v59, %v1281_v51 }
 0x129   : > { %v774_v0 = vmax.f32 %v742_v60, 0.0  ;;  %v790_v1 = vmax.f32 %v758_v61, 0.0  ;;  %v743_v2 = vadd.f32 %v1286_v57, %v704_v62  ;;  %v999_v4 = vpop.f32.mrb[24].mxu0  ;;  %v1047_v5 = vpop.f32.mrb[24].mxu1 }
 0x12a   : > { %v759_v3 = vadd.f32 %v1286_v57, %v720_v63  ;;  %v1000_v6 = vpop.f32.mrb[25].mxu0  ;;  %v1048_v7 = vpop.f32.mrb[25].mxu1 }
 0x12b   : > { %806 = vst [vmem:[%s1299_s11 + $0x50] sm:$0xff] %v774_v0  ;;  %822 = vst [vmem:[%s1299_s11 + $0xd0] sm:$0xff] %v790_v1  ;;  %v775_v8 = vmax.f32 %v743_v2, 0.0  ;;  %v1001_v10 = vadd.f32 %v1000_v6, %v999_v4  ;;  %v1049_v11 = vadd.f32 %v1048_v7, %v1047_v5  ;;  %v1002_v12 = vpop.f32.mrb[26].mxu0  ;;  %v1050_v13 = vpop.f32.mrb[26].mxu1 }
 0x12c   : > { %v791_v9 = vmax.f32 %v759_v3, 0.0  ;;  %v1003_v14 = vpop.f32.mrb[27].mxu0  ;;  %v1051_v15 = vpop.f32.mrb[27].mxu1 }
 0x12d   : > { %807 = vst [vmem:[%s1299_s11 + $0x58] sm:$0xff] %v775_v8  ;;  %v705_v16 = vmul.f32 %v1001_v10, %v1281_v51  ;;  %v721_v17 = vmul.f32 %v1049_v11, %v1281_v51  ;;  %v1004_v18 = vadd.f32 %v1003_v14, %v1002_v12  ;;  %v1052_v19 = vadd.f32 %v1051_v15, %v1050_v13 }
 0x12e   : > { %823 = vst [vmem:[%s1299_s11 + $0xd8] sm:$0xff] %v791_v9 }
 0x12f   : > { %v744_v20 = vadd.f32 %v1286_v57, %v705_v16  ;;  %v760_v21 = vadd.f32 %v1286_v57, %v721_v17  ;;  %v706_v22 = vmul.f32 %v1004_v18, %v1281_v51  ;;  %v722_v23 = vmul.f32 %v1052_v19, %v1281_v51 }
 0x131   : > { %v776_v24 = vmax.f32 %v744_v20, 0.0  ;;  %v792_v25 = vmax.f32 %v760_v21, 0.0  ;;  %v745_v26 = vadd.f32 %v1286_v57, %v706_v22  ;;  %v761_v27 = vadd.f32 %v1286_v57, %v722_v23  ;;  %v1005_v28 = vpop.f32.mrb[28].mxu0  ;;  %v1053_v29 = vpop.f32.mrb[28].mxu1 }
 0x132   : > { %v1006_v30 = vpop.f32.mrb[29].mxu0  ;;  %v1054_v31 = vpop.f32.mrb[29].mxu1 }
 0x133   : > { %808 = vst [vmem:[%s1299_s11 + $0x60] sm:$0xff] %v776_v24  ;;  %824 = vst [vmem:[%s1299_s11 + $0xe0] sm:$0xff] %v792_v25  ;;  %v777_v32 = vmax.f32 %v745_v26, 0.0  ;;  %v793_v33 = vmax.f32 %v761_v27, 0.0  ;;  %v1007_v34 = vadd.f32 %v1006_v30, %v1005_v28  ;;  %v1055_v35 = vadd.f32 %v1054_v31, %v1053_v29  ;;  %v1008_v36 = vpop.f32.mrb[30].mxu0  ;;  %v1056_v37 = vpop.f32.mrb[30].mxu1 }
 0x134   : > { %v1009_v38 = vpop.f32.mrb[31].mxu0  ;;  %v1057_v39 = vpop.f32.mrb[31].mxu1 }
 0x135   : > { %809 = vst [vmem:[%s1299_s11 + $0x68] sm:$0xff] %v777_v32  ;;  %825 = vst [vmem:[%s1299_s11 + $0xe8] sm:$0xff] %v793_v33  ;;  %v707_v40 = vmul.f32 %v1007_v34, %v1281_v51  ;;  %v723_v41 = vmul.f32 %v1055_v35, %v1281_v51  ;;  %v1010_v42 = vadd.f32 %v1009_v38, %v1008_v36 }
 0x136   : > { %v1058_v43 = vadd.f32 %v1057_v39, %v1056_v37 }
 0x137   : > { %v746_v44 = vadd.f32 %v1286_v57, %v707_v40  ;;  %v762_v45 = vadd.f32 %v1286_v57, %v723_v41  ;;  %v708_v46 = vmul.f32 %v1010_v42, %v1281_v51 }
 0x138   : > { %v724_v47 = vmul.f32 %v1058_v43, %v1281_v51 }
 0x139   : > { %v778_v48 = vmax.f32 %v746_v44, 0.0  ;;  %v794_v49 = vmax.f32 %v762_v45, 0.0  ;;  %v747_v50 = vadd.f32 %v1286_v57, %v708_v46 }
 0x13a   : > { %v763_v52 = vadd.f32 %v1286_v57, %v724_v47 }
 0x13b   : > { %810 = vst [vmem:[%s1299_s11 + $0x70] sm:$0xff] %v778_v48  ;;  %826 = vst [vmem:[%s1299_s11 + $0xf0] sm:$0xff] %v794_v49  ;;  %v779_v53 = vmax.f32 %v747_v50, 0.0 }
 0x13c   : > { %v795_v54 = vmax.f32 %v763_v52, 0.0 }
 0x13d   : > { %811 = vst [vmem:[%s1299_s11 + $0x78] sm:$0xff] %v779_v53 }
 0x13e   : > { %827 = vst [vmem:[%s1299_s11 + $0xf8] sm:$0xff] %v795_v54 }
 0x13f PF: > { %s14_s15 = sadd.s32 1, %s1153_s15  }
 0x140   : > { %p11_p4 = scmp.ge.s32.totalorder %s14_s15, 4  }
 0x142   :  { %13 = sbr.rel (!%p11_p4) target bundleno = 1 (0x1), region = 66 }

// kernel: deeplabv3_forward.29
= control target key start
LH: loop header
LB: loop body
LE: loop exit
PB: predicated region body
PF: predicated region fallthrough
CT: control target
= control target key end

     0   :  { %s568_s1 = inlined_call_operand.vmem [shape: bf16[128,128], index: 1, kind: input, shape index: {}]   ;;  %s569_s0 = inlined_call_operand.vmem [shape: bf16[128,128], index: 0, kind: input, shape index: {}]   ;;  %s570_s2 = inlined_call_operand.vmem [shape: f32[1,128], index: 2, kind: input, shape index: {}]   ;;  %s571_s3 = inlined_call_operand.vmem [shape: f32[1,128], index: 3, kind: input, shape index: {}]   ;;  %s572_s4 = inlined_call_operand.vmem [shape: f32[128,128], index: 4, kind: output, shape index: {}]  }
   0x1   :  { %v407_v0 = vld [vmem:[%s568_s1] sm:$0xff]   ;;  %v408_v1 = vld [vmem:[%s568_s1 + $0x8] sm:$0xff]   ;;  %v409_v2 = vld [vmem:[%s568_s1 + $0x10] sm:$0xff]  }
   0x2   :  { %359 = vmatprep.subr.bf16.mxu0 %v407_v0  ;;  %391 = vmatprep.subr.bf16.mxu1 %v407_v0  ;;  %v410_v3 = vld [vmem:[%s568_s1 + $0x18] sm:$0xff]   ;;  %v415_v4 = vld [vmem:[%s569_s0] sm:$0xff]   ;;  %v412_v7 = vld [vmem:[%s568_s1 + $0x28] sm:$0xff]  }
   0x3   :  { %360 = vmatpush3.bf16.msra.mxu0 %v407_v0  ;;  %399 = vmatpush3.bf16.msra.mxu1 %v407_v0  ;;  %v416_v5 = vld [vmem:[%s569_s0 + $0x20] sm:$0xff]   ;;  %v413_v8 = vld [vmem:[%s568_s1 + $0x30] sm:$0xff]   ;;  %v414_v9 = vld [vmem:[%s568_s1 + $0x38] sm:$0xff]  }
   0x4   :  { %361 = vmatprep.subr.bf16.mxu0 %v408_v1  ;;  %392 = vmatprep.subr.bf16.mxu1 %v408_v1  ;;  %v411_v6 = vld [vmem:[%s568_s1 + $0x20] sm:$0xff]   ;;  %v417_v10 = vld [vmem:[%s569_s0 + $0x8] sm:$0xff]   ;;  %v419_v12 = vld [vmem:[%s569_s0 + $0x10] sm:$0xff]  }
   0x5   :  { %375 = vmatprep.mubr.bf16.mxu0 %v415_v4  ;;  %383 = vmatprep.mubr.bf16.mxu1 %v416_v5  ;;  %v418_v11 = vld [vmem:[%s569_s0 + $0x28] sm:$0xff]   ;;  %v420_v13 = vld [vmem:[%s569_s0 + $0x30] sm:$0xff]   ;;  %v421_v14 = vld [vmem:[%s569_s0 + $0x18] sm:$0xff]  }
   0x6   :  { %v422_v15 = vld [vmem:[%s569_s0 + $0x38] sm:$0xff]   ;;  %v341_v16 = vld [vmem:[%s570_s2] ss:$0 sm:$0xff] }
   0x7   :  { %362 = vmatpush3.bf16.msra.mxu0 %v408_v1  ;;  %400 = vmatpush3.bf16.msra.mxu1 %v408_v1  ;;  %v502_v18 = vld [vmem:[%s571_s3] ss:$0 sm:$0xff] }
   0x8   :  { %363 = vmatprep.subr.bf16.mxu0 %v409_v2  ;;  %393 = vmatprep.subr.bf16.mxu1 %v409_v2 }
   0xb   :  { %364 = vmatpush3.bf16.msra.mxu0 %v409_v2  ;;  %401 = vmatpush3.bf16.msra.mxu1 %v409_v2 }
   0xc   :  { %365 = vmatprep.subr.bf16.mxu0 %v410_v3  ;;  %394 = vmatprep.subr.bf16.mxu1 %v410_v3 }
   0xf   :  { %366 = vmatpush3.bf16.msra.mxu0 %v410_v3  ;;  %402 = vmatpush3.bf16.msra.mxu1 %v410_v3 }
  0x10   :  { %367 = vmatprep.subr.bf16.mxu0 %v411_v6  ;;  %395 = vmatprep.subr.bf16.mxu1 %v411_v6 }
  0x13   :  { %368 = vmatpush3.bf16.msra.mxu0 %v411_v6  ;;  %403 = vmatpush3.bf16.msra.mxu1 %v411_v6 }
  0x14   :  { %369 = vmatprep.subr.bf16.mxu0 %v412_v7  ;;  %396 = vmatprep.subr.bf16.mxu1 %v412_v7 }
  0x17   :  { %370 = vmatpush3.bf16.msra.mxu0 %v412_v7  ;;  %404 = vmatpush3.bf16.msra.mxu1 %v412_v7 }
  0x18   :  { %371 = vmatprep.subr.bf16.mxu0 %v413_v8  ;;  %397 = vmatprep.subr.bf16.mxu1 %v413_v8 }
  0x1b   :  { %372 = vmatpush3.bf16.msra.mxu0 %v413_v8  ;;  %405 = vmatpush3.bf16.msra.mxu1 %v413_v8 }
  0x1c   :  { %373 = vmatprep.subr.bf16.mxu0 %v414_v9  ;;  %398 = vmatprep.subr.bf16.mxu1 %v414_v9 }
  0x1f   :  { %374 = vmatpush3.bf16.msra.mxu0 %v414_v9  ;;  %406 = vmatpush3.bf16.msra.mxu1 %v414_v9 }
  0x22   :  { %376 = vmatmul.mubr.bf16.vlgmr.msra.gmra.mrb[0].mxu0 %v417_v10  ;;  %384 = vmatmul.mubr.bf16.vlgmr.msra.gmra.mrb[0].mxu1 %v418_v11 }
  0x23   :  { %379 = vmatprep.mubr.bf16.mxu0 %v419_v12  ;;  %387 = vmatprep.mubr.bf16.mxu1 %v420_v13 }
  0x2a   :  { %380 = vmatmul.mubr.bf16.gmra.mrb[4].mxu0 %v421_v14  ;;  %388 = vmatmul.mubr.bf16.gmra.mrb[4].mxu1 %v422_v15 }
  0xf5   :  { %v377_v17 = vpop.f32.mrb[0].mxu0  ;;  %v385_v19 = vpop.f32.mrb[0].mxu1 }
  0xf6   :  { %v252_v20 = vmul.f32 %v377_v17, %v341_v16  ;;  %v260_v21 = vmul.f32 %v385_v19, %v341_v16  ;;  %v180_v22 = vpop.f32.mrb[1].mxu0  ;;  %v212_v23 = vpop.f32.mrb[1].mxu1 }
  0xf7   :  { %v250_v24 = vmul.f32 %v341_v16, %v180_v22  ;;  %v258_v25 = vmul.f32 %v341_v16, %v212_v23  ;;  %v378_v26 = vpop.f32.mrb[2].mxu0  ;;  %v386_v27 = vpop.f32.mrb[2].mxu1 }
  0xf8   :  { %v275_v28 = vadd.f32 %v502_v18, %v252_v20  ;;  %v283_v29 = vadd.f32 %v502_v18, %v260_v21  ;;  %v253_v30 = vmul.f32 %v378_v26, %v341_v16  ;;  %v261_v31 = vmul.f32 %v386_v27, %v341_v16  ;;  %v183_v32 = vpop.f32.mrb[3].mxu0  ;;  %v215_v33 = vpop.f32.mrb[3].mxu1 }
  0xf9   :  { %v273_v34 = vadd.f32 %v502_v18, %v250_v24  ;;  %v281_v35 = vadd.f32 %v502_v18, %v258_v25  ;;  %v251_v36 = vmul.f32 %v341_v16, %v183_v32  ;;  %v259_v37 = vmul.f32 %v341_v16, %v215_v33 }
  0xfa   :  { %v291_v38 = vmax.f32 %v275_v28, 0.0  ;;  %v299_v39 = vmax.f32 %v283_v29, 0.0  ;;  %v276_v40 = vadd.f32 %v502_v18, %v253_v30  ;;  %v284_v41 = vadd.f32 %v502_v18, %v261_v31 }
  0xfb   :  { %v289_v42 = vmax.f32 %v273_v34, 0.0  ;;  %v297_v43 = vmax.f32 %v281_v35, 0.0  ;;  %v274_v44 = vadd.f32 %v502_v18, %v251_v36  ;;  %v282_v45 = vadd.f32 %v502_v18, %v259_v37 }
  0xfc   :  { %307 = vst [vmem:[%s572_s4 + $0x10] sm:$0xff] %v291_v38  ;;  %315 = vst [vmem:[%s572_s4 + $0x50] sm:$0xff] %v299_v39  ;;  %v292_v46 = vmax.f32 %v276_v40, 0.0  ;;  %v300_v47 = vmax.f32 %v284_v41, 0.0 }
  0xfd   :  { %305 = vst [vmem:[%s572_s4] sm:$0xff] %v289_v42  ;;  %313 = vst [vmem:[%s572_s4 + $0x40] sm:$0xff] %v297_v43  ;;  %v290_v48 = vmax.f32 %v274_v44, 0.0  ;;  %v298_v49 = vmax.f32 %v282_v45, 0.0  ;;  %v381_v50 = vpop.f32.mrb[4].mxu0  ;;  %v389_v51 = vpop.f32.mrb[4].mxu1 }
  0xfe   :  { %308 = vst [vmem:[%s572_s4 + $0x18] sm:$0xff] %v292_v46  ;;  %316 = vst [vmem:[%s572_s4 + $0x58] sm:$0xff] %v300_v47  ;;  %v256_v52 = vmul.f32 %v381_v50, %v341_v16  ;;  %v264_v53 = vmul.f32 %v389_v51, %v341_v16  ;;  %v196_v54 = vpop.f32.mrb[5].mxu0  ;;  %v228_v55 = vpop.f32.mrb[5].mxu1 }
  0xff   :  { %306 = vst [vmem:[%s572_s4 + $0x8] sm:$0xff] %v290_v48  ;;  %314 = vst [vmem:[%s572_s4 + $0x48] sm:$0xff] %v298_v49  ;;  %v254_v56 = vmul.f32 %v341_v16, %v196_v54  ;;  %v262_v57 = vmul.f32 %v341_v16, %v228_v55  ;;  %v382_v58 = vpop.f32.mrb[6].mxu0  ;;  %v390_v59 = vpop.f32.mrb[6].mxu1 }
 0x100   :  { %v279_v60 = vadd.f32 %v502_v18, %v256_v52  ;;  %v287_v61 = vadd.f32 %v502_v18, %v264_v53  ;;  %v257_v62 = vmul.f32 %v382_v58, %v341_v16  ;;  %v265_v63 = vmul.f32 %v390_v59, %v341_v16  ;;  %v199_v0 = vpop.f32.mrb[7].mxu0  ;;  %v231_v1 = vpop.f32.mrb[7].mxu1 }
 0x101   :  { %v277_v2 = vadd.f32 %v502_v18, %v254_v56  ;;  %v285_v3 = vadd.f32 %v502_v18, %v262_v57  ;;  %v255_v4 = vmul.f32 %v341_v16, %v199_v0  ;;  %v263_v5 = vmul.f32 %v341_v16, %v231_v1 }
 0x102   :  { %v295_v6 = vmax.f32 %v279_v60, 0.0  ;;  %v303_v7 = vmax.f32 %v287_v61, 0.0  ;;  %v280_v8 = vadd.f32 %v502_v18, %v257_v62  ;;  %v288_v9 = vadd.f32 %v502_v18, %v265_v63 }
 0x103   :  { %v293_v10 = vmax.f32 %v277_v2, 0.0  ;;  %v301_v11 = vmax.f32 %v285_v3, 0.0  ;;  %v278_v12 = vadd.f32 %v502_v18, %v255_v4  ;;  %v286_v13 = vadd.f32 %v502_v18, %v263_v5 }
 0x104   :  { %311 = vst [vmem:[%s572_s4 + $0x30] sm:$0xff] %v295_v6  ;;  %319 = vst [vmem:[%s572_s4 + $0x70] sm:$0xff] %v303_v7  ;;  %v296_v14 = vmax.f32 %v280_v8, 0.0  ;;  %v304_v15 = vmax.f32 %v288_v9, 0.0 }
 0x105   :  { %309 = vst [vmem:[%s572_s4 + $0x20] sm:$0xff] %v293_v10  ;;  %317 = vst [vmem:[%s572_s4 + $0x60] sm:$0xff] %v301_v11  ;;  %v294_v16 = vmax.f32 %v278_v12, 0.0  ;;  %v302_v17 = vmax.f32 %v286_v13, 0.0 }
 0x106   :  { %312 = vst [vmem:[%s572_s4 + $0x38] sm:$0xff] %v296_v14  ;;  %320 = vst [vmem:[%s572_s4 + $0x78] sm:$0xff] %v304_v15 }
 0x107   :  { %310 = vst [vmem:[%s572_s4 + $0x28] sm:$0xff] %v294_v16  ;;  %318 = vst [vmem:[%s572_s4 + $0x68] sm:$0xff] %v302_v17 }

// kernel: deeplabv3_forward.30
= control target key start
LH: loop header
LB: loop body
LE: loop exit
PB: predicated region body
PF: predicated region fallthrough
CT: control target
= control target key end

     0   :  { %s674_s1 = inlined_call_operand.vmem [shape: bf16[128,128], index: 1, kind: input, shape index: {}]   ;;  %s675_s0 = inlined_call_operand.vmem [shape: bf16[128,128], index: 0, kind: input, shape index: {}]   ;;  %s676_s2 = inlined_call_operand.vmem [shape: f32[1,128], index: 2, kind: input, shape index: {}]   ;;  %s677_s3 = inlined_call_operand.vmem [shape: f32[1,128], index: 3, kind: input, shape index: {}]   ;;  %s678_s4 = inlined_call_operand.vmem [shape: f32[128,128], index: 4, kind: input, shape index: {}]   ;;  %s679_s5 = inlined_call_operand.vmem [shape: f32[128,128], index: 5, kind: output, shape index: {}]  }
   0x1   :  { %v442_v0 = vld [vmem:[%s674_s1] sm:$0xff]   ;;  %v443_v1 = vld [vmem:[%s674_s1 + $0x8] sm:$0xff]   ;;  %v444_v2 = vld [vmem:[%s674_s1 + $0x10] sm:$0xff]  }
   0x2   :  { %394 = vmatprep.subr.bf16.mxu0 %v442_v0  ;;  %426 = vmatprep.subr.bf16.mxu1 %v442_v0  ;;  %v445_v3 = vld [vmem:[%s674_s1 + $0x18] sm:$0xff]   ;;  %v450_v4 = vld [vmem:[%s675_s0] sm:$0xff]   ;;  %v447_v7 = vld [vmem:[%s674_s1 + $0x28] sm:$0xff]  }
   0x3   :  { %395 = vmatpush3.bf16.msra.mxu0 %v442_v0  ;;  %434 = vmatpush3.bf16.msra.mxu1 %v442_v0  ;;  %v451_v5 = vld [vmem:[%s675_s0 + $0x20] sm:$0xff]   ;;  %v448_v8 = vld [vmem:[%s674_s1 + $0x30] sm:$0xff]   ;;  %v449_v9 = vld [vmem:[%s674_s1 + $0x38] sm:$0xff]  }
   0x4   :  { %396 = vmatprep.subr.bf16.mxu0 %v443_v1  ;;  %427 = vmatprep.subr.bf16.mxu1 %v443_v1  ;;  %v446_v6 = vld [vmem:[%s674_s1 + $0x20] sm:$0xff]   ;;  %v452_v10 = vld [vmem:[%s675_s0 + $0x8] sm:$0xff]   ;;  %v454_v12 = vld [vmem:[%s675_s0 + $0x10] sm:$0xff]  }
   0x5   :  { %410 = vmatprep.mubr.bf16.mxu0 %v450_v4  ;;  %418 = vmatprep.mubr.bf16.mxu1 %v451_v5  ;;  %v453_v11 = vld [vmem:[%s675_s0 + $0x28] sm:$0xff]   ;;  %v455_v13 = vld [vmem:[%s675_s0 + $0x30] sm:$0xff]   ;;  %v456_v14 = vld [vmem:[%s675_s0 + $0x18] sm:$0xff]  }
   0x6   :  { %v457_v15 = vld [vmem:[%s675_s0 + $0x38] sm:$0xff]   ;;  %v539_v16 = vld [vmem:[%s676_s2] ss:$0 sm:$0xff]  ;;  %v294_v24 = vld [vmem:[%s678_s4 + $0x10] sm:$0xff] }
   0x7   :  { %397 = vmatpush3.bf16.msra.mxu0 %v443_v1  ;;  %435 = vmatpush3.bf16.msra.mxu1 %v443_v1  ;;  %v544_v18 = vld [vmem:[%s677_s3] ss:$0 sm:$0xff]  ;;  %v302_v25 = vld [vmem:[%s678_s4 + $0x50] sm:$0xff]  ;;  %v295_v40 = vld [vmem:[%s678_s4 + $0x18] sm:$0xff] }
   0x8   :  { %398 = vmatprep.subr.bf16.mxu0 %v444_v2  ;;  %428 = vmatprep.subr.bf16.mxu1 %v444_v2  ;;  %v292_v32 = vld [vmem:[%s678_s4] sm:$0xff]  ;;  %v303_v41 = vld [vmem:[%s678_s4 + $0x58] sm:$0xff]  ;;  %v293_v48 = vld [vmem:[%s678_s4 + $0x8] sm:$0xff] }
   0x9   :  { %v300_v33 = vld [vmem:[%s678_s4 + $0x40] sm:$0xff]  ;;  %v301_v49 = vld [vmem:[%s678_s4 + $0x48] sm:$0xff] }
   0xb   :  { %399 = vmatpush3.bf16.msra.mxu0 %v444_v2  ;;  %436 = vmatpush3.bf16.msra.mxu1 %v444_v2 }
   0xc   :  { %400 = vmatprep.subr.bf16.mxu0 %v445_v3  ;;  %429 = vmatprep.subr.bf16.mxu1 %v445_v3 }
   0xf   :  { %401 = vmatpush3.bf16.msra.mxu0 %v445_v3  ;;  %437 = vmatpush3.bf16.msra.mxu1 %v445_v3 }
  0x10   :  { %402 = vmatprep.subr.bf16.mxu0 %v446_v6  ;;  %430 = vmatprep.subr.bf16.mxu1 %v446_v6 }
  0x13   :  { %403 = vmatpush3.bf16.msra.mxu0 %v446_v6  ;;  %438 = vmatpush3.bf16.msra.mxu1 %v446_v6 }
  0x14   :  { %404 = vmatprep.subr.bf16.mxu0 %v447_v7  ;;  %431 = vmatprep.subr.bf16.mxu1 %v447_v7 }
  0x17   :  { %405 = vmatpush3.bf16.msra.mxu0 %v447_v7  ;;  %439 = vmatpush3.bf16.msra.mxu1 %v447_v7 }
  0x18   :  { %406 = vmatprep.subr.bf16.mxu0 %v448_v8  ;;  %432 = vmatprep.subr.bf16.mxu1 %v448_v8 }
  0x1b   :  { %407 = vmatpush3.bf16.msra.mxu0 %v448_v8  ;;  %440 = vmatpush3.bf16.msra.mxu1 %v448_v8  ;;  %v298_v8 = vld [vmem:[%s678_s4 + $0x30] sm:$0xff] }
  0x1c   :  { %408 = vmatprep.subr.bf16.mxu0 %v449_v9  ;;  %433 = vmatprep.subr.bf16.mxu1 %v449_v9 }
  0x1f   :  { %409 = vmatpush3.bf16.msra.mxu0 %v449_v9  ;;  %441 = vmatpush3.bf16.msra.mxu1 %v449_v9  ;;  %v306_v9 = vld [vmem:[%s678_s4 + $0x70] sm:$0xff] }
  0x22   :  { %411 = vmatmul.mubr.bf16.vlgmr.msra.gmra.mrb[0].mxu0 %v452_v10  ;;  %419 = vmatmul.mubr.bf16.vlgmr.msra.gmra.mrb[0].mxu1 %v453_v11 }
  0x23   :  { %414 = vmatprep.mubr.bf16.mxu0 %v454_v12  ;;  %422 = vmatprep.mubr.bf16.mxu1 %v455_v13 }
  0x2a   :  { %415 = vmatmul.mubr.bf16.gmra.mrb[4].mxu0 %v456_v14  ;;  %423 = vmatmul.mubr.bf16.gmra.mrb[4].mxu1 %v457_v15 }
  0xf5   :  { %v412_v17 = vpop.f32.mrb[0].mxu0  ;;  %v420_v19 = vpop.f32.mrb[0].mxu1 }
  0xf6   :  { %v255_v20 = vmul.f32 %v412_v17, %v539_v16  ;;  %v263_v21 = vmul.f32 %v420_v19, %v539_v16  ;;  %v183_v22 = vpop.f32.mrb[1].mxu0  ;;  %v215_v23 = vpop.f32.mrb[1].mxu1  ;;  %v296_v17 = vld [vmem:[%s678_s4 + $0x20] sm:$0xff] }
  0xf7   :  { %v253_v26 = vmul.f32 %v539_v16, %v183_v22  ;;  %v261_v27 = vmul.f32 %v539_v16, %v215_v23  ;;  %v413_v28 = vpop.f32.mrb[2].mxu0  ;;  %v421_v29 = vpop.f32.mrb[2].mxu1  ;;  %v304_v19 = vld [vmem:[%s678_s4 + $0x60] sm:$0xff] }
  0xf8   :  { %v278_v30 = vadd.f32 %v544_v18, %v255_v20  ;;  %v286_v31 = vadd.f32 %v544_v18, %v263_v21  ;;  %v256_v34 = vmul.f32 %v413_v28, %v539_v16  ;;  %v264_v35 = vmul.f32 %v421_v29, %v539_v16  ;;  %v186_v36 = vpop.f32.mrb[3].mxu0  ;;  %v218_v37 = vpop.f32.mrb[3].mxu1 }
  0xf9   :  { %v276_v38 = vadd.f32 %v544_v18, %v253_v26  ;;  %v284_v39 = vadd.f32 %v544_v18, %v261_v27  ;;  %v254_v42 = vmul.f32 %v539_v16, %v186_v36  ;;  %v262_v43 = vmul.f32 %v539_v16, %v218_v37  ;;  %v299_v26 = vld [vmem:[%s678_s4 + $0x38] sm:$0xff] }
  0xfa   :  { %v310_v44 = vadd.f32 %v294_v24, %v278_v30  ;;  %v318_v45 = vadd.f32 %v302_v25, %v286_v31  ;;  %v279_v46 = vadd.f32 %v544_v18, %v256_v34  ;;  %v287_v47 = vadd.f32 %v544_v18, %v264_v35  ;;  %v307_v27 = vld [vmem:[%s678_s4 + $0x78] sm:$0xff]  ;;  %v297_v34 = vld [vmem:[%s678_s4 + $0x28] sm:$0xff] }
  0xfb   :  { %v308_v50 = vadd.f32 %v292_v32, %v276_v38  ;;  %v316_v51 = vadd.f32 %v300_v33, %v284_v39  ;;  %v277_v52 = vadd.f32 %v544_v18, %v254_v42  ;;  %v285_v53 = vadd.f32 %v544_v18, %v262_v43  ;;  %v305_v35 = vld [vmem:[%s678_s4 + $0x68] sm:$0xff] }
  0xfc   :  { %v326_v54 = vmax.f32 %v310_v44, 0.0  ;;  %v334_v55 = vmax.f32 %v318_v45, 0.0  ;;  %v311_v56 = vadd.f32 %v295_v40, %v279_v46  ;;  %v319_v57 = vadd.f32 %v303_v41, %v287_v47 }
  0xfd   :  { %v324_v58 = vmax.f32 %v308_v50, 0.0  ;;  %v332_v59 = vmax.f32 %v316_v51, 0.0  ;;  %v309_v60 = vadd.f32 %v293_v48, %v277_v52  ;;  %v317_v61 = vadd.f32 %v301_v49, %v285_v53  ;;  %v416_v62 = vpop.f32.mrb[4].mxu0  ;;  %v424_v63 = vpop.f32.mrb[4].mxu1 }
  0xfe   :  { %342 = vst [vmem:[%s679_s5 + $0x10] sm:$0xff] %v326_v54  ;;  %350 = vst [vmem:[%s679_s5 + $0x50] sm:$0xff] %v334_v55  ;;  %v327_v0 = vmax.f32 %v311_v56, 0.0  ;;  %v335_v1 = vmax.f32 %v319_v57, 0.0  ;;  %v259_v2 = vmul.f32 %v416_v62, %v539_v16  ;;  %v267_v3 = vmul.f32 %v424_v63, %v539_v16  ;;  %v199_v4 = vpop.f32.mrb[5].mxu0  ;;  %v231_v5 = vpop.f32.mrb[5].mxu1 }
  0xff   :  { %340 = vst [vmem:[%s679_s5] sm:$0xff] %v324_v58  ;;  %348 = vst [vmem:[%s679_s5 + $0x40] sm:$0xff] %v332_v59  ;;  %v325_v6 = vmax.f32 %v309_v60, 0.0  ;;  %v333_v7 = vmax.f32 %v317_v61, 0.0  ;;  %v257_v10 = vmul.f32 %v539_v16, %v199_v4  ;;  %v265_v11 = vmul.f32 %v539_v16, %v231_v5  ;;  %v417_v12 = vpop.f32.mrb[6].mxu0  ;;  %v425_v13 = vpop.f32.mrb[6].mxu1 }
 0x100   :  { %343 = vst [vmem:[%s679_s5 + $0x18] sm:$0xff] %v327_v0  ;;  %351 = vst [vmem:[%s679_s5 + $0x58] sm:$0xff] %v335_v1  ;;  %v282_v14 = vadd.f32 %v544_v18, %v259_v2  ;;  %v290_v15 = vadd.f32 %v544_v18, %v267_v3  ;;  %v260_v20 = vmul.f32 %v417_v12, %v539_v16  ;;  %v202_v22 = vpop.f32.mrb[7].mxu0  ;;  %v234_v23 = vpop.f32.mrb[7].mxu1 }
 0x101   :  { %v268_v21 = vmul.f32 %v425_v13, %v539_v16  ;;  %341 = vst [vmem:[%s679_s5 + $0x8] sm:$0xff] %v325_v6  ;;  %349 = vst [vmem:[%s679_s5 + $0x48] sm:$0xff] %v333_v7  ;;  %v280_v24 = vadd.f32 %v544_v18, %v257_v10  ;;  %v288_v25 = vadd.f32 %v544_v18, %v265_v11 }
 0x102   :  { %v258_v28 = vmul.f32 %v539_v16, %v202_v22  ;;  %v266_v29 = vmul.f32 %v539_v16, %v234_v23  ;;  %v314_v30 = vadd.f32 %v298_v8, %v282_v14  ;;  %v322_v31 = vadd.f32 %v306_v9, %v290_v15 }
 0x103   :  { %v283_v32 = vadd.f32 %v544_v18, %v260_v20  ;;  %v291_v33 = vadd.f32 %v544_v18, %v268_v21  ;;  %v312_v36 = vadd.f32 %v296_v17, %v280_v24  ;;  %v320_v37 = vadd.f32 %v304_v19, %v288_v25 }
 0x104   :  { %v281_v38 = vadd.f32 %v544_v18, %v258_v28  ;;  %v289_v16 = vadd.f32 %v544_v18, %v266_v29  ;;  %v330_v39 = vmax.f32 %v314_v30, 0.0  ;;  %v338_v40 = vmax.f32 %v322_v31, 0.0 }
 0x105   :  { %v315_v41 = vadd.f32 %v299_v26, %v283_v32  ;;  %v323_v42 = vadd.f32 %v307_v27, %v291_v33  ;;  %v328_v43 = vmax.f32 %v312_v36, 0.0  ;;  %v336_v44 = vmax.f32 %v320_v37, 0.0 }
 0x106   :  { %v313_v45 = vadd.f32 %v297_v34, %v281_v38  ;;  %v321_v46 = vadd.f32 %v305_v35, %v289_v16  ;;  %346 = vst [vmem:[%s679_s5 + $0x30] sm:$0xff] %v330_v39  ;;  %354 = vst [vmem:[%s679_s5 + $0x70] sm:$0xff] %v338_v40 }
 0x107   :  { %v331_v47 = vmax.f32 %v315_v41, 0.0  ;;  %v339_v48 = vmax.f32 %v323_v42, 0.0  ;;  %344 = vst [vmem:[%s679_s5 + $0x20] sm:$0xff] %v328_v43  ;;  %352 = vst [vmem:[%s679_s5 + $0x60] sm:$0xff] %v336_v44 }
 0x108   :  { %v329_v18 = vmax.f32 %v313_v45, 0.0  ;;  %v337_v49 = vmax.f32 %v321_v46, 0.0 }
 0x109   :  { %347 = vst [vmem:[%s679_s5 + $0x38] sm:$0xff] %v331_v47  ;;  %355 = vst [vmem:[%s679_s5 + $0x78] sm:$0xff] %v339_v48 }
 0x10a   :  { %345 = vst [vmem:[%s679_s5 + $0x28] sm:$0xff] %v329_v18  ;;  %353 = vst [vmem:[%s679_s5 + $0x68] sm:$0xff] %v337_v49 }

// kernel: deeplabv3_forward.33
= control target key start
LH: loop header
LB: loop body
LE: loop exit
PB: predicated region body
PF: predicated region fallthrough
CT: control target
= control target key end

     0   :  { %s306_s1 = inlined_call_operand.vmem [shape: bf16[128,128], index: 1, kind: input, shape index: {}]   ;;  %s307_s0 = inlined_call_operand.vmem [shape: bf16[32,128], index: 0, kind: input, shape index: {}]   ;;  %s308_s2 = inlined_call_operand.vmem [shape: f32[1,128], index: 2, kind: input, shape index: {}]   ;;  %s309_s3 = inlined_call_operand.vmem [shape: f32[1,128], index: 3, kind: input, shape index: {}]   ;;  %s310_s4 = inlined_call_operand.vmem [shape: f32[32,128], index: 4, kind: output, shape index: {}]  }
   0x1   :  { %v223_v0 = vld [vmem:[%s306_s1] sm:$0xff]   ;;  %v224_v1 = vld [vmem:[%s306_s1 + $0x8] sm:$0xff]   ;;  %v225_v2 = vld [vmem:[%s306_s1 + $0x10] sm:$0xff]  }
   0x2   :  { %203 = vmatprep.subr.bf16.mxu0 %v223_v0  ;;  %v226_v3 = vld [vmem:[%s306_s1 + $0x18] sm:$0xff]   ;;  %v231_v4 = vld [vmem:[%s307_s0] sm:$0xff]   ;;  %v228_v6 = vld [vmem:[%s306_s1 + $0x28] sm:$0xff]  }
   0x3   :  { %204 = vmatpush3.bf16.msra.mxu0 %v223_v0  ;;  %219 = vmatprep.mubr.bf16.mxu0 %v231_v4  ;;  %v227_v5 = vld [vmem:[%s306_s1 + $0x20] sm:$0xff]   ;;  %v229_v7 = vld [vmem:[%s306_s1 + $0x30] sm:$0xff]   ;;  %v230_v8 = vld [vmem:[%s306_s1 + $0x38] sm:$0xff]  }
   0x4   :  { %205 = vmatprep.subr.bf16.mxu0 %v224_v1  ;;  %v232_v9 = vld [vmem:[%s307_s0 + $0x8] sm:$0xff]   ;;  %v191_v10 = vld [vmem:[%s308_s2] ss:$0 sm:$0xff] }
   0x5   :  { %v192_v12 = vld [vmem:[%s309_s3] ss:$0 sm:$0xff] }
   0x7   :  { %206 = vmatpush3.bf16.msra.mxu0 %v224_v1 }
   0x8   :  { %207 = vmatprep.subr.bf16.mxu0 %v225_v2 }
   0xb   :  { %208 = vmatpush3.bf16.msra.mxu0 %v225_v2 }
   0xc   :  { %209 = vmatprep.subr.bf16.mxu0 %v226_v3 }
   0xf   :  { %210 = vmatpush3.bf16.msra.mxu0 %v226_v3 }
  0x10   :  { %211 = vmatprep.subr.bf16.mxu0 %v227_v5 }
  0x13   :  { %212 = vmatpush3.bf16.msra.mxu0 %v227_v5 }
  0x14   :  { %213 = vmatprep.subr.bf16.mxu0 %v228_v6 }
  0x17   :  { %214 = vmatpush3.bf16.msra.mxu0 %v228_v6 }
  0x18   :  { %215 = vmatprep.subr.bf16.mxu0 %v229_v7 }
  0x1b   :  { %216 = vmatpush3.bf16.msra.mxu0 %v229_v7 }
  0x1c   :  { %217 = vmatprep.subr.bf16.mxu0 %v230_v8 }
  0x1f   :  { %218 = vmatpush3.bf16.msra.mxu0 %v230_v8 }
  0x22   :  { %220 = vmatmul.mubr.bf16.vlgmr.msra.gmra.mrb[0].mxu0 %v232_v9 }
  0xf5   :  { %v221_v11 = vpop.f32.mrb[0].mxu0 }
  0xf6   :  { %v156_v13 = vmul.f32 %v221_v11, %v191_v10  ;;  %v132_v14 = vpop.f32.mrb[1].mxu0 }
  0xf7   :  { %v154_v15 = vmul.f32 %v191_v10, %v132_v14  ;;  %v222_v16 = vpop.f32.mrb[2].mxu0 }
  0xf8   :  { %v167_v17 = vadd.f32 %v192_v12, %v156_v13  ;;  %v157_v18 = vmul.f32 %v222_v16, %v191_v10  ;;  %v135_v19 = vpop.f32.mrb[3].mxu0 }
  0xf9   :  { %v165_v20 = vadd.f32 %v192_v12, %v154_v15  ;;  %v155_v21 = vmul.f32 %v191_v10, %v135_v19 }
  0xfa   :  { %v171_v22 = vmax.f32 %v167_v17, 0.0  ;;  %v168_v23 = vadd.f32 %v192_v12, %v157_v18 }
  0xfb   :  { %v169_v24 = vmax.f32 %v165_v20, 0.0  ;;  %v166_v25 = vadd.f32 %v192_v12, %v155_v21 }
  0xfc   :  { %175 = vst [vmem:[%s310_s4 + $0x10] sm:$0xff] %v171_v22  ;;  %v172_v26 = vmax.f32 %v168_v23, 0.0 }
  0xfd   :  { %173 = vst [vmem:[%s310_s4] sm:$0xff] %v169_v24  ;;  %v170_v27 = vmax.f32 %v166_v25, 0.0 }
  0xfe   :  { %176 = vst [vmem:[%s310_s4 + $0x18] sm:$0xff] %v172_v26 }
  0xff   :  { %174 = vst [vmem:[%s310_s4 + $0x8] sm:$0xff] %v170_v27 }

// kernel: deeplabv3_forward.36
= control target key start
LH: loop header
LB: loop body
LE: loop exit
PB: predicated region body
PF: predicated region fallthrough
CT: control target
= control target key end

     0   :  { %s444_s1 = inlined_call_operand.vmem [shape: bf16[256,128], index: 1, kind: input, shape index: {}]   ;;  %s445_s0 = inlined_call_operand.vmem [shape: bf16[32,256], index: 0, kind: input, shape index: {}]   ;;  %s446_s2 = inlined_call_operand.vmem [shape: f32[1,128], index: 2, kind: input, shape index: {}]   ;;  %s447_s3 = inlined_call_operand.vmem [shape: f32[1,128], index: 3, kind: input, shape index: {}]   ;;  %s448_s4 = inlined_call_operand.vmem [shape: f32[32,128], index: 4, kind: output, shape index: {}]  }
   0x1   :  { %v319_v0 = vld [vmem:[%s444_s1 + $0x40] sm:$0xff]   ;;  %v321_v2 = vld [vmem:[%s444_s1 + $0x48] sm:$0xff]   ;;  %v323_v4 = vld [vmem:[%s444_s1 + $0x50] sm:$0xff]  }
   0x2   :  { %v320_v1 = vld [vmem:[%s444_s1] sm:$0xff]   ;;  %275 = vmatprep.subr.bf16.mxu0 %v319_v0  ;;  %303 = vmatprep.subr.bf16.mxu1 %v319_v0  ;;  %v322_v3 = vld [vmem:[%s444_s1 + $0x8] sm:$0xff]   ;;  %v324_v5 = vld [vmem:[%s444_s1 + $0x10] sm:$0xff]  }
   0x3   :  { %276 = vmatpush3.bf16.msra.mxu0 %v320_v1  ;;  %311 = vmatpush3.bf16.msra.mxu1 %v320_v1  ;;  %v325_v6 = vld [vmem:[%s444_s1 + $0x58] sm:$0xff]   ;;  %v327_v8 = vld [vmem:[%s444_s1 + $0x60] sm:$0xff]   ;;  %v329_v10 = vld [vmem:[%s444_s1 + $0x68] sm:$0xff]  }
   0x4   :  { %277 = vmatprep.subr.bf16.mxu0 %v321_v2  ;;  %304 = vmatprep.subr.bf16.mxu1 %v321_v2  ;;  %v326_v7 = vld [vmem:[%s444_s1 + $0x18] sm:$0xff]   ;;  %v328_v9 = vld [vmem:[%s444_s1 + $0x20] sm:$0xff]   ;;  %v330_v13 = vld [vmem:[%s444_s1 + $0x28] sm:$0xff]  }
   0x5   :  { %v337_v11 = vld [vmem:[%s445_s0 + $0x4] ss:$8 sps:$4 sm:$0xff]   ;;  %v340_v12 = vld [vmem:[%s445_s0 + $0x14] ss:$8 sps:$4 sm:$0xff]   ;;  %v335_v18 = vld [vmem:[%s445_s0] ss:$8 sps:$4 sm:$0xff]  }
   0x6   :  { %v331_v14 = vld [vmem:[%s444_s1 + $0x70] sm:$0xff]   ;;  %202 = vmatprep.mubr.bf16.mxu0 %v337_v11  ;;  %210 = vmatprep.mubr.bf16.mxu1 %v340_v12  ;;  %v333_v16 = vld [vmem:[%s444_s1 + $0x78] sm:$0xff]   ;;  %v273_v23 = vld [vmem:[%s446_s2] ss:$0 sm:$0xff] }
   0x7   :  { %278 = vmatpush3.bf16.msra.mxu0 %v322_v3  ;;  %312 = vmatpush3.bf16.msra.mxu1 %v322_v3  ;;  %v332_v15 = vld [vmem:[%s444_s1 + $0x30] sm:$0xff]   ;;  %v334_v17 = vld [vmem:[%s444_s1 + $0x38] sm:$0xff]   ;;  %v274_v29 = vld [vmem:[%s447_s3] ss:$0 sm:$0xff] }
   0x8   :  { %279 = vmatprep.subr.bf16.mxu0 %v323_v4  ;;  %305 = vmatprep.subr.bf16.mxu1 %v323_v4  ;;  %v338_v19 = vld [vmem:[%s445_s0 + $0x10] ss:$8 sps:$4 sm:$0xff]  }
   0xb   :  { %280 = vmatpush3.bf16.msra.mxu0 %v324_v5  ;;  %313 = vmatpush3.bf16.msra.mxu1 %v324_v5 }
   0xc   :  { %281 = vmatprep.subr.bf16.mxu0 %v325_v6  ;;  %306 = vmatprep.subr.bf16.mxu1 %v325_v6 }
   0xf   :  { %282 = vmatpush3.bf16.msra.mxu0 %v326_v7  ;;  %314 = vmatpush3.bf16.msra.mxu1 %v326_v7 }
  0x10   :  { %283 = vmatprep.subr.bf16.mxu0 %v327_v8  ;;  %307 = vmatprep.subr.bf16.mxu1 %v327_v8 }
  0x13   :  { %284 = vmatpush3.bf16.msra.mxu0 %v328_v9  ;;  %315 = vmatpush3.bf16.msra.mxu1 %v328_v9 }
  0x14   :  { %285 = vmatprep.subr.bf16.mxu0 %v329_v10  ;;  %308 = vmatprep.subr.bf16.mxu1 %v329_v10 }
  0x17   :  { %286 = vmatpush3.bf16.msra.mxu0 %v330_v13  ;;  %316 = vmatpush3.bf16.msra.mxu1 %v330_v13 }
  0x18   :  { %287 = vmatprep.subr.bf16.mxu0 %v331_v14  ;;  %309 = vmatprep.subr.bf16.mxu1 %v331_v14 }
  0x1b   :  { %288 = vmatpush3.bf16.msra.mxu0 %v332_v15  ;;  %317 = vmatpush3.bf16.msra.mxu1 %v332_v15 }
  0x1c   :  { %289 = vmatprep.subr.bf16.mxu0 %v333_v16  ;;  %310 = vmatprep.subr.bf16.mxu1 %v333_v16 }
  0x1f   :  { %290 = vmatpush3.bf16.msra.mxu0 %v334_v17  ;;  %318 = vmatpush3.bf16.msra.mxu1 %v334_v17 }
  0x22   :  { %203 = vmatmul.mubr.bf16.vlgmr.msra.gmra.mrb[0].mxu0 %v335_v18  ;;  %211 = vmatmul.mubr.bf16.vlgmr.msra.gmra.mrb[0].mxu1 %v338_v19 }
  0xf5   :  { %v291_v20 = vpop.f32.mrb[0].mxu0  ;;  %v297_v21 = vpop.f32.mrb[0].mxu1 }
  0xf6   :  { %v292_v22 = vpop.f32.mrb[1].mxu0  ;;  %v298_v24 = vpop.f32.mrb[1].mxu1 }
  0xf7   :  { %v293_v25 = vadd.f32 %v292_v22, %v291_v20  ;;  %v299_v26 = vadd.f32 %v298_v24, %v297_v21  ;;  %v294_v27 = vpop.f32.mrb[2].mxu0  ;;  %v300_v28 = vpop.f32.mrb[2].mxu1 }
  0xf8   :  { %v295_v30 = vpop.f32.mrb[3].mxu0  ;;  %v301_v31 = vpop.f32.mrb[3].mxu1 }
  0xf9   :  { %v226_v32 = vmul.f32 %v293_v25, %v273_v23  ;;  %v228_v33 = vmul.f32 %v299_v26, %v273_v23  ;;  %v296_v34 = vadd.f32 %v295_v30, %v294_v27  ;;  %v302_v35 = vadd.f32 %v301_v31, %v300_v28 }
  0xfb   :  { %v237_v36 = vadd.f32 %v274_v29, %v226_v32  ;;  %v239_v37 = vadd.f32 %v274_v29, %v228_v33  ;;  %v227_v38 = vmul.f32 %v296_v34, %v273_v23  ;;  %v229_v39 = vmul.f32 %v302_v35, %v273_v23 }
  0xfd   :  { %v241_v40 = vmax.f32 %v237_v36, 0.0  ;;  %v243_v41 = vmax.f32 %v239_v37, 0.0  ;;  %v238_v42 = vadd.f32 %v274_v29, %v227_v38  ;;  %v240_v43 = vadd.f32 %v274_v29, %v229_v39 }
  0xff   :  { %245 = vst [vmem:[%s448_s4] sm:$0xff] %v241_v40  ;;  %247 = vst [vmem:[%s448_s4 + $0x10] sm:$0xff] %v243_v41  ;;  %v242_v44 = vmax.f32 %v238_v42, 0.0  ;;  %v244_v45 = vmax.f32 %v240_v43, 0.0 }
 0x101   :  { %246 = vst [vmem:[%s448_s4 + $0x8] sm:$0xff] %v242_v44  ;;  %248 = vst [vmem:[%s448_s4 + $0x18] sm:$0xff] %v244_v45 }

// kernel: deeplabv3_forward.34
= control target key start
LH: loop header
LB: loop body
LE: loop exit
PB: predicated region body
PF: predicated region fallthrough
CT: control target
= control target key end

     0   :  { %s302_s1 = inlined_call_operand.vmem [shape: bf16[128,128], index: 1, kind: input, shape index: {}]   ;;  %s303_s0 = inlined_call_operand.vmem [shape: bf16[32,128], index: 0, kind: input, shape index: {}]   ;;  %s304_s2 = inlined_call_operand.vmem [shape: f32[1,128], index: 2, kind: input, shape index: {}]   ;;  %s305_s3 = inlined_call_operand.vmem [shape: f32[1,128], index: 3, kind: input, shape index: {}]   ;;  %s306_s4 = inlined_call_operand.vmem [shape: f32[32,128], index: 4, kind: output, shape index: {}]  }
   0x1   :  { %v219_v0 = vld [vmem:[%s302_s1] sm:$0xff]   ;;  %v220_v1 = vld [vmem:[%s302_s1 + $0x8] sm:$0xff]   ;;  %v221_v2 = vld [vmem:[%s302_s1 + $0x10] sm:$0xff]  }
   0x2   :  { %199 = vmatprep.subr.bf16.mxu0 %v219_v0  ;;  %v222_v3 = vld [vmem:[%s302_s1 + $0x18] sm:$0xff]   ;;  %v227_v4 = vld [vmem:[%s303_s0] sm:$0xff]   ;;  %v224_v6 = vld [vmem:[%s302_s1 + $0x28] sm:$0xff]  }
   0x3   :  { %200 = vmatpush3.bf16.msra.mxu0 %v219_v0  ;;  %215 = vmatprep.mubr.bf16.mxu0 %v227_v4  ;;  %v223_v5 = vld [vmem:[%s302_s1 + $0x20] sm:$0xff]   ;;  %v225_v7 = vld [vmem:[%s302_s1 + $0x30] sm:$0xff]   ;;  %v226_v8 = vld [vmem:[%s302_s1 + $0x38] sm:$0xff]  }
   0x4   :  { %201 = vmatprep.subr.bf16.mxu0 %v220_v1  ;;  %v228_v9 = vld [vmem:[%s303_s0 + $0x8] sm:$0xff]   ;;  %v187_v10 = vld [vmem:[%s304_s2] ss:$0 sm:$0xff] }
   0x5   :  { %v188_v12 = vld [vmem:[%s305_s3] ss:$0 sm:$0xff] }
   0x7   :  { %202 = vmatpush3.bf16.msra.mxu0 %v220_v1 }
   0x8   :  { %203 = vmatprep.subr.bf16.mxu0 %v221_v2 }
   0xb   :  { %204 = vmatpush3.bf16.msra.mxu0 %v221_v2 }
   0xc   :  { %205 = vmatprep.subr.bf16.mxu0 %v222_v3 }
   0xf   :  { %206 = vmatpush3.bf16.msra.mxu0 %v222_v3 }
  0x10   :  { %207 = vmatprep.subr.bf16.mxu0 %v223_v5 }
  0x13   :  { %208 = vmatpush3.bf16.msra.mxu0 %v223_v5 }
  0x14   :  { %209 = vmatprep.subr.bf16.mxu0 %v224_v6 }
  0x17   :  { %210 = vmatpush3.bf16.msra.mxu0 %v224_v6 }
  0x18   :  { %211 = vmatprep.subr.bf16.mxu0 %v225_v7 }
  0x1b   :  { %212 = vmatpush3.bf16.msra.mxu0 %v225_v7 }
  0x1c   :  { %213 = vmatprep.subr.bf16.mxu0 %v226_v8 }
  0x1f   :  { %214 = vmatpush3.bf16.msra.mxu0 %v226_v8 }
  0x22   :  { %216 = vmatmul.mubr.bf16.vlgmr.msra.gmra.mrb[0].mxu0 %v228_v9 }
  0xf5   :  { %v217_v11 = vpop.f32.mrb[0].mxu0 }
  0xf6   :  { %v156_v13 = vmul.f32 %v217_v11, %v187_v10  ;;  %v132_v14 = vpop.f32.mrb[1].mxu0 }
  0xf7   :  { %v154_v15 = vmul.f32 %v187_v10, %v132_v14  ;;  %v218_v16 = vpop.f32.mrb[2].mxu0 }
  0xf8   :  { %v167_v17 = vadd.f32 %v188_v12, %v156_v13  ;;  %v157_v18 = vmul.f32 %v218_v16, %v187_v10  ;;  %v135_v19 = vpop.f32.mrb[3].mxu0 }
  0xf9   :  { %v165_v20 = vadd.f32 %v188_v12, %v154_v15  ;;  %v155_v21 = vmul.f32 %v187_v10, %v135_v19 }
  0xfa   :  { %171 = vst [vmem:[%s306_s4 + $0x10] sm:$0xff] %v167_v17  ;;  %v168_v22 = vadd.f32 %v188_v12, %v157_v18 }
  0xfb   :  { %169 = vst [vmem:[%s306_s4] sm:$0xff] %v165_v20  ;;  %v166_v23 = vadd.f32 %v188_v12, %v155_v21 }
  0xfc   :  { %172 = vst [vmem:[%s306_s4 + $0x18] sm:$0xff] %v168_v22 }
  0xfd   :  { %170 = vst [vmem:[%s306_s4 + $0x8] sm:$0xff] %v166_v23 }

// kernel: deeplabv3_forward.35
= control target key start
LH: loop header
LB: loop body
LE: loop exit
PB: predicated region body
PF: predicated region fallthrough
CT: control target
= control target key end

     0   :  { %s472_s1 = inlined_call_operand.vmem [shape: bf16[256,128], index: 1, kind: input, shape index: {}]   ;;  %s473_s0 = inlined_call_operand.vmem [shape: bf16[32,256], index: 0, kind: input, shape index: {}]   ;;  %s474_s2 = inlined_call_operand.vmem [shape: f32[1,128], index: 2, kind: input, shape index: {}]   ;;  %s475_s3 = inlined_call_operand.vmem [shape: f32[1,128], index: 3, kind: input, shape index: {}]   ;;  %s476_s4 = inlined_call_operand.vmem [shape: f32[32,128], index: 4, kind: input, shape index: {}]   ;;  %s477_s5 = inlined_call_operand.vmem [shape: f32[32,128], index: 5, kind: output, shape index: {}]  }
   0x1   :  { %v330_v0 = vld [vmem:[%s472_s1 + $0x40] sm:$0xff]   ;;  %v332_v2 = vld [vmem:[%s472_s1 + $0x48] sm:$0xff]   ;;  %v334_v4 = vld [vmem:[%s472_s1 + $0x50] sm:$0xff]  }
   0x2   :  { %v331_v1 = vld [vmem:[%s472_s1] sm:$0xff]   ;;  %286 = vmatprep.subr.bf16.mxu0 %v330_v0  ;;  %314 = vmatprep.subr.bf16.mxu1 %v330_v0  ;;  %v333_v3 = vld [vmem:[%s472_s1 + $0x8] sm:$0xff]   ;;  %v335_v5 = vld [vmem:[%s472_s1 + $0x10] sm:$0xff]  }
   0x3   :  { %287 = vmatpush3.bf16.msra.mxu0 %v331_v1  ;;  %322 = vmatpush3.bf16.msra.mxu1 %v331_v1  ;;  %v336_v6 = vld [vmem:[%s472_s1 + $0x58] sm:$0xff]   ;;  %v338_v8 = vld [vmem:[%s472_s1 + $0x60] sm:$0xff]   ;;  %v340_v10 = vld [vmem:[%s472_s1 + $0x68] sm:$0xff]  }
   0x4   :  { %288 = vmatprep.subr.bf16.mxu0 %v332_v2  ;;  %315 = vmatprep.subr.bf16.mxu1 %v332_v2  ;;  %v337_v7 = vld [vmem:[%s472_s1 + $0x18] sm:$0xff]   ;;  %v339_v9 = vld [vmem:[%s472_s1 + $0x20] sm:$0xff]   ;;  %v341_v13 = vld [vmem:[%s472_s1 + $0x28] sm:$0xff]  }
   0x5   :  { %v348_v11 = vld [vmem:[%s473_s0 + $0x4] ss:$8 sps:$4 sm:$0xff]   ;;  %v351_v12 = vld [vmem:[%s473_s0 + $0x14] ss:$8 sps:$4 sm:$0xff]   ;;  %v346_v18 = vld [vmem:[%s473_s0] ss:$8 sps:$4 sm:$0xff]  }
   0x6   :  { %v342_v14 = vld [vmem:[%s472_s1 + $0x70] sm:$0xff]   ;;  %205 = vmatprep.mubr.bf16.mxu0 %v348_v11  ;;  %213 = vmatprep.mubr.bf16.mxu1 %v351_v12  ;;  %v344_v16 = vld [vmem:[%s472_s1 + $0x78] sm:$0xff]   ;;  %v284_v23 = vld [vmem:[%s474_s2] ss:$0 sm:$0xff] }
   0x7   :  { %289 = vmatpush3.bf16.msra.mxu0 %v333_v3  ;;  %323 = vmatpush3.bf16.msra.mxu1 %v333_v3  ;;  %v343_v15 = vld [vmem:[%s472_s1 + $0x30] sm:$0xff]   ;;  %v345_v17 = vld [vmem:[%s472_s1 + $0x38] sm:$0xff]   ;;  %v285_v29 = vld [vmem:[%s475_s3] ss:$0 sm:$0xff] }
   0x8   :  { %290 = vmatprep.subr.bf16.mxu0 %v334_v4  ;;  %316 = vmatprep.subr.bf16.mxu1 %v334_v4  ;;  %v349_v19 = vld [vmem:[%s473_s0 + $0x10] ss:$8 sps:$4 sm:$0xff]   ;;  %v244_v36 = vld [vmem:[%s476_s4] sm:$0xff]  ;;  %v245_v42 = vld [vmem:[%s476_s4 + $0x8] sm:$0xff] }
   0x9   :  { %v246_v37 = vld [vmem:[%s476_s4 + $0x10] sm:$0xff]  ;;  %v247_v43 = vld [vmem:[%s476_s4 + $0x18] sm:$0xff] }
   0xb   :  { %291 = vmatpush3.bf16.msra.mxu0 %v335_v5  ;;  %324 = vmatpush3.bf16.msra.mxu1 %v335_v5 }
   0xc   :  { %292 = vmatprep.subr.bf16.mxu0 %v336_v6  ;;  %317 = vmatprep.subr.bf16.mxu1 %v336_v6 }
   0xf   :  { %293 = vmatpush3.bf16.msra.mxu0 %v337_v7  ;;  %325 = vmatpush3.bf16.msra.mxu1 %v337_v7 }
  0x10   :  { %294 = vmatprep.subr.bf16.mxu0 %v338_v8  ;;  %318 = vmatprep.subr.bf16.mxu1 %v338_v8 }
  0x13   :  { %295 = vmatpush3.bf16.msra.mxu0 %v339_v9  ;;  %326 = vmatpush3.bf16.msra.mxu1 %v339_v9 }
  0x14   :  { %296 = vmatprep.subr.bf16.mxu0 %v340_v10  ;;  %319 = vmatprep.subr.bf16.mxu1 %v340_v10 }
  0x17   :  { %297 = vmatpush3.bf16.msra.mxu0 %v341_v13  ;;  %327 = vmatpush3.bf16.msra.mxu1 %v341_v13 }
  0x18   :  { %298 = vmatprep.subr.bf16.mxu0 %v342_v14  ;;  %320 = vmatprep.subr.bf16.mxu1 %v342_v14 }
  0x1b   :  { %299 = vmatpush3.bf16.msra.mxu0 %v343_v15  ;;  %328 = vmatpush3.bf16.msra.mxu1 %v343_v15 }
  0x1c   :  { %300 = vmatprep.subr.bf16.mxu0 %v344_v16  ;;  %321 = vmatprep.subr.bf16.mxu1 %v344_v16 }
  0x1f   :  { %301 = vmatpush3.bf16.msra.mxu0 %v345_v17  ;;  %329 = vmatpush3.bf16.msra.mxu1 %v345_v17 }
  0x22   :  { %206 = vmatmul.mubr.bf16.vlgmr.msra.gmra.mrb[0].mxu0 %v346_v18  ;;  %214 = vmatmul.mubr.bf16.vlgmr.msra.gmra.mrb[0].mxu1 %v349_v19 }
  0xf5   :  { %v302_v20 = vpop.f32.mrb[0].mxu0  ;;  %v308_v21 = vpop.f32.mrb[0].mxu1 }
  0xf6   :  { %v303_v22 = vpop.f32.mrb[1].mxu0  ;;  %v309_v24 = vpop.f32.mrb[1].mxu1 }
  0xf7   :  { %v304_v25 = vadd.f32 %v303_v22, %v302_v20  ;;  %v310_v26 = vadd.f32 %v309_v24, %v308_v21  ;;  %v305_v27 = vpop.f32.mrb[2].mxu0  ;;  %v311_v28 = vpop.f32.mrb[2].mxu1 }
  0xf8   :  { %v306_v30 = vpop.f32.mrb[3].mxu0  ;;  %v312_v31 = vpop.f32.mrb[3].mxu1 }
  0xf9   :  { %v229_v32 = vmul.f32 %v304_v25, %v284_v23  ;;  %v231_v33 = vmul.f32 %v310_v26, %v284_v23  ;;  %v307_v34 = vadd.f32 %v306_v30, %v305_v27  ;;  %v313_v35 = vadd.f32 %v312_v31, %v311_v28 }
  0xfb   :  { %v240_v38 = vadd.f32 %v285_v29, %v229_v32  ;;  %v242_v39 = vadd.f32 %v285_v29, %v231_v33  ;;  %v230_v40 = vmul.f32 %v307_v34, %v284_v23  ;;  %v232_v41 = vmul.f32 %v313_v35, %v284_v23 }
  0xfd   :  { %v248_v44 = vadd.f32 %v244_v36, %v240_v38  ;;  %v250_v45 = vadd.f32 %v246_v37, %v242_v39  ;;  %v241_v46 = vadd.f32 %v285_v29, %v230_v40  ;;  %v243_v47 = vadd.f32 %v285_v29, %v232_v41 }
  0xff   :  { %v252_v48 = vmax.f32 %v248_v44, 0.0  ;;  %v254_v49 = vmax.f32 %v250_v45, 0.0  ;;  %v249_v50 = vadd.f32 %v245_v42, %v241_v46  ;;  %v251_v51 = vadd.f32 %v247_v43, %v243_v47 }
 0x101   :  { %256 = vst [vmem:[%s477_s5] sm:$0xff] %v252_v48  ;;  %258 = vst [vmem:[%s477_s5 + $0x10] sm:$0xff] %v254_v49  ;;  %v253_v52 = vmax.f32 %v249_v50, 0.0  ;;  %v255_v53 = vmax.f32 %v251_v51, 0.0 }
 0x103   :  { %257 = vst [vmem:[%s477_s5 + $0x8] sm:$0xff] %v253_v52  ;;  %259 = vst [vmem:[%s477_s5 + $0x18] sm:$0xff] %v255_v53 }

// kernel: deeplabv3_forward.41
= control target key start
LH: loop header
LB: loop body
LE: loop exit
PB: predicated region body
PF: predicated region fallthrough
CT: control target
= control target key end

     0   :  { %s637_s1 = inlined_call_operand.vmem [shape: bf16[384,128], index: 1, kind: input, shape index: {}]   ;;  %s638_s0 = inlined_call_operand.vmem [shape: bf16[32,384], index: 0, kind: input, shape index: {}]   ;;  %s639_s2 = inlined_call_operand.vmem [shape: f32[1,128], index: 2, kind: input, shape index: {}]   ;;  %s640_s3 = inlined_call_operand.vmem [shape: f32[1,128], index: 3, kind: input, shape index: {}]   ;;  %s641_s4 = inlined_call_operand.vmem [shape: f32[32,128], index: 4, kind: output, shape index: {}]  }
   0x1   :  { %v472_v0 = vld [vmem:[%s637_s1 + $0x40] sm:$0xff]   ;;  %v475_v3 = vld [vmem:[%s637_s1 + $0x48] sm:$0xff]   ;;  %v478_v6 = vld [vmem:[%s637_s1 + $0x50] sm:$0xff]  }
   0x2   :  { %v473_v1 = vld [vmem:[%s637_s1] sm:$0xff]   ;;  %414 = vmatprep.subr.bf16.mxu0 %v472_v0  ;;  %v476_v4 = vld [vmem:[%s637_s1 + $0x8] sm:$0xff]   ;;  %v479_v7 = vld [vmem:[%s637_s1 + $0x10] sm:$0xff]  }
   0x3   :  { %v474_v2 = vld [vmem:[%s637_s1 + $0x80] sm:$0xff]   ;;  %415 = vmatpush3.bf16.msra.mxu0 %v473_v1  ;;  %v477_v5 = vld [vmem:[%s637_s1 + $0x88] sm:$0xff]   ;;  %v480_v8 = vld [vmem:[%s637_s1 + $0x90] sm:$0xff]  }
   0x4   :  { %452 = vmatprep.subr.bf16.mxu1 %v474_v2  ;;  %416 = vmatprep.subr.bf16.mxu0 %v475_v3  ;;  %v481_v9 = vld [vmem:[%s637_s1 + $0x58] sm:$0xff]   ;;  %v484_v12 = vld [vmem:[%s637_s1 + $0x60] sm:$0xff]   ;;  %v487_v15 = vld [vmem:[%s637_s1 + $0x68] sm:$0xff]  }
   0x5   :  { %453 = vmatpush3.bf16.msra.mxu1 %v474_v2  ;;  %v482_v10 = vld [vmem:[%s637_s1 + $0x18] sm:$0xff]   ;;  %v486_v13 = vld [vmem:[%s637_s1 + $0xa0] sm:$0xff]   ;;  %v489_v16 = vld [vmem:[%s637_s1 + $0xa8] sm:$0xff]  }
   0x6   :  { %454 = vmatprep.subr.bf16.mxu1 %v477_v5  ;;  %v483_v11 = vld [vmem:[%s637_s1 + $0x98] sm:$0xff]   ;;  %v485_v14 = vld [vmem:[%s637_s1 + $0x20] sm:$0xff]   ;;  %v488_v17 = vld [vmem:[%s637_s1 + $0x28] sm:$0xff]  }
   0x7   :  { %417 = vmatpush3.bf16.msra.mxu0 %v476_v4  ;;  %v490_v18 = vld [vmem:[%s637_s1 + $0x70] sm:$0xff]   ;;  %v493_v21 = vld [vmem:[%s637_s1 + $0x78] sm:$0xff]   ;;  %v496_v26 = vld [vmem:[%s638_s0] ss:$12 sps:$4 sm:$0xff]  }
   0x8   :  { %418 = vmatprep.subr.bf16.mxu0 %v478_v6  ;;  %v491_v19 = vld [vmem:[%s637_s1 + $0x30] sm:$0xff]   ;;  %v495_v22 = vld [vmem:[%s637_s1 + $0xb8] sm:$0xff]   ;;  %v500_v28 = vld [vmem:[%s638_s0 + $0x20] ss:$12 sps:$4 sm:$0xff]  }
   0x9   :  { %455 = vmatpush3.bf16.msra.mxu1 %v477_v5  ;;  %v492_v20 = vld [vmem:[%s637_s1 + $0xb0] sm:$0xff]   ;;  %v494_v25 = vld [vmem:[%s637_s1 + $0x38] sm:$0xff]   ;;  %v412_v37 = vld [vmem:[%s639_s2] ss:$0 sm:$0xff] }
   0xa   :  { %456 = vmatprep.subr.bf16.mxu1 %v480_v8  ;;  %v498_v23 = vld [vmem:[%s638_s0 + $0x4] ss:$12 sps:$4 sm:$0xff]   ;;  %v499_v24 = vld [vmem:[%s638_s0 + $0x8] ss:$12 sps:$4 sm:$0xff]   ;;  %v413_v41 = vld [vmem:[%s640_s3] ss:$0 sm:$0xff] }
   0xb   :  { %419 = vmatpush3.bf16.msra.mxu0 %v479_v7  ;;  %282 = vmatprep.mubr.bf16.mxu0 %v498_v23  ;;  %v501_v27 = vld [vmem:[%s638_s0 + $0x1c] ss:$12 sps:$4 sm:$0xff]   ;;  %v503_v29 = vld [vmem:[%s638_s0 + $0x18] ss:$12 sps:$4 sm:$0xff]  }
   0xc   :  { %420 = vmatprep.subr.bf16.mxu0 %v481_v9  ;;  %468 = vmatprep.mubr.bf16.mxu1 %v499_v24 }
   0xd   :  { %457 = vmatpush3.bf16.msra.mxu1 %v480_v8 }
   0xe   :  { %458 = vmatprep.subr.bf16.mxu1 %v483_v11 }
   0xf   :  { %421 = vmatpush3.bf16.msra.mxu0 %v482_v10 }
  0x10   :  { %422 = vmatprep.subr.bf16.mxu0 %v484_v12 }
  0x11   :  { %459 = vmatpush3.bf16.msra.mxu1 %v483_v11 }
  0x12   :  { %460 = vmatprep.subr.bf16.mxu1 %v486_v13 }
  0x13   :  { %423 = vmatpush3.bf16.msra.mxu0 %v485_v14 }
  0x14   :  { %424 = vmatprep.subr.bf16.mxu0 %v487_v15 }
  0x15   :  { %461 = vmatpush3.bf16.msra.mxu1 %v486_v13 }
  0x16   :  { %462 = vmatprep.subr.bf16.mxu1 %v489_v16 }
  0x17   :  { %425 = vmatpush3.bf16.msra.mxu0 %v488_v17 }
  0x18   :  { %426 = vmatprep.subr.bf16.mxu0 %v490_v18 }
  0x19   :  { %463 = vmatpush3.bf16.msra.mxu1 %v489_v16 }
  0x1a   :  { %464 = vmatprep.subr.bf16.mxu1 %v492_v20 }
  0x1b   :  { %427 = vmatpush3.bf16.msra.mxu0 %v491_v19 }
  0x1c   :  { %428 = vmatprep.subr.bf16.mxu0 %v493_v21 }
  0x1d   :  { %465 = vmatpush3.bf16.msra.mxu1 %v492_v20 }
  0x1e   :  { %466 = vmatprep.subr.bf16.mxu1 %v495_v22 }
  0x1f   :  { %429 = vmatpush3.bf16.msra.mxu0 %v494_v25 }
  0x21   :  { %467 = vmatpush3.bf16.msra.mxu1 %v495_v22 }
  0x22   :  { %283 = vmatmul.mubr.bf16.vlgmr.msra.gmra.mrb[0].mxu0 %v496_v26 }
  0x23   :  { %290 = vmatprep.mubr.bf16.mxu0 %v501_v27 }
  0x24   :  { %469 = vmatmul.mubr.bf16.vlgmr.msra.gmra.mrb[0].mxu1 %v500_v28 }
  0x2a   :  { %291 = vmatmul.mubr.bf16.gmra.mrb[4].mxu0 %v503_v29 }
  0xf5   :  { %v430_v30 = vpop.f32.mrb[0].mxu0 }
  0xf6   :  { %v431_v31 = vpop.f32.mrb[1].mxu0 }
  0xf7   :  { %v432_v32 = vadd.f32 %v431_v31, %v430_v30  ;;  %v433_v33 = vpop.f32.mrb[2].mxu0  ;;  %v470_v34 = vpop.f32.mrb[0].mxu1 }
  0xf8   :  { %v434_v35 = vpop.f32.mrb[3].mxu0  ;;  %v333_v36 = vpop.f32.mrb[1].mxu1 }
  0xf9   :  { %v435_v38 = vadd.f32 %v434_v35, %v433_v33  ;;  %v334_v39 = vadd.f32 %v432_v32, %v333_v36  ;;  %v471_v40 = vpop.f32.mrb[2].mxu1 }
  0xfa   :  { %v336_v42 = vpop.f32.mrb[3].mxu1 }
  0xfb   :  { %v355_v43 = vmul.f32 %v412_v37, %v334_v39  ;;  %v337_v44 = vadd.f32 %v435_v38, %v336_v42 }
  0xfd   :  { %v366_v45 = vadd.f32 %v413_v41, %v355_v43  ;;  %v356_v46 = vmul.f32 %v412_v37, %v337_v44  ;;  %v436_v47 = vpop.f32.mrb[4].mxu0 }
  0xfe   :  { %v437_v48 = vpop.f32.mrb[5].mxu0 }
  0xff   :  { %v370_v49 = vmax.f32 %v366_v45, 0.0  ;;  %v367_v50 = vadd.f32 %v413_v41, %v356_v46  ;;  %v438_v51 = vadd.f32 %v437_v48, %v436_v47  ;;  %v439_v52 = vpop.f32.mrb[6].mxu0 }
 0x100   :  { %v440_v53 = vpop.f32.mrb[7].mxu0 }
 0x101   :  { %374 = vst [vmem:[%s641_s4] sm:$0xff] %v370_v49  ;;  %v371_v54 = vmax.f32 %v367_v50, 0.0  ;;  %v342_v55 = vadd.f32 %v470_v34, %v438_v51  ;;  %v441_v56 = vadd.f32 %v440_v53, %v439_v52 }
 0x103   :  { %375 = vst [vmem:[%s641_s4 + $0x8] sm:$0xff] %v371_v54  ;;  %v357_v57 = vmul.f32 %v412_v37, %v342_v55  ;;  %v345_v58 = vadd.f32 %v471_v40, %v441_v56 }
 0x105   :  { %v368_v59 = vadd.f32 %v413_v41, %v357_v57  ;;  %v358_v60 = vmul.f32 %v412_v37, %v345_v58 }
 0x107   :  { %v372_v61 = vmax.f32 %v368_v59, 0.0  ;;  %v369_v62 = vadd.f32 %v413_v41, %v358_v60 }
 0x109   :  { %376 = vst [vmem:[%s641_s4 + $0x10] sm:$0xff] %v372_v61  ;;  %v373_v63 = vmax.f32 %v369_v62, 0.0 }
 0x10b   :  { %377 = vst [vmem:[%s641_s4 + $0x18] sm:$0xff] %v373_v63 }

// kernel: deeplabv3_forward.40
= control target key start
LH: loop header
LB: loop body
LE: loop exit
PB: predicated region body
PF: predicated region fallthrough
CT: control target
= control target key end

     0   :  { %s665_s1 = inlined_call_operand.vmem [shape: bf16[384,128], index: 1, kind: input, shape index: {}]   ;;  %s666_s0 = inlined_call_operand.vmem [shape: bf16[32,384], index: 0, kind: input, shape index: {}]   ;;  %s667_s2 = inlined_call_operand.vmem [shape: f32[1,128], index: 2, kind: input, shape index: {}]   ;;  %s668_s3 = inlined_call_operand.vmem [shape: f32[1,128], index: 3, kind: input, shape index: {}]   ;;  %s669_s4 = inlined_call_operand.vmem [shape: f32[32,128], index: 4, kind: input, shape index: {}]   ;;  %s670_s5 = inlined_call_operand.vmem [shape: f32[32,128], index: 5, kind: output, shape index: {}]  }
   0x1   :  { %v483_v0 = vld [vmem:[%s665_s1 + $0x40] sm:$0xff]   ;;  %v486_v3 = vld [vmem:[%s665_s1 + $0x48] sm:$0xff]   ;;  %v489_v6 = vld [vmem:[%s665_s1 + $0x50] sm:$0xff]  }
   0x2   :  { %v484_v1 = vld [vmem:[%s665_s1] sm:$0xff]   ;;  %425 = vmatprep.subr.bf16.mxu0 %v483_v0  ;;  %v487_v4 = vld [vmem:[%s665_s1 + $0x8] sm:$0xff]   ;;  %v490_v7 = vld [vmem:[%s665_s1 + $0x10] sm:$0xff]  }
   0x3   :  { %v485_v2 = vld [vmem:[%s665_s1 + $0x80] sm:$0xff]   ;;  %426 = vmatpush3.bf16.msra.mxu0 %v484_v1  ;;  %v488_v5 = vld [vmem:[%s665_s1 + $0x88] sm:$0xff]   ;;  %v491_v8 = vld [vmem:[%s665_s1 + $0x90] sm:$0xff]  }
   0x4   :  { %463 = vmatprep.subr.bf16.mxu1 %v485_v2  ;;  %427 = vmatprep.subr.bf16.mxu0 %v486_v3  ;;  %v492_v9 = vld [vmem:[%s665_s1 + $0x58] sm:$0xff]   ;;  %v495_v12 = vld [vmem:[%s665_s1 + $0x60] sm:$0xff]   ;;  %v498_v15 = vld [vmem:[%s665_s1 + $0x68] sm:$0xff]  }
   0x5   :  { %464 = vmatpush3.bf16.msra.mxu1 %v485_v2  ;;  %v493_v10 = vld [vmem:[%s665_s1 + $0x18] sm:$0xff]   ;;  %v497_v13 = vld [vmem:[%s665_s1 + $0xa0] sm:$0xff]   ;;  %v500_v16 = vld [vmem:[%s665_s1 + $0xa8] sm:$0xff]  }
   0x6   :  { %465 = vmatprep.subr.bf16.mxu1 %v488_v5  ;;  %v494_v11 = vld [vmem:[%s665_s1 + $0x98] sm:$0xff]   ;;  %v496_v14 = vld [vmem:[%s665_s1 + $0x20] sm:$0xff]   ;;  %v499_v17 = vld [vmem:[%s665_s1 + $0x28] sm:$0xff]  }
   0x7   :  { %428 = vmatpush3.bf16.msra.mxu0 %v487_v4  ;;  %v501_v18 = vld [vmem:[%s665_s1 + $0x70] sm:$0xff]   ;;  %v504_v21 = vld [vmem:[%s665_s1 + $0x78] sm:$0xff]   ;;  %v507_v26 = vld [vmem:[%s666_s0] ss:$12 sps:$4 sm:$0xff]  }
   0x8   :  { %429 = vmatprep.subr.bf16.mxu0 %v489_v6  ;;  %v502_v19 = vld [vmem:[%s665_s1 + $0x30] sm:$0xff]   ;;  %v506_v22 = vld [vmem:[%s665_s1 + $0xb8] sm:$0xff]   ;;  %v511_v28 = vld [vmem:[%s666_s0 + $0x20] ss:$12 sps:$4 sm:$0xff]  }
   0x9   :  { %466 = vmatpush3.bf16.msra.mxu1 %v488_v5  ;;  %v503_v20 = vld [vmem:[%s665_s1 + $0xb0] sm:$0xff]   ;;  %v505_v25 = vld [vmem:[%s665_s1 + $0x38] sm:$0xff]   ;;  %v423_v37 = vld [vmem:[%s667_s2] ss:$0 sm:$0xff] }
   0xa   :  { %467 = vmatprep.subr.bf16.mxu1 %v491_v8  ;;  %v509_v23 = vld [vmem:[%s666_s0 + $0x4] ss:$12 sps:$4 sm:$0xff]   ;;  %v510_v24 = vld [vmem:[%s666_s0 + $0x8] ss:$12 sps:$4 sm:$0xff]   ;;  %v424_v41 = vld [vmem:[%s668_s3] ss:$0 sm:$0xff] }
   0xb   :  { %430 = vmatpush3.bf16.msra.mxu0 %v490_v7  ;;  %285 = vmatprep.mubr.bf16.mxu0 %v509_v23  ;;  %v512_v27 = vld [vmem:[%s666_s0 + $0x1c] ss:$12 sps:$4 sm:$0xff]   ;;  %v514_v29 = vld [vmem:[%s666_s0 + $0x18] ss:$12 sps:$4 sm:$0xff]   ;;  %v375_v63 = vld [vmem:[%s669_s4 + $0x10] sm:$0xff] }
   0xc   :  { %431 = vmatprep.subr.bf16.mxu0 %v492_v9  ;;  %479 = vmatprep.mubr.bf16.mxu1 %v510_v24  ;;  %v373_v45 = vld [vmem:[%s669_s4] sm:$0xff]  ;;  %v374_v49 = vld [vmem:[%s669_s4 + $0x8] sm:$0xff]  ;;  %v376_v2 = vld [vmem:[%s669_s4 + $0x18] sm:$0xff] }
   0xd   :  { %468 = vmatpush3.bf16.msra.mxu1 %v491_v8 }
   0xe   :  { %469 = vmatprep.subr.bf16.mxu1 %v494_v11 }
   0xf   :  { %432 = vmatpush3.bf16.msra.mxu0 %v493_v10 }
  0x10   :  { %433 = vmatprep.subr.bf16.mxu0 %v495_v12 }
  0x11   :  { %470 = vmatpush3.bf16.msra.mxu1 %v494_v11 }
  0x12   :  { %471 = vmatprep.subr.bf16.mxu1 %v497_v13 }
  0x13   :  { %434 = vmatpush3.bf16.msra.mxu0 %v496_v14 }
  0x14   :  { %435 = vmatprep.subr.bf16.mxu0 %v498_v15 }
  0x15   :  { %472 = vmatpush3.bf16.msra.mxu1 %v497_v13 }
  0x16   :  { %473 = vmatprep.subr.bf16.mxu1 %v500_v16 }
  0x17   :  { %436 = vmatpush3.bf16.msra.mxu0 %v499_v17 }
  0x18   :  { %437 = vmatprep.subr.bf16.mxu0 %v501_v18 }
  0x19   :  { %474 = vmatpush3.bf16.msra.mxu1 %v500_v16 }
  0x1a   :  { %475 = vmatprep.subr.bf16.mxu1 %v503_v20 }
  0x1b   :  { %438 = vmatpush3.bf16.msra.mxu0 %v502_v19 }
  0x1c   :  { %439 = vmatprep.subr.bf16.mxu0 %v504_v21 }
  0x1d   :  { %476 = vmatpush3.bf16.msra.mxu1 %v503_v20 }
  0x1e   :  { %477 = vmatprep.subr.bf16.mxu1 %v506_v22 }
  0x1f   :  { %440 = vmatpush3.bf16.msra.mxu0 %v505_v25 }
  0x21   :  { %478 = vmatpush3.bf16.msra.mxu1 %v506_v22 }
  0x22   :  { %286 = vmatmul.mubr.bf16.vlgmr.msra.gmra.mrb[0].mxu0 %v507_v26 }
  0x23   :  { %293 = vmatprep.mubr.bf16.mxu0 %v512_v27 }
  0x24   :  { %480 = vmatmul.mubr.bf16.vlgmr.msra.gmra.mrb[0].mxu1 %v511_v28 }
  0x2a   :  { %294 = vmatmul.mubr.bf16.gmra.mrb[4].mxu0 %v514_v29 }
  0xf5   :  { %v441_v30 = vpop.f32.mrb[0].mxu0 }
  0xf6   :  { %v442_v31 = vpop.f32.mrb[1].mxu0 }
  0xf7   :  { %v443_v32 = vadd.f32 %v442_v31, %v441_v30  ;;  %v444_v33 = vpop.f32.mrb[2].mxu0  ;;  %v481_v34 = vpop.f32.mrb[0].mxu1 }
  0xf8   :  { %v445_v35 = vpop.f32.mrb[3].mxu0  ;;  %v336_v36 = vpop.f32.mrb[1].mxu1 }
  0xf9   :  { %v446_v38 = vadd.f32 %v445_v35, %v444_v33  ;;  %v337_v39 = vadd.f32 %v443_v32, %v336_v36  ;;  %v482_v40 = vpop.f32.mrb[2].mxu1 }
  0xfa   :  { %v339_v42 = vpop.f32.mrb[3].mxu1 }
  0xfb   :  { %v358_v43 = vmul.f32 %v423_v37, %v337_v39  ;;  %v340_v44 = vadd.f32 %v446_v38, %v339_v42 }
  0xfd   :  { %v369_v46 = vadd.f32 %v424_v41, %v358_v43  ;;  %v359_v47 = vmul.f32 %v423_v37, %v340_v44  ;;  %v447_v48 = vpop.f32.mrb[4].mxu0 }
  0xfe   :  { %v448_v50 = vpop.f32.mrb[5].mxu0 }
  0xff   :  { %v377_v51 = vadd.f32 %v373_v45, %v369_v46  ;;  %v370_v52 = vadd.f32 %v424_v41, %v359_v47  ;;  %v449_v53 = vadd.f32 %v448_v50, %v447_v48  ;;  %v450_v54 = vpop.f32.mrb[6].mxu0 }
 0x100   :  { %v451_v55 = vpop.f32.mrb[7].mxu0 }
 0x101   :  { %v381_v56 = vmax.f32 %v377_v51, 0.0  ;;  %v378_v57 = vadd.f32 %v374_v49, %v370_v52  ;;  %v345_v58 = vadd.f32 %v481_v34, %v449_v53  ;;  %v452_v59 = vadd.f32 %v451_v55, %v450_v54 }
 0x103   :  { %385 = vst [vmem:[%s670_s5] sm:$0xff] %v381_v56  ;;  %v382_v60 = vmax.f32 %v378_v57, 0.0  ;;  %v360_v61 = vmul.f32 %v423_v37, %v345_v58  ;;  %v348_v62 = vadd.f32 %v482_v40, %v452_v59 }
 0x105   :  { %386 = vst [vmem:[%s670_s5 + $0x8] sm:$0xff] %v382_v60  ;;  %v371_v0 = vadd.f32 %v424_v41, %v360_v61  ;;  %v361_v1 = vmul.f32 %v423_v37, %v348_v62 }
 0x107   :  { %v379_v3 = vadd.f32 %v375_v63, %v371_v0  ;;  %v372_v4 = vadd.f32 %v424_v41, %v361_v1 }
 0x109   :  { %v383_v5 = vmax.f32 %v379_v3, 0.0  ;;  %v380_v6 = vadd.f32 %v376_v2, %v372_v4 }
 0x10b   :  { %387 = vst [vmem:[%s670_s5 + $0x10] sm:$0xff] %v383_v5  ;;  %v384_v7 = vmax.f32 %v380_v6, 0.0 }
 0x10d   :  { %388 = vst [vmem:[%s670_s5 + $0x18] sm:$0xff] %v384_v7 }

// kernel: deeplabv3_forward.45
= control target key start
LH: loop header
LB: loop body
LE: loop exit
PB: predicated region body
PF: predicated region fallthrough
CT: control target
= control target key end

     0   :  { %s996_s1 = inlined_call_operand.vmem [shape: bf16[640,128], index: 1, kind: input, shape index: {}]   ;;  %s997_s0 = inlined_call_operand.vmem [shape: bf16[32,640], index: 0, kind: input, shape index: {}]   ;;  %s998_s2 = inlined_call_operand.vmem [shape: f32[1,128], index: 2, kind: input, shape index: {}]   ;;  %s999_s3 = inlined_call_operand.vmem [shape: f32[1,128], index: 3, kind: input, shape index: {}]   ;;  %s1000_s4 = inlined_call_operand.vmem [shape: f32[32,128], index: 4, kind: input, shape index: {}]   ;;  %s1001_s5 = inlined_call_operand.vmem [shape: f32[32,128], index: 5, kind: output, shape index: {}]  }
   0x1   :  { %v732_v0 = vld [vmem:[%s996_s1 + $0x40] sm:$0xff]   ;;  %v736_v4 = vld [vmem:[%s996_s1 + $0x48] sm:$0xff]   ;;  %v740_v8 = vld [vmem:[%s996_s1 + $0x50] sm:$0xff]  }
   0x2   :  { %v733_v1 = vld [vmem:[%s996_s1 + $0xc0] sm:$0xff]   ;;  %646 = vmatprep.subr.bf16.mxu0 %v732_v0  ;;  %v737_v5 = vld [vmem:[%s996_s1 + $0xc8] sm:$0xff]   ;;  %v741_v9 = vld [vmem:[%s996_s1 + $0xd0] sm:$0xff]  }
   0x3   :  { %v734_v2 = vld [vmem:[%s996_s1] sm:$0xff]   ;;  %674 = vmatprep.subr.bf16.mxu1 %v733_v1  ;;  %v738_v6 = vld [vmem:[%s996_s1 + $0x8] sm:$0xff]   ;;  %v742_v10 = vld [vmem:[%s996_s1 + $0x10] sm:$0xff]  }
   0x4   :  { %v735_v3 = vld [vmem:[%s996_s1 + $0x80] sm:$0xff]   ;;  %647 = vmatpush3.bf16.msra.mxu0 %v734_v2  ;;  %v739_v7 = vld [vmem:[%s996_s1 + $0x88] sm:$0xff]   ;;  %v743_v11 = vld [vmem:[%s996_s1 + $0x90] sm:$0xff]  }
   0x5   :  { %675 = vmatpush3.bf16.msra.mxu1 %v735_v3  ;;  %648 = vmatprep.subr.bf16.mxu0 %v736_v4  ;;  %v744_v12 = vld [vmem:[%s996_s1 + $0x58] sm:$0xff]   ;;  %v748_v16 = vld [vmem:[%s996_s1 + $0x60] sm:$0xff]   ;;  %v752_v20 = vld [vmem:[%s996_s1 + $0x68] sm:$0xff]  }
   0x6   :  { %676 = vmatprep.subr.bf16.mxu1 %v737_v5  ;;  %v745_v13 = vld [vmem:[%s996_s1 + $0xd8] sm:$0xff]   ;;  %v749_v17 = vld [vmem:[%s996_s1 + $0xe0] sm:$0xff]   ;;  %v753_v21 = vld [vmem:[%s996_s1 + $0xe8] sm:$0xff]  }
   0x7   :  { %v746_v14 = vld [vmem:[%s996_s1 + $0x18] sm:$0xff]   ;;  %v750_v18 = vld [vmem:[%s996_s1 + $0x20] sm:$0xff]   ;;  %v754_v22 = vld [vmem:[%s996_s1 + $0x28] sm:$0xff]  }
   0x8   :  { %649 = vmatpush3.bf16.msra.mxu0 %v738_v6  ;;  %v747_v15 = vld [vmem:[%s996_s1 + $0x98] sm:$0xff]   ;;  %v751_v19 = vld [vmem:[%s996_s1 + $0xa0] sm:$0xff]   ;;  %v755_v23 = vld [vmem:[%s996_s1 + $0xa8] sm:$0xff]  }
   0x9   :  { %677 = vmatpush3.bf16.msra.mxu1 %v739_v7  ;;  %650 = vmatprep.subr.bf16.mxu0 %v740_v8  ;;  %v756_v24 = vld [vmem:[%s996_s1 + $0x70] sm:$0xff]   ;;  %v760_v28 = vld [vmem:[%s996_s1 + $0x78] sm:$0xff]   ;;  %v769_v35 = vld [vmem:[%s997_s0 + $0xc] ss:$20 sps:$4 sm:$0xff]  }
   0xa   :  { %678 = vmatprep.subr.bf16.mxu1 %v741_v9  ;;  %v757_v25 = vld [vmem:[%s996_s1 + $0xf0] sm:$0xff]   ;;  %v761_v29 = vld [vmem:[%s996_s1 + $0xf8] sm:$0xff]   ;;  %v770_v36 = vld [vmem:[%s996_s1 + $0x100] sm:$0xff]   ;;  %486 = vmatprep.mubr.bf16.mxu1 %v769_v35 }
   0xb   :  { %v758_v26 = vld [vmem:[%s996_s1 + $0x30] sm:$0xff]   ;;  %v762_v30 = vld [vmem:[%s996_s1 + $0x38] sm:$0xff]   ;;  %v771_v37 = vld [vmem:[%s996_s1 + $0x108] sm:$0xff]  }
   0xc   :  { %651 = vmatpush3.bf16.msra.mxu0 %v742_v10  ;;  %v759_v27 = vld [vmem:[%s996_s1 + $0xb0] sm:$0xff]   ;;  %v763_v31 = vld [vmem:[%s996_s1 + $0xb8] sm:$0xff]   ;;  %v775_v39 = vld [vmem:[%s997_s0 + $0x2c] ss:$20 sps:$4 sm:$0xff]  }
   0xd   :  { %679 = vmatpush3.bf16.msra.mxu1 %v743_v11  ;;  %652 = vmatprep.subr.bf16.mxu0 %v744_v12  ;;  %v764_v32 = vld [vmem:[%s997_s0] ss:$20 sps:$4 sm:$0xff]   ;;  %v766_v33 = vld [vmem:[%s997_s0 + $0x4] ss:$20 sps:$4 sm:$0xff]   ;;  %v767_v34 = vld [vmem:[%s997_s0 + $0x8] ss:$20 sps:$4 sm:$0xff]  }
   0xe   :  { %680 = vmatprep.subr.bf16.mxu1 %v745_v13  ;;  %437 = vmatprep.mubr.bf16.mxu0 %v766_v33  ;;  %v772_v38 = vld [vmem:[%s996_s1 + $0x110] sm:$0xff]   ;;  %v773_v41 = vld [vmem:[%s996_s1 + $0x118] sm:$0xff]   ;;  %v774_v45 = vld [vmem:[%s996_s1 + $0x120] sm:$0xff]  }
   0xf   :  { %v777_v40 = vld [vmem:[%s997_s0 + $0x34] ss:$20 sps:$4 sm:$0xff]   ;;  %v781_v43 = vld [vmem:[%s997_s0 + $0x30] ss:$20 sps:$4 sm:$0xff]   ;;  %v783_v48 = vld [vmem:[%s996_s1 + $0x138] sm:$0xff]  }
  0x10   :  { %653 = vmatpush3.bf16.msra.mxu0 %v746_v14  ;;  %v780_v42 = vld [vmem:[%s997_s0 + $0x28] ss:$20 sps:$4 sm:$0xff]   ;;  %v784_v44 = vld [vmem:[%s997_s0 + $0x10] ss:$20 sps:$4 sm:$0xff]   ;;  %v785_v49 = vld [vmem:[%s997_s0 + $0x38] ss:$20 sps:$4 sm:$0xff]  }
  0x11   :  { %681 = vmatpush3.bf16.msra.mxu1 %v747_v15  ;;  %654 = vmatprep.subr.bf16.mxu0 %v748_v16  ;;  %v779_v46 = vld [vmem:[%s996_s1 + $0x128] sm:$0xff]   ;;  %v782_v47 = vld [vmem:[%s996_s1 + $0x130] sm:$0xff]   ;;  %v644_v15 = vld [vmem:[%s998_s2] ss:$0 sm:$0xff] }
  0x12   :  { %682 = vmatprep.subr.bf16.mxu1 %v749_v17  ;;  %v575_v35 = vld [vmem:[%s1000_s4 + $0x8] sm:$0xff] }
  0x14   :  { %655 = vmatpush3.bf16.msra.mxu0 %v750_v18  ;;  %v645_v18 = vld [vmem:[%s999_s3] ss:$0 sm:$0xff] }
  0x15   :  { %683 = vmatpush3.bf16.msra.mxu1 %v751_v19  ;;  %656 = vmatprep.subr.bf16.mxu0 %v752_v20 }
  0x16   :  { %684 = vmatprep.subr.bf16.mxu1 %v753_v21 }
  0x18   :  { %657 = vmatpush3.bf16.msra.mxu0 %v754_v22 }
  0x19   :  { %685 = vmatpush3.bf16.msra.mxu1 %v755_v23  ;;  %658 = vmatprep.subr.bf16.mxu0 %v756_v24  ;;  %v576_v24 = vld [vmem:[%s1000_s4 + $0x10] sm:$0xff] }
  0x1a   :  { %686 = vmatprep.subr.bf16.mxu1 %v757_v25 }
  0x1c   :  { %659 = vmatpush3.bf16.msra.mxu0 %v758_v26 }
  0x1d   :  { %687 = vmatpush3.bf16.msra.mxu1 %v759_v27  ;;  %660 = vmatprep.subr.bf16.mxu0 %v760_v28  ;;  %v574_v28 = vld [vmem:[%s1000_s4] sm:$0xff] }
  0x1e   :  { %688 = vmatprep.subr.bf16.mxu1 %v761_v29 }
  0x20   :  { %661 = vmatpush3.bf16.msra.mxu0 %v762_v30 }
  0x21   :  { %689 = vmatpush3.bf16.msra.mxu1 %v763_v31  ;;  %712 = vmatprep.subr.bf16.mxu0 %v770_v36  ;;  %v577_v31 = vld [vmem:[%s1000_s4 + $0x18] sm:$0xff] }
  0x23   :  { %438 = vmatmul.mubr.bf16.vlgmr.msra.gmra.mrb[0].mxu0 %v764_v32 }
  0x24   :  { %487 = vmatmul.mubr.bf16.vlgmr.msra.gmra.mrb[0].mxu1 %v767_v34  ;;  %713 = vmatpush3.bf16.msra.mxu0 %v770_v36 }
  0x25   :  { %714 = vmatprep.subr.bf16.mxu0 %v771_v37  ;;  %445 = vmatprep.mubr.bf16.mxu0 %v775_v39 }
  0x26   :  { %494 = vmatprep.mubr.bf16.mxu1 %v777_v40 }
  0x28   :  { %715 = vmatpush3.bf16.msra.mxu0 %v771_v37 }
  0x29   :  { %716 = vmatprep.subr.bf16.mxu0 %v772_v38 }
  0x2b   :  { %446 = vmatmul.mubr.bf16.gmra.mrb[4].mxu0 %v780_v42 }
  0x2c   :  { %495 = vmatmul.mubr.bf16.gmra.mrb[4].mxu1 %v781_v43  ;;  %717 = vmatpush3.bf16.msra.mxu0 %v772_v38 }
  0x2d   :  { %718 = vmatprep.subr.bf16.mxu0 %v773_v41  ;;  %728 = vmatprep.mubr.bf16.mxu0 %v784_v44 }
  0x30   :  { %719 = vmatpush3.bf16.msra.mxu0 %v773_v41 }
  0x31   :  { %720 = vmatprep.subr.bf16.mxu0 %v774_v45 }
  0x34   :  { %721 = vmatpush3.bf16.msra.mxu0 %v774_v45 }
  0x35   :  { %722 = vmatprep.subr.bf16.mxu0 %v779_v46 }
  0x38   :  { %723 = vmatpush3.bf16.msra.mxu0 %v779_v46 }
  0x39   :  { %724 = vmatprep.subr.bf16.mxu0 %v782_v47 }
  0x3c   :  { %725 = vmatpush3.bf16.msra.mxu0 %v782_v47 }
  0x3d   :  { %726 = vmatprep.subr.bf16.mxu0 %v783_v48 }
  0x40   :  { %727 = vmatpush3.bf16.msra.mxu0 %v783_v48 }
  0x43   :  { %729 = vmatmul.mubr.bf16.vlgmr.msra.gmra.mrb[8].mxu0 %v785_v49 }
  0xf6   :  { %v662_v50 = vpop.f32.mrb[0].mxu0 }
  0xf7   :  { %v690_v51 = vpop.f32.mrb[0].mxu1  ;;  %v663_v52 = vpop.f32.mrb[1].mxu0 }
  0xf8   :  { %v664_v53 = vadd.f32 %v663_v52, %v662_v50  ;;  %v691_v54 = vpop.f32.mrb[1].mxu1  ;;  %v665_v55 = vpop.f32.mrb[2].mxu0 }
  0xf9   :  { %v692_v56 = vadd.f32 %v691_v54, %v690_v51  ;;  %v693_v57 = vpop.f32.mrb[2].mxu1  ;;  %v666_v58 = vpop.f32.mrb[3].mxu0 }
  0xfa   :  { %v667_v59 = vadd.f32 %v666_v58, %v665_v55  ;;  %v694_v60 = vpop.f32.mrb[3].mxu1 }
  0xfb   :  { %v695_v61 = vadd.f32 %v694_v60, %v693_v57  ;;  %v489_v62 = vadd.f32 %v692_v56, %v664_v53 }
  0xfd   :  { %v492_v63 = vadd.f32 %v695_v61, %v667_v59 }
  0xfe   :  { %v668_v0 = vpop.f32.mrb[4].mxu0 }
  0xff   :  { %v696_v1 = vpop.f32.mrb[4].mxu1  ;;  %v669_v2 = vpop.f32.mrb[5].mxu0 }
 0x100   :  { %v670_v3 = vadd.f32 %v669_v2, %v668_v0  ;;  %v697_v4 = vpop.f32.mrb[5].mxu1  ;;  %v671_v5 = vpop.f32.mrb[6].mxu0 }
 0x101   :  { %v698_v6 = vadd.f32 %v697_v4, %v696_v1  ;;  %v699_v7 = vpop.f32.mrb[6].mxu1  ;;  %v672_v8 = vpop.f32.mrb[7].mxu0 }
 0x102   :  { %v673_v9 = vadd.f32 %v672_v8, %v671_v5  ;;  %v700_v10 = vpop.f32.mrb[7].mxu1 }
 0x103   :  { %v701_v11 = vadd.f32 %v700_v10, %v699_v7  ;;  %v497_v12 = vadd.f32 %v698_v6, %v670_v3 }
 0x105   :  { %v500_v13 = vadd.f32 %v701_v11, %v673_v9 }
 0x116   :  { %v730_v14 = vpop.f32.mrb[8].mxu0 }
 0x117   :  { %v546_v16 = vadd.f32 %v730_v14, %v497_v12  ;;  %v537_v17 = vpop.f32.mrb[9].mxu0 }
 0x118   :  { %v538_v19 = vadd.f32 %v537_v17, %v489_v62  ;;  %v731_v20 = vpop.f32.mrb[10].mxu0 }
 0x119   :  { %v561_v21 = vmul.f32 %v644_v15, %v546_v16  ;;  %v549_v22 = vadd.f32 %v731_v20, %v500_v13  ;;  %v540_v23 = vpop.f32.mrb[11].mxu0 }
 0x11a   :  { %v559_v25 = vmul.f32 %v644_v15, %v538_v19  ;;  %v541_v26 = vadd.f32 %v540_v23, %v492_v63 }
 0x11b   :  { %v572_v27 = vadd.f32 %v645_v18, %v561_v21  ;;  %v562_v29 = vmul.f32 %v644_v15, %v549_v22 }
 0x11c   :  { %v570_v30 = vadd.f32 %v645_v18, %v559_v25  ;;  %v560_v32 = vmul.f32 %v644_v15, %v541_v26 }
 0x11d   :  { %v580_v33 = vadd.f32 %v576_v24, %v572_v27  ;;  %v573_v34 = vadd.f32 %v645_v18, %v562_v29 }
 0x11e   :  { %v578_v36 = vadd.f32 %v574_v28, %v570_v30  ;;  %v571_v37 = vadd.f32 %v645_v18, %v560_v32 }
 0x11f   :  { %v584_v38 = vmax.f32 %v580_v33, 0.0  ;;  %v581_v39 = vadd.f32 %v577_v31, %v573_v34 }
 0x120   :  { %v582_v40 = vmax.f32 %v578_v36, 0.0  ;;  %v579_v41 = vadd.f32 %v575_v35, %v571_v37 }
 0x121   :  { %588 = vst [vmem:[%s1001_s5 + $0x10] sm:$0xff] %v584_v38  ;;  %v585_v42 = vmax.f32 %v581_v39, 0.0 }
 0x122   :  { %586 = vst [vmem:[%s1001_s5] sm:$0xff] %v582_v40  ;;  %v583_v43 = vmax.f32 %v579_v41, 0.0 }
 0x123   :  { %589 = vst [vmem:[%s1001_s5 + $0x18] sm:$0xff] %v585_v42 }
 0x124   :  { %587 = vst [vmem:[%s1001_s5 + $0x8] sm:$0xff] %v583_v43 }

// kernel: deeplabv3_forward.46
= control target key start
LH: loop header
LB: loop body
LE: loop exit
PB: predicated region body
PF: predicated region fallthrough
CT: control target
= control target key end

     0   :  { %s968_s1 = inlined_call_operand.vmem [shape: bf16[640,128], index: 1, kind: input, shape index: {}]   ;;  %s969_s0 = inlined_call_operand.vmem [shape: bf16[32,640], index: 0, kind: input, shape index: {}]   ;;  %s970_s2 = inlined_call_operand.vmem [shape: f32[1,128], index: 2, kind: input, shape index: {}]   ;;  %s971_s3 = inlined_call_operand.vmem [shape: f32[1,128], index: 3, kind: input, shape index: {}]   ;;  %s972_s4 = inlined_call_operand.vmem [shape: f32[32,128], index: 4, kind: output, shape index: {}]  }
   0x1   :  { %v721_v0 = vld [vmem:[%s968_s1 + $0x40] sm:$0xff]   ;;  %v725_v4 = vld [vmem:[%s968_s1 + $0x48] sm:$0xff]   ;;  %v729_v8 = vld [vmem:[%s968_s1 + $0x50] sm:$0xff]  }
   0x2   :  { %v722_v1 = vld [vmem:[%s968_s1 + $0xc0] sm:$0xff]   ;;  %635 = vmatprep.subr.bf16.mxu0 %v721_v0  ;;  %v726_v5 = vld [vmem:[%s968_s1 + $0xc8] sm:$0xff]   ;;  %v730_v9 = vld [vmem:[%s968_s1 + $0xd0] sm:$0xff]  }
   0x3   :  { %v723_v2 = vld [vmem:[%s968_s1] sm:$0xff]   ;;  %663 = vmatprep.subr.bf16.mxu1 %v722_v1  ;;  %v727_v6 = vld [vmem:[%s968_s1 + $0x8] sm:$0xff]   ;;  %v731_v10 = vld [vmem:[%s968_s1 + $0x10] sm:$0xff]  }
   0x4   :  { %v724_v3 = vld [vmem:[%s968_s1 + $0x80] sm:$0xff]   ;;  %636 = vmatpush3.bf16.msra.mxu0 %v723_v2  ;;  %v728_v7 = vld [vmem:[%s968_s1 + $0x88] sm:$0xff]   ;;  %v732_v11 = vld [vmem:[%s968_s1 + $0x90] sm:$0xff]  }
   0x5   :  { %664 = vmatpush3.bf16.msra.mxu1 %v724_v3  ;;  %637 = vmatprep.subr.bf16.mxu0 %v725_v4  ;;  %v733_v12 = vld [vmem:[%s968_s1 + $0x58] sm:$0xff]   ;;  %v737_v16 = vld [vmem:[%s968_s1 + $0x60] sm:$0xff]   ;;  %v741_v20 = vld [vmem:[%s968_s1 + $0x68] sm:$0xff]  }
   0x6   :  { %665 = vmatprep.subr.bf16.mxu1 %v726_v5  ;;  %v734_v13 = vld [vmem:[%s968_s1 + $0xd8] sm:$0xff]   ;;  %v738_v17 = vld [vmem:[%s968_s1 + $0xe0] sm:$0xff]   ;;  %v742_v21 = vld [vmem:[%s968_s1 + $0xe8] sm:$0xff]  }
   0x7   :  { %v735_v14 = vld [vmem:[%s968_s1 + $0x18] sm:$0xff]   ;;  %v739_v18 = vld [vmem:[%s968_s1 + $0x20] sm:$0xff]   ;;  %v743_v22 = vld [vmem:[%s968_s1 + $0x28] sm:$0xff]  }
   0x8   :  { %638 = vmatpush3.bf16.msra.mxu0 %v727_v6  ;;  %v736_v15 = vld [vmem:[%s968_s1 + $0x98] sm:$0xff]   ;;  %v740_v19 = vld [vmem:[%s968_s1 + $0xa0] sm:$0xff]   ;;  %v744_v23 = vld [vmem:[%s968_s1 + $0xa8] sm:$0xff]  }
   0x9   :  { %666 = vmatpush3.bf16.msra.mxu1 %v728_v7  ;;  %639 = vmatprep.subr.bf16.mxu0 %v729_v8  ;;  %v745_v24 = vld [vmem:[%s968_s1 + $0x70] sm:$0xff]   ;;  %v749_v28 = vld [vmem:[%s968_s1 + $0x78] sm:$0xff]   ;;  %v758_v35 = vld [vmem:[%s969_s0 + $0xc] ss:$20 sps:$4 sm:$0xff]  }
   0xa   :  { %667 = vmatprep.subr.bf16.mxu1 %v730_v9  ;;  %v746_v25 = vld [vmem:[%s968_s1 + $0xf0] sm:$0xff]   ;;  %v750_v29 = vld [vmem:[%s968_s1 + $0xf8] sm:$0xff]   ;;  %v759_v36 = vld [vmem:[%s968_s1 + $0x100] sm:$0xff]   ;;  %483 = vmatprep.mubr.bf16.mxu1 %v758_v35 }
   0xb   :  { %v747_v26 = vld [vmem:[%s968_s1 + $0x30] sm:$0xff]   ;;  %v751_v30 = vld [vmem:[%s968_s1 + $0x38] sm:$0xff]   ;;  %v760_v37 = vld [vmem:[%s968_s1 + $0x108] sm:$0xff]  }
   0xc   :  { %640 = vmatpush3.bf16.msra.mxu0 %v731_v10  ;;  %v748_v27 = vld [vmem:[%s968_s1 + $0xb0] sm:$0xff]   ;;  %v752_v31 = vld [vmem:[%s968_s1 + $0xb8] sm:$0xff]   ;;  %v764_v39 = vld [vmem:[%s969_s0 + $0x2c] ss:$20 sps:$4 sm:$0xff]  }
   0xd   :  { %668 = vmatpush3.bf16.msra.mxu1 %v732_v11  ;;  %641 = vmatprep.subr.bf16.mxu0 %v733_v12  ;;  %v753_v32 = vld [vmem:[%s969_s0] ss:$20 sps:$4 sm:$0xff]   ;;  %v755_v33 = vld [vmem:[%s969_s0 + $0x4] ss:$20 sps:$4 sm:$0xff]   ;;  %v756_v34 = vld [vmem:[%s969_s0 + $0x8] ss:$20 sps:$4 sm:$0xff]  }
   0xe   :  { %669 = vmatprep.subr.bf16.mxu1 %v734_v13  ;;  %434 = vmatprep.mubr.bf16.mxu0 %v755_v33  ;;  %v761_v38 = vld [vmem:[%s968_s1 + $0x110] sm:$0xff]   ;;  %v762_v41 = vld [vmem:[%s968_s1 + $0x118] sm:$0xff]   ;;  %v763_v45 = vld [vmem:[%s968_s1 + $0x120] sm:$0xff]  }
   0xf   :  { %v766_v40 = vld [vmem:[%s969_s0 + $0x34] ss:$20 sps:$4 sm:$0xff]   ;;  %v770_v43 = vld [vmem:[%s969_s0 + $0x30] ss:$20 sps:$4 sm:$0xff]   ;;  %v772_v48 = vld [vmem:[%s968_s1 + $0x138] sm:$0xff]  }
  0x10   :  { %642 = vmatpush3.bf16.msra.mxu0 %v735_v14  ;;  %v769_v42 = vld [vmem:[%s969_s0 + $0x28] ss:$20 sps:$4 sm:$0xff]   ;;  %v773_v44 = vld [vmem:[%s969_s0 + $0x10] ss:$20 sps:$4 sm:$0xff]   ;;  %v774_v49 = vld [vmem:[%s969_s0 + $0x38] ss:$20 sps:$4 sm:$0xff]  }
  0x11   :  { %670 = vmatpush3.bf16.msra.mxu1 %v736_v15  ;;  %643 = vmatprep.subr.bf16.mxu0 %v737_v16  ;;  %v768_v46 = vld [vmem:[%s968_s1 + $0x128] sm:$0xff]   ;;  %v771_v47 = vld [vmem:[%s968_s1 + $0x130] sm:$0xff]   ;;  %v633_v15 = vld [vmem:[%s970_s2] ss:$0 sm:$0xff] }
  0x12   :  { %671 = vmatprep.subr.bf16.mxu1 %v738_v17 }
  0x14   :  { %644 = vmatpush3.bf16.msra.mxu0 %v739_v18  ;;  %v634_v18 = vld [vmem:[%s971_s3] ss:$0 sm:$0xff] }
  0x15   :  { %672 = vmatpush3.bf16.msra.mxu1 %v740_v19  ;;  %645 = vmatprep.subr.bf16.mxu0 %v741_v20 }
  0x16   :  { %673 = vmatprep.subr.bf16.mxu1 %v742_v21 }
  0x18   :  { %646 = vmatpush3.bf16.msra.mxu0 %v743_v22 }
  0x19   :  { %674 = vmatpush3.bf16.msra.mxu1 %v744_v23  ;;  %647 = vmatprep.subr.bf16.mxu0 %v745_v24 }
  0x1a   :  { %675 = vmatprep.subr.bf16.mxu1 %v746_v25 }
  0x1c   :  { %648 = vmatpush3.bf16.msra.mxu0 %v747_v26 }
  0x1d   :  { %676 = vmatpush3.bf16.msra.mxu1 %v748_v27  ;;  %649 = vmatprep.subr.bf16.mxu0 %v749_v28 }
  0x1e   :  { %677 = vmatprep.subr.bf16.mxu1 %v750_v29 }
  0x20   :  { %650 = vmatpush3.bf16.msra.mxu0 %v751_v30 }
  0x21   :  { %678 = vmatpush3.bf16.msra.mxu1 %v752_v31  ;;  %701 = vmatprep.subr.bf16.mxu0 %v759_v36 }
  0x23   :  { %435 = vmatmul.mubr.bf16.vlgmr.msra.gmra.mrb[0].mxu0 %v753_v32 }
  0x24   :  { %484 = vmatmul.mubr.bf16.vlgmr.msra.gmra.mrb[0].mxu1 %v756_v34  ;;  %702 = vmatpush3.bf16.msra.mxu0 %v759_v36 }
  0x25   :  { %703 = vmatprep.subr.bf16.mxu0 %v760_v37  ;;  %442 = vmatprep.mubr.bf16.mxu0 %v764_v39 }
  0x26   :  { %491 = vmatprep.mubr.bf16.mxu1 %v766_v40 }
  0x28   :  { %704 = vmatpush3.bf16.msra.mxu0 %v760_v37 }
  0x29   :  { %705 = vmatprep.subr.bf16.mxu0 %v761_v38 }
  0x2b   :  { %443 = vmatmul.mubr.bf16.gmra.mrb[4].mxu0 %v769_v42 }
  0x2c   :  { %492 = vmatmul.mubr.bf16.gmra.mrb[4].mxu1 %v770_v43  ;;  %706 = vmatpush3.bf16.msra.mxu0 %v761_v38 }
  0x2d   :  { %707 = vmatprep.subr.bf16.mxu0 %v762_v41  ;;  %717 = vmatprep.mubr.bf16.mxu0 %v773_v44 }
  0x30   :  { %708 = vmatpush3.bf16.msra.mxu0 %v762_v41 }
  0x31   :  { %709 = vmatprep.subr.bf16.mxu0 %v763_v45 }
  0x34   :  { %710 = vmatpush3.bf16.msra.mxu0 %v763_v45 }
  0x35   :  { %711 = vmatprep.subr.bf16.mxu0 %v768_v46 }
  0x38   :  { %712 = vmatpush3.bf16.msra.mxu0 %v768_v46 }
  0x39   :  { %713 = vmatprep.subr.bf16.mxu0 %v771_v47 }
  0x3c   :  { %714 = vmatpush3.bf16.msra.mxu0 %v771_v47 }
  0x3d   :  { %715 = vmatprep.subr.bf16.mxu0 %v772_v48 }
  0x40   :  { %716 = vmatpush3.bf16.msra.mxu0 %v772_v48 }
  0x43   :  { %718 = vmatmul.mubr.bf16.vlgmr.msra.gmra.mrb[8].mxu0 %v774_v49 }
  0xf6   :  { %v651_v50 = vpop.f32.mrb[0].mxu0 }
  0xf7   :  { %v679_v51 = vpop.f32.mrb[0].mxu1  ;;  %v652_v52 = vpop.f32.mrb[1].mxu0 }
  0xf8   :  { %v653_v53 = vadd.f32 %v652_v52, %v651_v50  ;;  %v680_v54 = vpop.f32.mrb[1].mxu1  ;;  %v654_v55 = vpop.f32.mrb[2].mxu0 }
  0xf9   :  { %v681_v56 = vadd.f32 %v680_v54, %v679_v51  ;;  %v682_v57 = vpop.f32.mrb[2].mxu1  ;;  %v655_v58 = vpop.f32.mrb[3].mxu0 }
  0xfa   :  { %v656_v59 = vadd.f32 %v655_v58, %v654_v55  ;;  %v683_v60 = vpop.f32.mrb[3].mxu1 }
  0xfb   :  { %v684_v61 = vadd.f32 %v683_v60, %v682_v57  ;;  %v486_v62 = vadd.f32 %v681_v56, %v653_v53 }
  0xfd   :  { %v489_v63 = vadd.f32 %v684_v61, %v656_v59 }
  0xfe   :  { %v657_v0 = vpop.f32.mrb[4].mxu0 }
  0xff   :  { %v685_v1 = vpop.f32.mrb[4].mxu1  ;;  %v658_v2 = vpop.f32.mrb[5].mxu0 }
 0x100   :  { %v659_v3 = vadd.f32 %v658_v2, %v657_v0  ;;  %v686_v4 = vpop.f32.mrb[5].mxu1  ;;  %v660_v5 = vpop.f32.mrb[6].mxu0 }
 0x101   :  { %v687_v6 = vadd.f32 %v686_v4, %v685_v1  ;;  %v688_v7 = vpop.f32.mrb[6].mxu1  ;;  %v661_v8 = vpop.f32.mrb[7].mxu0 }
 0x102   :  { %v662_v9 = vadd.f32 %v661_v8, %v660_v5  ;;  %v689_v10 = vpop.f32.mrb[7].mxu1 }
 0x103   :  { %v690_v11 = vadd.f32 %v689_v10, %v688_v7  ;;  %v494_v12 = vadd.f32 %v687_v6, %v659_v3 }
 0x105   :  { %v497_v13 = vadd.f32 %v690_v11, %v662_v9 }
 0x116   :  { %v719_v14 = vpop.f32.mrb[8].mxu0 }
 0x117   :  { %v543_v16 = vadd.f32 %v719_v14, %v494_v12  ;;  %v534_v17 = vpop.f32.mrb[9].mxu0 }
 0x118   :  { %v535_v19 = vadd.f32 %v534_v17, %v486_v62  ;;  %v720_v20 = vpop.f32.mrb[10].mxu0 }
 0x119   :  { %v558_v21 = vmul.f32 %v633_v15, %v543_v16  ;;  %v546_v22 = vadd.f32 %v720_v20, %v497_v13  ;;  %v537_v23 = vpop.f32.mrb[11].mxu0 }
 0x11a   :  { %v556_v24 = vmul.f32 %v633_v15, %v535_v19  ;;  %v538_v25 = vadd.f32 %v537_v23, %v489_v63 }
 0x11b   :  { %v569_v26 = vadd.f32 %v634_v18, %v558_v21  ;;  %v559_v27 = vmul.f32 %v633_v15, %v546_v22 }
 0x11c   :  { %v567_v28 = vadd.f32 %v634_v18, %v556_v24  ;;  %v557_v29 = vmul.f32 %v633_v15, %v538_v25 }
 0x11d   :  { %v573_v30 = vmax.f32 %v569_v26, 0.0  ;;  %v570_v31 = vadd.f32 %v634_v18, %v559_v27 }
 0x11e   :  { %v571_v32 = vmax.f32 %v567_v28, 0.0  ;;  %v568_v33 = vadd.f32 %v634_v18, %v557_v29 }
 0x11f   :  { %577 = vst [vmem:[%s972_s4 + $0x10] sm:$0xff] %v573_v30  ;;  %v574_v34 = vmax.f32 %v570_v31, 0.0 }
 0x120   :  { %575 = vst [vmem:[%s972_s4] sm:$0xff] %v571_v32  ;;  %v572_v35 = vmax.f32 %v568_v33, 0.0 }
 0x121   :  { %578 = vst [vmem:[%s972_s4 + $0x18] sm:$0xff] %v574_v34 }
 0x122   :  { %576 = vst [vmem:[%s972_s4 + $0x8] sm:$0xff] %v572_v35 }

// kernel: deeplabv3_forward.52
= control target key start
LH: loop header
LB: loop body
LE: loop exit
PB: predicated region body
PF: predicated region fallthrough
CT: control target
= control target key end

     0   :  { %v194_v0 = vmov 0.0|0.0   ;;  %vm195_vm0 = vmmov 0   ;;  %v196_v4 = vmov 0.0   ;;  %vm21_vm1 = vcmask 523264   ;;  %s272_s1 = inlined_call_operand.vmem [shape: f32[64,128], index: 1, kind: input, shape index: {}]   ;;  %s273_s0 = inlined_call_operand.vmem [shape: f32[2,16,64], index: 0, kind: input, shape index: {}]   ;;  %s274_s2 = inlined_call_operand.vmem [shape: f32[1,128], index: 2, kind: input, shape index: {}]   ;;  %s275_s3 = inlined_call_operand.vmem [shape: f32[1,128], index: 3, kind: input, shape index: {}]   ;;  %s276_s4 = inlined_call_operand.vmem [shape: f32[2,128], index: 4, kind: output, shape index: {}]  }
   0x1   :  { %179 = vmatprep.subr.bf16.mxu0 %v194_v0  ;;  %v42_v1 = vld [vmem:[%s272_s1] sm:$0xff]  ;;  %v43_v2 = vld [vmem:[%s272_s1 + $0x8] sm:$0xff]  ;;  %v44_v3 = vld [vmem:[%s272_s1 + $0x10] sm:$0xff]  ;;  %176 = vmatprep.mubr.msk.f32.mxu0 %vm195_vm0, %v196_v4  ;;  %vm52_vm2 = vcmask 1041409  }
   0x2   :  { %v180_v5 = vpack.c.bf16 %v43_v2, %v42_v1  ;;  %v45_v6 = vld [vmem:[%s272_s1 + $0x18] sm:$0xff]  ;;  %v17_v7 = vld [vmem:[%s273_s0] sm:$0xff]  ;;  %v18_v9 = vld [vmem:[%s273_s0 + $0x8] sm:$0xff] }
   0x3   :  { %v183_v8 = vpack.c.bf16 %v45_v6, %v44_v3  ;;  %v19_v10 = vld [vmem:[%s273_s0 + $0x10] sm:$0xff]  ;;  %v20_v11 = vld [vmem:[%s273_s0 + $0x18] sm:$0xff]  ;;  %v22_v12 = vsel %vm21_vm1, %v17_v7, 0.0  ;;  %v46_v13 = vld [vmem:[%s272_s1 + $0x20] sm:$0xff]  ;;  %v23_v15 = vsel %vm21_vm1, %v18_v9, 0.0 }
   0x4   :  { %181 = vmatpush3.bf16.msra.mxu0 %v180_v5  ;;  %v47_v14 = vld [vmem:[%s272_s1 + $0x28] sm:$0xff]  ;;  %v31_v16 = vsel %vm21_vm1, %v19_v10, 0.0  ;;  %v32_v17 = vsel %vm21_vm1, %v20_v11, 0.0  ;;  %v24_v18 = vadd.f32 %v23_v15, %v22_v12  ;;  %v48_v23 = vld [vmem:[%s272_s1 + $0x30] sm:$0xff]  ;;  %v49_v24 = vld [vmem:[%s272_s1 + $0x38] sm:$0xff] }
   0x5   :  { %182 = vmatprep.subr.bf16.mxu0 %v194_v0  ;;  %v33_v19 = vadd.f32 %v32_v17, %v31_v16  ;;  %v186_v20 = vpack.c.bf16 %v47_v14, %v46_v13  ;;  %v189_v27 = vpack.c.bf16 %v49_v24, %v48_v23  ;;  %v149_v39 = vld [vmem:[%s274_s2] ss:$0 sm:$0xff] }
   0x6   :  { %v25_v21 = vrot.slane %v24_v18, 4  ;;  %v150_v41 = vld [vmem:[%s275_s3] ss:$0 sm:$0xff] }
   0x7   :  { %v34_v22 = vrot.slane %v33_v19, 4 }
   0x8   :  { %184 = vmatpush3.bf16.msra.mxu0 %v183_v8  ;;  %v26_v25 = vadd.f32 %v25_v21, %v24_v18 }
   0x9   :  { %185 = vmatprep.subr.bf16.mxu0 %v194_v0  ;;  %v35_v26 = vadd.f32 %v34_v22, %v33_v19 }
   0xa   :  { %v27_v28 = vrot.slane %v26_v25, 2 }
   0xb   :  { %v36_v29 = vrot.slane %v35_v26, 2 }
   0xc   :  { %187 = vmatpush3.bf16.msra.mxu0 %v186_v20  ;;  %v28_v30 = vadd.f32 %v27_v28, %v26_v25 }
   0xd   :  { %188 = vmatprep.subr.bf16.mxu0 %v194_v0  ;;  %v37_v31 = vadd.f32 %v36_v29, %v35_v26 }
   0xe   :  { %v29_v32 = vrot.slane %v28_v30, 1 }
   0xf   :  { %v38_v33 = vrot.slane %v37_v31, 1 }
  0x10   :  { %190 = vmatpush3.bf16.msra.mxu0 %v189_v27  ;;  %v30_v34 = vadd.f32 %v29_v32, %v28_v30 }
  0x11   :  { %v39_v35 = vadd.f32 %v38_v33, %v37_v31 }
  0x12   :  { %v40_v36 = vmul.f32 0.0625, %v30_v34 }
  0x13   :  { %v41_v37 = vmul.f32 0.0625, %v39_v35 }
  0x15   :  { %v53_v38 = vsel %vm52_vm2, %v41_v37, %v40_v36 }
  0x16   :  { %177 = vmatmul.mubr.msk.f32.vlgmr.msra.gmra.mrb[0].mxu0 %vm21_vm1, %v53_v38 }
  0xe9   :  { %v122_v40 = vpop.f32.mrb[0].mxu0 }
  0xea   :  { %v133_v42 = vmul.f32 %v149_v39, %v122_v40  ;;  %v178_v43 = vpop.f32.mrb[1].mxu0 }
  0xec   :  { %v141_v44 = vadd.f32 %v150_v41, %v133_v42 }
  0xee   :  { %v142_v45 = vmax.f32 %v141_v44, 0.0 }
  0xf0   :  { %143 = vst [vmem:[%s276_s4] sm:$0x3] %v142_v45 }

// kernel: deeplabv3_forward.54
= control target key start
LH: loop header
LB: loop body
LE: loop exit
PB: predicated region body
PF: predicated region fallthrough
CT: control target
= control target key end

     0   :  { %vm31_vm0 = vcmask 1043456   ;;  %v148_v1 = vmov 0.0   ;;  %vm18_vm1 = vcmask 31744   ;;  %vm126_vm2 = vcmask 261120   ;;  %s207_s1 = inlined_call_operand.vmem [shape: f32[4,160], index: 1, kind: input, shape index: {}]   ;;  %s208_s0 = inlined_call_operand.vmem [shape: f32[32,4], index: 0, kind: input, shape index: {}]   ;;  %s209_s2 = inlined_call_operand.vmem [shape: f32[32,160], index: 2, kind: output, shape index: {}]  }
   0x1   :  { %v15_v0 = vld [vmem:[%s207_s1] sm:$0xff]  ;;  %100 = vmatprep.mubr.f32.mxu0 %v148_v1  ;;  %112 = vmatprep.mubr.f32.mxu1 %v148_v1  ;;  %v13_v4 = vld [vmem:[%s208_s0 + $0x10] sm:$0xff]  ;;  %v12_v5 = vld [vmem:[%s208_s0 + $0x8] sm:$0xff] }
   0x2   :  { %v17_v2 = vcombine.high %v15_v0, %v15_v0  ;;  %v11_v3 = vld [vmem:[%s208_s0] sm:$0xff]  ;;  %v14_v6 = vld [vmem:[%s208_s0 + $0x18] sm:$0xff] }
   0x4   :  { %138 = vmatprep.subr.msk.mxu0 %vm31_vm0, %v17_v2  ;;  %144 = vmatprep.subr.msk.mxu1 %vm31_vm0, %v17_v2 }
   0x5   :  { %139 = vmatpush1.msk.msra.mxu0 %vm31_vm0, %v15_v0  ;;  %145 = vmatpush1.msk.msra.mxu1 %vm31_vm0, %v15_v0 }
   0x6   :  { %140 = vmatmul.mubr.msk.f32.vlgmr.msra.gmra.mrb[0].mxu0 %vm18_vm1, %v11_v3  ;;  %142 = vmatmul.mubr.msk.f32.vlgmr.msra.gmra.mrb[0].mxu1 %vm18_vm1, %v13_v4 }
   0x7   :  { %106 = vmatprep.mubr.f32.mxu0 %v148_v1  ;;  %118 = vmatprep.mubr.f32.mxu1 %v148_v1 }
   0xa   :  { %141 = vmatmul.mubr.msk.f32.gmra.mrb[2].mxu0 %vm18_vm1, %v12_v5  ;;  %143 = vmatmul.mubr.msk.f32.gmra.mrb[2].mxu1 %vm18_vm1, %v14_v6 }
  0xd9   :  { %v102_v7 = vpop.f32.mrb[0].mxu0  ;;  %v114_v8 = vpop.f32.mrb[0].mxu1 }
  0xda   :  { %125 = vst [vmem:[%s209_s2] sm:$0xff] %v102_v7  ;;  %130 = vst [vmem:[%s209_s2 + $0x20] sm:$0xff] %v114_v8  ;;  %v104_v9 = vpop.f32.mrb[1].mxu0  ;;  %v116_v10 = vpop.f32.mrb[1].mxu1 }
  0xdb   :  { %127 = vst.msk [vmem:[%s209_s2 + $0x8] sm:$0xff] %vm126_vm2, %v104_v9  ;;  %131 = vst.msk [vmem:[%s209_s2 + $0x28] sm:$0xff] %vm126_vm2, %v116_v10 }
  0xdd   :  { %v108_v11 = vpop.f32.mrb[2].mxu0  ;;  %v120_v12 = vpop.f32.mrb[2].mxu1 }
  0xde   :  { %128 = vst [vmem:[%s209_s2 + $0x10] sm:$0xff] %v108_v11  ;;  %132 = vst [vmem:[%s209_s2 + $0x30] sm:$0xff] %v120_v12  ;;  %v110_v13 = vpop.f32.mrb[3].mxu0  ;;  %v122_v14 = vpop.f32.mrb[3].mxu1 }
  0xdf   :  { %129 = vst.msk [vmem:[%s209_s2 + $0x18] sm:$0xff] %vm126_vm2, %v110_v13  ;;  %133 = vst.msk [vmem:[%s209_s2 + $0x38] sm:$0xff] %vm126_vm2, %v122_v14 }

// kernel: deeplabv3_forward.53
= control target key start
LH: loop header
LB: loop body
LE: loop exit
PB: predicated region body
PF: predicated region fallthrough
CT: control target
= control target key end

     0   :  { %s721_s1 = inlined_call_operand.vmem [shape: bf16[256,128], index: 1, kind: input, shape index: {}]   ;;  %s722_s0 = inlined_call_operand.vmem [shape: bf16[32,256], index: 0, kind: input, shape index: {}]   ;;  %s723_s4 = inlined_call_operand.vmem [shape: f32[128,128], index: 4, kind: input, shape index: {}]   ;;  %s724_s2 = inlined_call_operand.vmem [shape: f32[1,128], index: 2, kind: input, shape index: {}]   ;;  %s725_s3 = inlined_call_operand.vmem [shape: f32[1,128], index: 3, kind: input, shape index: {}]   ;;  %s726_s5 = inlined_call_operand.vmem [shape: f32[1,128], index: 5, kind: input, shape index: {}]   ;;  %s727_s6 = inlined_call_operand.vmem [shape: f32[1,128], index: 6, kind: input, shape index: {}]   ;;  %s728_s7 = inlined_call_operand.vmem [shape: f32[32,128], index: 7, kind: output, shape index: {}]  }
   0x1   :  { %v527_v0 = vld [vmem:[%s721_s1 + $0x40] sm:$0xff]   ;;  %v529_v2 = vld [vmem:[%s721_s1 + $0x48] sm:$0xff]   ;;  %v531_v4 = vld [vmem:[%s721_s1 + $0x50] sm:$0xff]  }
   0x2   :  { %v528_v1 = vld [vmem:[%s721_s1] sm:$0xff]   ;;  %409 = vmatprep.subr.bf16.mxu0 %v527_v0  ;;  %v530_v3 = vld [vmem:[%s721_s1 + $0x8] sm:$0xff]   ;;  %v532_v5 = vld [vmem:[%s721_s1 + $0x10] sm:$0xff]  }
   0x3   :  { %410 = vmatpush3.bf16.msra.mxu0 %v528_v1  ;;  %v533_v6 = vld [vmem:[%s721_s1 + $0x58] sm:$0xff]   ;;  %v535_v8 = vld [vmem:[%s721_s1 + $0x60] sm:$0xff]   ;;  %v537_v10 = vld [vmem:[%s721_s1 + $0x68] sm:$0xff]  }
   0x4   :  { %411 = vmatprep.subr.bf16.mxu0 %v529_v2  ;;  %v534_v7 = vld [vmem:[%s721_s1 + $0x18] sm:$0xff]   ;;  %v536_v9 = vld [vmem:[%s721_s1 + $0x20] sm:$0xff]   ;;  %v538_v12 = vld [vmem:[%s721_s1 + $0x28] sm:$0xff]  }
   0x5   :  { %v545_v11 = vld [vmem:[%s722_s0 + $0x4] ss:$8 sps:$4 sm:$0xff]   ;;  %v256_v15 = vld [vmem:[%s723_s4 + $0x10] sm:$0xff]  ;;  %v257_v16 = vld [vmem:[%s723_s4 + $0x18] sm:$0xff] }
   0x6   :  { %v254_v13 = vld [vmem:[%s723_s4] sm:$0xff]  ;;  %211 = vmatprep.mubr.bf16.mxu0 %v545_v11  ;;  %v255_v14 = vld [vmem:[%s723_s4 + $0x8] sm:$0xff]  ;;  %v539_v17 = vld [vmem:[%s721_s1 + $0x70] sm:$0xff]   ;;  %v499_v19 = vpack.c.bf16 %v257_v16, %v256_v15 }
   0x7   :  { %412 = vmatpush3.bf16.msra.mxu0 %v530_v3  ;;  %v495_v18 = vpack.c.bf16 %v255_v14, %v254_v13  ;;  %v258_v20 = vld [vmem:[%s723_s4 + $0x20] sm:$0xff]  ;;  %v259_v21 = vld [vmem:[%s723_s4 + $0x28] sm:$0xff]  ;;  %v540_v22 = vld [vmem:[%s721_s1 + $0x30] sm:$0xff]  }
   0x8   :  { %413 = vmatprep.subr.bf16.mxu0 %v531_v4  ;;  %v541_v23 = vld [vmem:[%s721_s1 + $0x78] sm:$0xff]   ;;  %v503_v24 = vpack.c.bf16 %v259_v21, %v258_v20  ;;  %v260_v25 = vld [vmem:[%s723_s4 + $0x30] sm:$0xff]  ;;  %v262_v29 = vld [vmem:[%s723_s4 + $0x40] sm:$0xff] }
   0x9   :  { %496 = vmatprep.subr.bf16.mxu1 %v495_v18  ;;  %v261_v26 = vld [vmem:[%s723_s4 + $0x38] sm:$0xff]  ;;  %v263_v30 = vld [vmem:[%s723_s4 + $0x48] sm:$0xff]  ;;  %v264_v35 = vld [vmem:[%s723_s4 + $0x50] sm:$0xff] }
   0xa   :  { %498 = vmatpush3.bf16.msra.mxu1 %v495_v18  ;;  %v542_v27 = vld [vmem:[%s721_s1 + $0x38] sm:$0xff]   ;;  %v507_v28 = vpack.c.bf16 %v261_v26, %v260_v25  ;;  %v543_v31 = vld [vmem:[%s722_s0] ss:$8 sps:$4 sm:$0xff]   ;;  %v511_v33 = vpack.c.bf16 %v263_v30, %v262_v29  ;;  %v268_v41 = vld [vmem:[%s723_s4 + $0x70] sm:$0xff] }
   0xb   :  { %414 = vmatpush3.bf16.msra.mxu0 %v532_v5  ;;  %500 = vmatprep.subr.bf16.mxu1 %v499_v19  ;;  %v546_v32 = vld [vmem:[%s722_s0 + $0x14] ss:$8 sps:$4 sm:$0xff]   ;;  %v548_v34 = vld [vmem:[%s722_s0 + $0x10] ss:$8 sps:$4 sm:$0xff]   ;;  %v266_v38 = vld [vmem:[%s723_s4 + $0x60] sm:$0xff] }
   0xc   :  { %415 = vmatprep.subr.bf16.mxu0 %v533_v6  ;;  %v265_v36 = vld [vmem:[%s723_s4 + $0x58] sm:$0xff]  ;;  %v267_v39 = vld [vmem:[%s723_s4 + $0x68] sm:$0xff]  ;;  %v405_v46 = vld [vmem:[%s724_s2] ss:$0 sm:$0xff] }
   0xd   :  { %v515_v37 = vpack.c.bf16 %v265_v36, %v264_v35  ;;  %v519_v40 = vpack.c.bf16 %v267_v39, %v266_v38  ;;  %v269_v42 = vld [vmem:[%s723_s4 + $0x78] sm:$0xff]  ;;  %v406_v50 = vld [vmem:[%s725_s3] ss:$0 sm:$0xff] }
   0xe   :  { %502 = vmatpush3.bf16.msra.mxu1 %v499_v19  ;;  %v523_v43 = vpack.c.bf16 %v269_v42, %v268_v41  ;;  %v407_v6 = vld [vmem:[%s726_s5] ss:$0 sm:$0xff] }
   0xf   :  { %416 = vmatpush3.bf16.msra.mxu0 %v534_v7  ;;  %504 = vmatprep.subr.bf16.mxu1 %v503_v24 }
  0x10   :  { %417 = vmatprep.subr.bf16.mxu0 %v535_v8  ;;  %v408_v8 = vld [vmem:[%s727_s6] ss:$0 sm:$0xff] }
  0x12   :  { %506 = vmatpush3.bf16.msra.mxu1 %v503_v24 }
  0x13   :  { %418 = vmatpush3.bf16.msra.mxu0 %v536_v9  ;;  %508 = vmatprep.subr.bf16.mxu1 %v507_v28 }
  0x14   :  { %419 = vmatprep.subr.bf16.mxu0 %v537_v10 }
  0x16   :  { %510 = vmatpush3.bf16.msra.mxu1 %v507_v28 }
  0x17   :  { %420 = vmatpush3.bf16.msra.mxu0 %v538_v12  ;;  %512 = vmatprep.subr.bf16.mxu1 %v511_v33 }
  0x18   :  { %421 = vmatprep.subr.bf16.mxu0 %v539_v17 }
  0x1a   :  { %514 = vmatpush3.bf16.msra.mxu1 %v511_v33 }
  0x1b   :  { %422 = vmatpush3.bf16.msra.mxu0 %v540_v22  ;;  %516 = vmatprep.subr.bf16.mxu1 %v515_v37 }
  0x1c   :  { %423 = vmatprep.subr.bf16.mxu0 %v541_v23 }
  0x1e   :  { %518 = vmatpush3.bf16.msra.mxu1 %v515_v37 }
  0x1f   :  { %424 = vmatpush3.bf16.msra.mxu0 %v542_v27  ;;  %520 = vmatprep.subr.bf16.mxu1 %v519_v40 }
  0x22   :  { %212 = vmatmul.mubr.bf16.vlgmr.msra.gmra.mrb[0].mxu0 %v543_v31  ;;  %522 = vmatpush3.bf16.msra.mxu1 %v519_v40 }
  0x23   :  { %219 = vmatprep.mubr.bf16.mxu0 %v546_v32  ;;  %524 = vmatprep.subr.bf16.mxu1 %v523_v43 }
  0x26   :  { %526 = vmatpush3.bf16.msra.mxu1 %v523_v43 }
  0x2a   :  { %220 = vmatmul.mubr.bf16.gmra.mrb[4].mxu0 %v548_v34 }
  0xf5   :  { %v425_v44 = vpop.f32.mrb[0].mxu0 }
  0xf6   :  { %v426_v45 = vpop.f32.mrb[1].mxu0 }
  0xf7   :  { %v427_v47 = vadd.f32 %v426_v45, %v425_v44  ;;  %v428_v48 = vpop.f32.mrb[2].mxu0 }
  0xf8   :  { %v429_v49 = vpop.f32.mrb[3].mxu0 }
  0xf9   :  { %v430_v51 = vadd.f32 %v429_v49, %v428_v48  ;;  %v235_v52 = vmul.f32 %v427_v47, %v405_v46 }
  0xfb   :  { %v236_v53 = vmul.f32 %v430_v51, %v405_v46  ;;  %v246_v54 = vadd.f32 %v406_v50, %v235_v52 }
  0xfd   :  { %v431_v55 = vpop.f32.mrb[4].mxu0  ;;  %v250_v56 = vmax.f32 %v246_v54, 0.0  ;;  %v247_v57 = vadd.f32 %v406_v50, %v236_v53 }
  0xfe   :  { %v432_v58 = vpop.f32.mrb[5].mxu0 }
  0xff   :  { %v433_v59 = vadd.f32 %v432_v58, %v431_v55  ;;  %v434_v60 = vpop.f32.mrb[6].mxu0  ;;  %489 = vmatprep.mubr.f32.mxu1 %v250_v56  ;;  %v251_v61 = vmax.f32 %v247_v57, 0.0 }
 0x100   :  { %v435_v62 = vpop.f32.mrb[7].mxu0 }
 0x101   :  { %v237_v63 = vmul.f32 %v433_v59, %v405_v46  ;;  %v436_v0 = vadd.f32 %v435_v62, %v434_v60  ;;  %490 = vmatmul.mubr.f32.vlgmr.msra.gmra.mrb[0].mxu1 %v251_v61 }
 0x103   :  { %v238_v1 = vmul.f32 %v436_v0, %v405_v46  ;;  %v248_v2 = vadd.f32 %v406_v50, %v237_v63 }
 0x105   :  { %v252_v3 = vmax.f32 %v248_v2, 0.0  ;;  %v249_v4 = vadd.f32 %v406_v50, %v238_v1 }
 0x107   :  { %492 = vmatprep.mubr.f32.mxu1 %v252_v3  ;;  %v253_v5 = vmax.f32 %v249_v4, 0.0 }
 0x109   :  { %493 = vmatmul.mubr.f32.gmra.mrb[2].mxu1 %v253_v5 }
 0x1d4   :  { %v491_v7 = vpop.f32.mrb[0].mxu1 }
 0x1d5   :  { %v363_v9 = vmul.f32 %v491_v7, %v407_v6  ;;  %v336_v10 = vpop.f32.mrb[1].mxu1 }
 0x1d6   :  { %v362_v11 = vmul.f32 %v407_v6, %v336_v10 }
 0x1d7   :  { %v374_v12 = vadd.f32 %v408_v8, %v363_v9 }
 0x1d8   :  { %v373_v13 = vadd.f32 %v408_v8, %v362_v11 }
 0x1d9   :  { %378 = vst [vmem:[%s728_s7 + $0x8] sm:$0xff] %v374_v12 }
 0x1da   :  { %377 = vst [vmem:[%s728_s7] sm:$0xff] %v373_v13 }
 0x1dc   :  { %v494_v14 = vpop.f32.mrb[2].mxu1 }
 0x1dd   :  { %v365_v15 = vmul.f32 %v494_v14, %v407_v6  ;;  %v346_v16 = vpop.f32.mrb[3].mxu1 }
 0x1de   :  { %v364_v17 = vmul.f32 %v407_v6, %v346_v16 }
 0x1df   :  { %v376_v18 = vadd.f32 %v408_v8, %v365_v15 }
 0x1e0   :  { %v375_v19 = vadd.f32 %v408_v8, %v364_v17 }
 0x1e1   :  { %380 = vst [vmem:[%s728_s7 + $0x18] sm:$0xff] %v376_v18 }
 0x1e2   :  { %379 = vst [vmem:[%s728_s7 + $0x10] sm:$0xff] %v375_v19 }

// kernel: deeplabv3_forward.55
= control target key start
LH: loop header
LB: loop body
LE: loop exit
PB: predicated region body
PF: predicated region fallthrough
CT: control target
= control target key end

     0   :  { %vm653_vm0 = vcmask 1043456   ;;  %vm172_vm1 = vcmask 31744   ;;  %s3390_s1 = inlined_call_operand.vmem [shape: f32[4,128], index: 1, kind: input, shape index: {}]   ;;  %s3391_s0 = inlined_call_operand.vmem [shape: f32[1280,4], index: 0, kind: input, shape index: {}]   ;;  %s3392_s2 = inlined_call_operand.vmem [shape: f32[1280,128], index: 2, kind: output, shape index: {}]  }
   0x1   :  { %v171_v0 = vld [vmem:[%s3390_s1] sm:$0xf]  ;;  %v12_v3 = vld [vmem:[%s3391_s0 + $0x8] sm:$0xff]  ;;  %v13_v5 = vld [vmem:[%s3391_s0 + $0x10] sm:$0xff] }
   0x2   :  { %v11_v1 = vld [vmem:[%s3391_s0] sm:$0xff]  ;;  %2008 = vmatprep.subr.msk.mxu0 %vm653_vm0, %v171_v0  ;;  %2250 = vmatprep.subr.msk.mxu1 %vm653_vm0, %v171_v0  ;;  %v92_v4 = vld [vmem:[%s3391_s0 + $0x288] sm:$0xff]  ;;  %v93_v6 = vld [vmem:[%s3391_s0 + $0x290] sm:$0xff] }
   0x3   :  { %v91_v2 = vld [vmem:[%s3391_s0 + $0x280] sm:$0xff]  ;;  %2009 = vmatpush3.msk.msra.mxu0 %vm653_vm0, %v171_v0  ;;  %2251 = vmatpush3.msk.msra.mxu1 %vm653_vm0, %v171_v0  ;;  %v14_v7 = vld [vmem:[%s3391_s0 + $0x18] sm:$0xff]  ;;  %v16_v11 = vld [vmem:[%s3391_s0 + $0x28] sm:$0xff] }
   0x4   :  { %2010 = vmatprep.mubr.msk.f32.mxu0 %vm172_vm1, %v11_v1  ;;  %2130 = vmatprep.mubr.msk.f32.mxu1 %vm172_vm1, %v91_v2  ;;  %v94_v8 = vld [vmem:[%s3391_s0 + $0x298] sm:$0xff]  ;;  %v15_v9 = vld [vmem:[%s3391_s0 + $0x20] sm:$0xff]  ;;  %v96_v12 = vld [vmem:[%s3391_s0 + $0x2a8] sm:$0xff] }
   0x5   :  { %2011 = vmatmul.mubr.msk.f32.vlgmr.msra.gmra.mrb[0].mxu0 %vm172_vm1, %v12_v3  ;;  %2131 = vmatmul.mubr.msk.f32.vlgmr.msra.gmra.mrb[0].mxu1 %vm172_vm1, %v92_v4  ;;  %v95_v10 = vld [vmem:[%s3391_s0 + $0x2a0] sm:$0xff]  ;;  %v17_v13 = vld [vmem:[%s3391_s0 + $0x30] sm:$0xff]  ;;  %v18_v15 = vld [vmem:[%s3391_s0 + $0x38] sm:$0xff] }
   0x6   :  { %2013 = vmatprep.mubr.msk.f32.mxu0 %vm172_vm1, %v13_v5  ;;  %2133 = vmatprep.mubr.msk.f32.mxu1 %vm172_vm1, %v93_v6  ;;  %v97_v14 = vld [vmem:[%s3391_s0 + $0x2b0] sm:$0xff]  ;;  %v98_v16 = vld [vmem:[%s3391_s0 + $0x2b8] sm:$0xff]  ;;  %v19_v17 = vld [vmem:[%s3391_s0 + $0x40] sm:$0xff] }
   0x7   :  { %v99_v18 = vld [vmem:[%s3391_s0 + $0x2c0] sm:$0xff]  ;;  %v20_v19 = vld [vmem:[%s3391_s0 + $0x48] sm:$0xff]  ;;  %v21_v21 = vld [vmem:[%s3391_s0 + $0x50] sm:$0xff] }
   0x8   :  { %v100_v20 = vld [vmem:[%s3391_s0 + $0x2c8] sm:$0xff]  ;;  %v101_v22 = vld [vmem:[%s3391_s0 + $0x2d0] sm:$0xff]  ;;  %v22_v23 = vld [vmem:[%s3391_s0 + $0x58] sm:$0xff] }
   0x9   :  { %2014 = vmatmul.mubr.msk.f32.gmra.mrb[2].mxu0 %vm172_vm1, %v14_v7  ;;  %2134 = vmatmul.mubr.msk.f32.gmra.mrb[2].mxu1 %vm172_vm1, %v94_v8  ;;  %v102_v24 = vld [vmem:[%s3391_s0 + $0x2d8] sm:$0xff]  ;;  %v23_v25 = vld [vmem:[%s3391_s0 + $0x60] sm:$0xff]  ;;  %v24_v27 = vld [vmem:[%s3391_s0 + $0x68] sm:$0xff] }
   0xa   :  { %2016 = vmatprep.mubr.msk.f32.mxu0 %vm172_vm1, %v15_v9  ;;  %2136 = vmatprep.mubr.msk.f32.mxu1 %vm172_vm1, %v95_v10  ;;  %v103_v26 = vld [vmem:[%s3391_s0 + $0x2e0] sm:$0xff]  ;;  %v104_v28 = vld [vmem:[%s3391_s0 + $0x2e8] sm:$0xff]  ;;  %v25_v29 = vld [vmem:[%s3391_s0 + $0x70] sm:$0xff] }
   0xb   :  { %v105_v30 = vld [vmem:[%s3391_s0 + $0x2f0] sm:$0xff]  ;;  %v26_v31 = vld [vmem:[%s3391_s0 + $0x78] sm:$0xff]  ;;  %v27_v33 = vld [vmem:[%s3391_s0 + $0x80] sm:$0xff] }
   0xc   :  { %v106_v32 = vld [vmem:[%s3391_s0 + $0x2f8] sm:$0xff]  ;;  %v107_v34 = vld [vmem:[%s3391_s0 + $0x300] sm:$0xff]  ;;  %v28_v35 = vld [vmem:[%s3391_s0 + $0x88] sm:$0xff] }
   0xd   :  { %2017 = vmatmul.mubr.msk.f32.gmra.mrb[4].mxu0 %vm172_vm1, %v16_v11  ;;  %2137 = vmatmul.mubr.msk.f32.gmra.mrb[4].mxu1 %vm172_vm1, %v96_v12  ;;  %v108_v36 = vld [vmem:[%s3391_s0 + $0x308] sm:$0xff]  ;;  %v29_v37 = vld [vmem:[%s3391_s0 + $0x90] sm:$0xff]  ;;  %v30_v39 = vld [vmem:[%s3391_s0 + $0x98] sm:$0xff] }
   0xe   :  { %2019 = vmatprep.mubr.msk.f32.mxu0 %vm172_vm1, %v17_v13  ;;  %2139 = vmatprep.mubr.msk.f32.mxu1 %vm172_vm1, %v97_v14  ;;  %v109_v38 = vld [vmem:[%s3391_s0 + $0x310] sm:$0xff]  ;;  %v110_v40 = vld [vmem:[%s3391_s0 + $0x318] sm:$0xff]  ;;  %v31_v41 = vld [vmem:[%s3391_s0 + $0xa0] sm:$0xff] }
   0xf   :  { %v111_v42 = vld [vmem:[%s3391_s0 + $0x320] sm:$0xff]  ;;  %v32_v43 = vld [vmem:[%s3391_s0 + $0xa8] sm:$0xff]  ;;  %v33_v45 = vld [vmem:[%s3391_s0 + $0xb0] sm:$0xff] }
  0x10   :  { %v112_v44 = vld [vmem:[%s3391_s0 + $0x328] sm:$0xff]  ;;  %v113_v46 = vld [vmem:[%s3391_s0 + $0x330] sm:$0xff]  ;;  %v34_v47 = vld [vmem:[%s3391_s0 + $0xb8] sm:$0xff] }
  0x11   :  { %2020 = vmatmul.mubr.msk.f32.gmra.mrb[6].mxu0 %vm172_vm1, %v18_v15  ;;  %2140 = vmatmul.mubr.msk.f32.gmra.mrb[6].mxu1 %vm172_vm1, %v98_v16  ;;  %v114_v48 = vld [vmem:[%s3391_s0 + $0x338] sm:$0xff]  ;;  %v35_v49 = vld [vmem:[%s3391_s0 + $0xc0] sm:$0xff]  ;;  %v36_v51 = vld [vmem:[%s3391_s0 + $0xc8] sm:$0xff] }
  0x12   :  { %2022 = vmatprep.mubr.msk.f32.mxu0 %vm172_vm1, %v19_v17  ;;  %2142 = vmatprep.mubr.msk.f32.mxu1 %vm172_vm1, %v99_v18  ;;  %v115_v50 = vld [vmem:[%s3391_s0 + $0x340] sm:$0xff]  ;;  %v116_v52 = vld [vmem:[%s3391_s0 + $0x348] sm:$0xff]  ;;  %v37_v53 = vld [vmem:[%s3391_s0 + $0xd0] sm:$0xff] }
  0x13   :  { %v117_v54 = vld [vmem:[%s3391_s0 + $0x350] sm:$0xff]  ;;  %v38_v55 = vld [vmem:[%s3391_s0 + $0xd8] sm:$0xff]  ;;  %v39_v57 = vld [vmem:[%s3391_s0 + $0xe0] sm:$0xff] }
  0x14   :  { %v118_v56 = vld [vmem:[%s3391_s0 + $0x358] sm:$0xff]  ;;  %v119_v58 = vld [vmem:[%s3391_s0 + $0x360] sm:$0xff]  ;;  %v40_v59 = vld [vmem:[%s3391_s0 + $0xe8] sm:$0xff] }
  0x15   :  { %2023 = vmatmul.mubr.msk.f32.gmra.mrb[8].mxu0 %vm172_vm1, %v20_v19  ;;  %2143 = vmatmul.mubr.msk.f32.gmra.mrb[8].mxu1 %vm172_vm1, %v100_v20  ;;  %v120_v60 = vld [vmem:[%s3391_s0 + $0x368] sm:$0xff]  ;;  %v41_v61 = vld [vmem:[%s3391_s0 + $0xf0] sm:$0xff]  ;;  %v42_v63 = vld [vmem:[%s3391_s0 + $0xf8] sm:$0xff] }
  0x16   :  { %2025 = vmatprep.mubr.msk.f32.mxu0 %vm172_vm1, %v21_v21  ;;  %2145 = vmatprep.mubr.msk.f32.mxu1 %vm172_vm1, %v101_v22  ;;  %v121_v62 = vld [vmem:[%s3391_s0 + $0x370] sm:$0xff]  ;;  %v122_v0 = vld [vmem:[%s3391_s0 + $0x378] sm:$0xff]  ;;  %v43_v1 = vld [vmem:[%s3391_s0 + $0x100] sm:$0xff] }
  0x17   :  { %v123_v2 = vld [vmem:[%s3391_s0 + $0x380] sm:$0xff]  ;;  %v44_v3 = vld [vmem:[%s3391_s0 + $0x108] sm:$0xff]  ;;  %v45_v5 = vld [vmem:[%s3391_s0 + $0x110] sm:$0xff] }
  0x18   :  { %v124_v4 = vld [vmem:[%s3391_s0 + $0x388] sm:$0xff]  ;;  %v125_v6 = vld [vmem:[%s3391_s0 + $0x390] sm:$0xff]  ;;  %v46_v7 = vld [vmem:[%s3391_s0 + $0x118] sm:$0xff] }
  0x19   :  { %2026 = vmatmul.mubr.msk.f32.gmra.mrb[10].mxu0 %vm172_vm1, %v22_v23  ;;  %2146 = vmatmul.mubr.msk.f32.gmra.mrb[10].mxu1 %vm172_vm1, %v102_v24  ;;  %v126_v8 = vld [vmem:[%s3391_s0 + $0x398] sm:$0xff]  ;;  %v47_v9 = vld [vmem:[%s3391_s0 + $0x120] sm:$0xff]  ;;  %v48_v11 = vld [vmem:[%s3391_s0 + $0x128] sm:$0xff] }
  0x1a   :  { %2028 = vmatprep.mubr.msk.f32.mxu0 %vm172_vm1, %v23_v25  ;;  %2148 = vmatprep.mubr.msk.f32.mxu1 %vm172_vm1, %v103_v26  ;;  %v127_v10 = vld [vmem:[%s3391_s0 + $0x3a0] sm:$0xff]  ;;  %v128_v12 = vld [vmem:[%s3391_s0 + $0x3a8] sm:$0xff]  ;;  %v49_v13 = vld [vmem:[%s3391_s0 + $0x130] sm:$0xff] }
  0x1b   :  { %v129_v14 = vld [vmem:[%s3391_s0 + $0x3b0] sm:$0xff]  ;;  %v50_v15 = vld [vmem:[%s3391_s0 + $0x138] sm:$0xff]  ;;  %v51_v17 = vld [vmem:[%s3391_s0 + $0x140] sm:$0xff] }
  0x1c   :  { %v130_v16 = vld [vmem:[%s3391_s0 + $0x3b8] sm:$0xff]  ;;  %v131_v18 = vld [vmem:[%s3391_s0 + $0x3c0] sm:$0xff]  ;;  %v52_v19 = vld [vmem:[%s3391_s0 + $0x148] sm:$0xff] }
  0x1d   :  { %2029 = vmatmul.mubr.msk.f32.gmra.mrb[12].mxu0 %vm172_vm1, %v24_v27  ;;  %2149 = vmatmul.mubr.msk.f32.gmra.mrb[12].mxu1 %vm172_vm1, %v104_v28  ;;  %v132_v20 = vld [vmem:[%s3391_s0 + $0x3c8] sm:$0xff]  ;;  %v53_v21 = vld [vmem:[%s3391_s0 + $0x150] sm:$0xff]  ;;  %v54_v23 = vld [vmem:[%s3391_s0 + $0x158] sm:$0xff] }
  0x1e   :  { %2031 = vmatprep.mubr.msk.f32.mxu0 %vm172_vm1, %v25_v29  ;;  %2151 = vmatprep.mubr.msk.f32.mxu1 %vm172_vm1, %v105_v30  ;;  %v133_v22 = vld [vmem:[%s3391_s0 + $0x3d0] sm:$0xff]  ;;  %v134_v24 = vld [vmem:[%s3391_s0 + $0x3d8] sm:$0xff]  ;;  %v55_v25 = vld [vmem:[%s3391_s0 + $0x160] sm:$0xff] }
  0x1f   :  { %v135_v26 = vld [vmem:[%s3391_s0 + $0x3e0] sm:$0xff]  ;;  %v56_v27 = vld [vmem:[%s3391_s0 + $0x168] sm:$0xff]  ;;  %v57_v29 = vld [vmem:[%s3391_s0 + $0x170] sm:$0xff] }
  0x20   :  { %v136_v28 = vld [vmem:[%s3391_s0 + $0x3e8] sm:$0xff]  ;;  %v137_v30 = vld [vmem:[%s3391_s0 + $0x3f0] sm:$0xff] }
  0x21   :  { %2032 = vmatmul.mubr.msk.f32.gmra.mrb[14].mxu0 %vm172_vm1, %v26_v31  ;;  %2152 = vmatmul.mubr.msk.f32.gmra.mrb[14].mxu1 %vm172_vm1, %v106_v32  ;;  %v58_v31 = vld [vmem:[%s3391_s0 + $0x178] sm:$0xff] }
  0x22   :  { %2034 = vmatprep.mubr.msk.f32.mxu0 %vm172_vm1, %v27_v33  ;;  %2154 = vmatprep.mubr.msk.f32.mxu1 %vm172_vm1, %v107_v34  ;;  %v138_v32 = vld [vmem:[%s3391_s0 + $0x3f8] sm:$0xff]  ;;  %v59_v33 = vld [vmem:[%s3391_s0 + $0x180] sm:$0xff] }
  0x23   :  { %v139_v34 = vld [vmem:[%s3391_s0 + $0x400] sm:$0xff] }
  0x25   :  { %2035 = vmatmul.mubr.msk.f32.gmra.mrb[16].mxu0 %vm172_vm1, %v28_v35  ;;  %2155 = vmatmul.mubr.msk.f32.gmra.mrb[16].mxu1 %vm172_vm1, %v108_v36  ;;  %v60_v35 = vld [vmem:[%s3391_s0 + $0x188] sm:$0xff] }
  0x26   :  { %2037 = vmatprep.mubr.msk.f32.mxu0 %vm172_vm1, %v29_v37  ;;  %2157 = vmatprep.mubr.msk.f32.mxu1 %vm172_vm1, %v109_v38  ;;  %v140_v36 = vld [vmem:[%s3391_s0 + $0x408] sm:$0xff]  ;;  %v61_v37 = vld [vmem:[%s3391_s0 + $0x190] sm:$0xff] }
  0x27   :  { %v141_v38 = vld [vmem:[%s3391_s0 + $0x410] sm:$0xff] }
  0x29   :  { %2038 = vmatmul.mubr.msk.f32.gmra.mrb[18].mxu0 %vm172_vm1, %v30_v39  ;;  %2158 = vmatmul.mubr.msk.f32.gmra.mrb[18].mxu1 %vm172_vm1, %v110_v40  ;;  %v62_v39 = vld [vmem:[%s3391_s0 + $0x198] sm:$0xff] }
  0x2a   :  { %2040 = vmatprep.mubr.msk.f32.mxu0 %vm172_vm1, %v31_v41  ;;  %2160 = vmatprep.mubr.msk.f32.mxu1 %vm172_vm1, %v111_v42  ;;  %v142_v40 = vld [vmem:[%s3391_s0 + $0x418] sm:$0xff]  ;;  %v63_v41 = vld [vmem:[%s3391_s0 + $0x1a0] sm:$0xff] }
  0x2b   :  { %v143_v42 = vld [vmem:[%s3391_s0 + $0x420] sm:$0xff] }
  0x2d   :  { %2041 = vmatmul.mubr.msk.f32.gmra.mrb[20].mxu0 %vm172_vm1, %v32_v43  ;;  %2161 = vmatmul.mubr.msk.f32.gmra.mrb[20].mxu1 %vm172_vm1, %v112_v44  ;;  %v64_v43 = vld [vmem:[%s3391_s0 + $0x1a8] sm:$0xff] }
  0x2e   :  { %2043 = vmatprep.mubr.msk.f32.mxu0 %vm172_vm1, %v33_v45  ;;  %2163 = vmatprep.mubr.msk.f32.mxu1 %vm172_vm1, %v113_v46  ;;  %v144_v44 = vld [vmem:[%s3391_s0 + $0x428] sm:$0xff]  ;;  %v65_v45 = vld [vmem:[%s3391_s0 + $0x1b0] sm:$0xff] }
  0x2f   :  { %v145_v46 = vld [vmem:[%s3391_s0 + $0x430] sm:$0xff] }
  0x31   :  { %2044 = vmatmul.mubr.msk.f32.gmra.mrb[22].mxu0 %vm172_vm1, %v34_v47  ;;  %2164 = vmatmul.mubr.msk.f32.gmra.mrb[22].mxu1 %vm172_vm1, %v114_v48  ;;  %v66_v47 = vld [vmem:[%s3391_s0 + $0x1b8] sm:$0xff] }
  0x32   :  { %2046 = vmatprep.mubr.msk.f32.mxu0 %vm172_vm1, %v35_v49  ;;  %2166 = vmatprep.mubr.msk.f32.mxu1 %vm172_vm1, %v115_v50  ;;  %v146_v48 = vld [vmem:[%s3391_s0 + $0x438] sm:$0xff]  ;;  %v67_v49 = vld [vmem:[%s3391_s0 + $0x1c0] sm:$0xff] }
  0x33   :  { %v147_v50 = vld [vmem:[%s3391_s0 + $0x440] sm:$0xff] }
  0x35   :  { %2047 = vmatmul.mubr.msk.f32.gmra.mrb[24].mxu0 %vm172_vm1, %v36_v51  ;;  %2167 = vmatmul.mubr.msk.f32.gmra.mrb[24].mxu1 %vm172_vm1, %v116_v52  ;;  %v68_v51 = vld [vmem:[%s3391_s0 + $0x1c8] sm:$0xff] }
  0x36   :  { %2049 = vmatprep.mubr.msk.f32.mxu0 %vm172_vm1, %v37_v53  ;;  %2169 = vmatprep.mubr.msk.f32.mxu1 %vm172_vm1, %v117_v54  ;;  %v148_v52 = vld [vmem:[%s3391_s0 + $0x448] sm:$0xff]  ;;  %v69_v53 = vld [vmem:[%s3391_s0 + $0x1d0] sm:$0xff] }
  0x37   :  { %v149_v54 = vld [vmem:[%s3391_s0 + $0x450] sm:$0xff] }
  0x39   :  { %2050 = vmatmul.mubr.msk.f32.gmra.mrb[26].mxu0 %vm172_vm1, %v38_v55  ;;  %2170 = vmatmul.mubr.msk.f32.gmra.mrb[26].mxu1 %vm172_vm1, %v118_v56  ;;  %v70_v55 = vld [vmem:[%s3391_s0 + $0x1d8] sm:$0xff] }
  0x3a   :  { %2052 = vmatprep.mubr.msk.f32.mxu0 %vm172_vm1, %v39_v57  ;;  %2172 = vmatprep.mubr.msk.f32.mxu1 %vm172_vm1, %v119_v58  ;;  %v150_v56 = vld [vmem:[%s3391_s0 + $0x458] sm:$0xff]  ;;  %v71_v57 = vld [vmem:[%s3391_s0 + $0x1e0] sm:$0xff] }
  0x3b   :  { %v151_v58 = vld [vmem:[%s3391_s0 + $0x460] sm:$0xff] }
  0x3d   :  { %2053 = vmatmul.mubr.msk.f32.gmra.mrb[28].mxu0 %vm172_vm1, %v40_v59  ;;  %2173 = vmatmul.mubr.msk.f32.gmra.mrb[28].mxu1 %vm172_vm1, %v120_v60  ;;  %v72_v59 = vld [vmem:[%s3391_s0 + $0x1e8] sm:$0xff] }
  0x3e   :  { %2055 = vmatprep.mubr.msk.f32.mxu0 %vm172_vm1, %v41_v61  ;;  %2175 = vmatprep.mubr.msk.f32.mxu1 %vm172_vm1, %v121_v62  ;;  %v152_v60 = vld [vmem:[%s3391_s0 + $0x468] sm:$0xff]  ;;  %v73_v61 = vld [vmem:[%s3391_s0 + $0x1f0] sm:$0xff] }
  0x3f   :  { %v153_v62 = vld [vmem:[%s3391_s0 + $0x470] sm:$0xff] }
  0x41   :  { %2056 = vmatmul.mubr.msk.f32.gmra.mrb[30].mxu0 %vm172_vm1, %v42_v63  ;;  %2176 = vmatmul.mubr.msk.f32.gmra.mrb[30].mxu1 %vm172_vm1, %v122_v0  ;;  %v74_v63 = vld [vmem:[%s3391_s0 + $0x1f8] sm:$0xff] }
  0x42   :  { %2058 = vmatprep.mubr.msk.f32.mxu0 %vm172_vm1, %v43_v1  ;;  %2178 = vmatprep.mubr.msk.f32.mxu1 %vm172_vm1, %v123_v2  ;;  %v154_v0 = vld [vmem:[%s3391_s0 + $0x478] sm:$0xff]  ;;  %v75_v1 = vld [vmem:[%s3391_s0 + $0x200] sm:$0xff] }
  0x43   :  { %v155_v2 = vld [vmem:[%s3391_s0 + $0x480] sm:$0xff] }
  0x45   :  { %2059 = vmatmul.mubr.msk.f32.gmra.mrb[32].mxu0 %vm172_vm1, %v44_v3  ;;  %2179 = vmatmul.mubr.msk.f32.gmra.mrb[32].mxu1 %vm172_vm1, %v124_v4  ;;  %v76_v3 = vld [vmem:[%s3391_s0 + $0x208] sm:$0xff] }
  0x46   :  { %2061 = vmatprep.mubr.msk.f32.mxu0 %vm172_vm1, %v45_v5  ;;  %2181 = vmatprep.mubr.msk.f32.mxu1 %vm172_vm1, %v125_v6  ;;  %v156_v4 = vld [vmem:[%s3391_s0 + $0x488] sm:$0xff]  ;;  %v77_v5 = vld [vmem:[%s3391_s0 + $0x210] sm:$0xff] }
  0x47   :  { %v157_v6 = vld [vmem:[%s3391_s0 + $0x490] sm:$0xff] }
  0x49   :  { %2062 = vmatmul.mubr.msk.f32.gmra.mrb[34].mxu0 %vm172_vm1, %v46_v7  ;;  %2182 = vmatmul.mubr.msk.f32.gmra.mrb[34].mxu1 %vm172_vm1, %v126_v8  ;;  %v78_v7 = vld [vmem:[%s3391_s0 + $0x218] sm:$0xff] }
  0x4a   :  { %2064 = vmatprep.mubr.msk.f32.mxu0 %vm172_vm1, %v47_v9  ;;  %2184 = vmatprep.mubr.msk.f32.mxu1 %vm172_vm1, %v127_v10  ;;  %v158_v8 = vld [vmem:[%s3391_s0 + $0x498] sm:$0xff]  ;;  %v79_v9 = vld [vmem:[%s3391_s0 + $0x220] sm:$0xff] }
  0x4b   :  { %v159_v10 = vld [vmem:[%s3391_s0 + $0x4a0] sm:$0xff] }
  0x4d   :  { %2065 = vmatmul.mubr.msk.f32.gmra.mrb[36].mxu0 %vm172_vm1, %v48_v11  ;;  %2185 = vmatmul.mubr.msk.f32.gmra.mrb[36].mxu1 %vm172_vm1, %v128_v12  ;;  %v80_v11 = vld [vmem:[%s3391_s0 + $0x228] sm:$0xff] }
  0x4e   :  { %2067 = vmatprep.mubr.msk.f32.mxu0 %vm172_vm1, %v49_v13  ;;  %2187 = vmatprep.mubr.msk.f32.mxu1 %vm172_vm1, %v129_v14  ;;  %v160_v12 = vld [vmem:[%s3391_s0 + $0x4a8] sm:$0xff]  ;;  %v81_v13 = vld [vmem:[%s3391_s0 + $0x230] sm:$0xff] }
  0x4f   :  { %v161_v14 = vld [vmem:[%s3391_s0 + $0x4b0] sm:$0xff] }
  0x51   :  { %2068 = vmatmul.mubr.msk.f32.gmra.mrb[38].mxu0 %vm172_vm1, %v50_v15  ;;  %2188 = vmatmul.mubr.msk.f32.gmra.mrb[38].mxu1 %vm172_vm1, %v130_v16  ;;  %v82_v15 = vld [vmem:[%s3391_s0 + $0x238] sm:$0xff] }
  0x52   :  { %2070 = vmatprep.mubr.msk.f32.mxu0 %vm172_vm1, %v51_v17  ;;  %2190 = vmatprep.mubr.msk.f32.mxu1 %vm172_vm1, %v131_v18  ;;  %v162_v16 = vld [vmem:[%s3391_s0 + $0x4b8] sm:$0xff]  ;;  %v83_v17 = vld [vmem:[%s3391_s0 + $0x240] sm:$0xff] }
  0x53   :  { %v163_v18 = vld [vmem:[%s3391_s0 + $0x4c0] sm:$0xff] }
  0x55   :  { %2071 = vmatmul.mubr.msk.f32.gmra.mrb[40].mxu0 %vm172_vm1, %v52_v19  ;;  %2191 = vmatmul.mubr.msk.f32.gmra.mrb[40].mxu1 %vm172_vm1, %v132_v20  ;;  %v84_v19 = vld [vmem:[%s3391_s0 + $0x248] sm:$0xff] }
  0x56   :  { %2073 = vmatprep.mubr.msk.f32.mxu0 %vm172_vm1, %v53_v21  ;;  %2193 = vmatprep.mubr.msk.f32.mxu1 %vm172_vm1, %v133_v22  ;;  %v164_v20 = vld [vmem:[%s3391_s0 + $0x4c8] sm:$0xff]  ;;  %v85_v21 = vld [vmem:[%s3391_s0 + $0x250] sm:$0xff] }
  0x57   :  { %v165_v22 = vld [vmem:[%s3391_s0 + $0x4d0] sm:$0xff] }
  0x59   :  { %2074 = vmatmul.mubr.msk.f32.gmra.mrb[42].mxu0 %vm172_vm1, %v54_v23  ;;  %2194 = vmatmul.mubr.msk.f32.gmra.mrb[42].mxu1 %vm172_vm1, %v134_v24  ;;  %v86_v23 = vld [vmem:[%s3391_s0 + $0x258] sm:$0xff] }
  0x5a   :  { %2076 = vmatprep.mubr.msk.f32.mxu0 %vm172_vm1, %v55_v25  ;;  %2196 = vmatprep.mubr.msk.f32.mxu1 %vm172_vm1, %v135_v26  ;;  %v166_v24 = vld [vmem:[%s3391_s0 + $0x4d8] sm:$0xff]  ;;  %v87_v25 = vld [vmem:[%s3391_s0 + $0x260] sm:$0xff] }
  0x5b   :  { %v167_v26 = vld [vmem:[%s3391_s0 + $0x4e0] sm:$0xff] }
  0x5d   :  { %2077 = vmatmul.mubr.msk.f32.gmra.mrb[44].mxu0 %vm172_vm1, %v56_v27  ;;  %2197 = vmatmul.mubr.msk.f32.gmra.mrb[44].mxu1 %vm172_vm1, %v136_v28  ;;  %v88_v27 = vld [vmem:[%s3391_s0 + $0x268] sm:$0xff] }
  0x5e   :  { %2079 = vmatprep.mubr.msk.f32.mxu0 %vm172_vm1, %v57_v29  ;;  %2199 = vmatprep.mubr.msk.f32.mxu1 %vm172_vm1, %v137_v30  ;;  %v168_v28 = vld [vmem:[%s3391_s0 + $0x4e8] sm:$0xff]  ;;  %v89_v29 = vld [vmem:[%s3391_s0 + $0x270] sm:$0xff] }
  0x5f   :  { %v169_v30 = vld [vmem:[%s3391_s0 + $0x4f0] sm:$0xff] }
  0x61   :  { %2080 = vmatmul.mubr.msk.f32.gmra.mrb[46].mxu0 %vm172_vm1, %v58_v31  ;;  %2200 = vmatmul.mubr.msk.f32.gmra.mrb[46].mxu1 %vm172_vm1, %v138_v32  ;;  %v90_v31 = vld [vmem:[%s3391_s0 + $0x278] sm:$0xff] }
  0x62   :  { %2082 = vmatprep.mubr.msk.f32.mxu0 %vm172_vm1, %v59_v33  ;;  %2202 = vmatprep.mubr.msk.f32.mxu1 %vm172_vm1, %v139_v34  ;;  %v170_v32 = vld [vmem:[%s3391_s0 + $0x4f8] sm:$0xff] }
  0x65   :  { %2083 = vmatmul.mubr.msk.f32.gmra.mrb[48].mxu0 %vm172_vm1, %v60_v35  ;;  %2203 = vmatmul.mubr.msk.f32.gmra.mrb[48].mxu1 %vm172_vm1, %v140_v36 }
  0x66   :  { %2085 = vmatprep.mubr.msk.f32.mxu0 %vm172_vm1, %v61_v37  ;;  %2205 = vmatprep.mubr.msk.f32.mxu1 %vm172_vm1, %v141_v38 }
  0x69   :  { %2086 = vmatmul.mubr.msk.f32.gmra.mrb[50].mxu0 %vm172_vm1, %v62_v39  ;;  %2206 = vmatmul.mubr.msk.f32.gmra.mrb[50].mxu1 %vm172_vm1, %v142_v40 }
  0x6a   :  { %2088 = vmatprep.mubr.msk.f32.mxu0 %vm172_vm1, %v63_v41  ;;  %2208 = vmatprep.mubr.msk.f32.mxu1 %vm172_vm1, %v143_v42 }
  0x6d   :  { %2089 = vmatmul.mubr.msk.f32.gmra.mrb[52].mxu0 %vm172_vm1, %v64_v43  ;;  %2209 = vmatmul.mubr.msk.f32.gmra.mrb[52].mxu1 %vm172_vm1, %v144_v44 }
  0x6e   :  { %2091 = vmatprep.mubr.msk.f32.mxu0 %vm172_vm1, %v65_v45  ;;  %2211 = vmatprep.mubr.msk.f32.mxu1 %vm172_vm1, %v145_v46 }
  0x71   :  { %2092 = vmatmul.mubr.msk.f32.gmra.mrb[54].mxu0 %vm172_vm1, %v66_v47  ;;  %2212 = vmatmul.mubr.msk.f32.gmra.mrb[54].mxu1 %vm172_vm1, %v146_v48 }
  0x72   :  { %2094 = vmatprep.mubr.msk.f32.mxu0 %vm172_vm1, %v67_v49  ;;  %2214 = vmatprep.mubr.msk.f32.mxu1 %vm172_vm1, %v147_v50 }
  0x75   :  { %2095 = vmatmul.mubr.msk.f32.gmra.mrb[56].mxu0 %vm172_vm1, %v68_v51  ;;  %2215 = vmatmul.mubr.msk.f32.gmra.mrb[56].mxu1 %vm172_vm1, %v148_v52 }
  0x76   :  { %2097 = vmatprep.mubr.msk.f32.mxu0 %vm172_vm1, %v69_v53  ;;  %2217 = vmatprep.mubr.msk.f32.mxu1 %vm172_vm1, %v149_v54 }
  0x79   :  { %2098 = vmatmul.mubr.msk.f32.gmra.mrb[58].mxu0 %vm172_vm1, %v70_v55  ;;  %2218 = vmatmul.mubr.msk.f32.gmra.mrb[58].mxu1 %vm172_vm1, %v150_v56 }
  0x7a   :  { %2100 = vmatprep.mubr.msk.f32.mxu0 %vm172_vm1, %v71_v57  ;;  %2220 = vmatprep.mubr.msk.f32.mxu1 %vm172_vm1, %v151_v58 }
  0x7d   :  { %2101 = vmatmul.mubr.msk.f32.gmra.mrb[60].mxu0 %vm172_vm1, %v72_v59  ;;  %2221 = vmatmul.mubr.msk.f32.gmra.mrb[60].mxu1 %vm172_vm1, %v152_v60 }
  0x7e   :  { %2103 = vmatprep.mubr.msk.f32.mxu0 %vm172_vm1, %v73_v61  ;;  %2223 = vmatprep.mubr.msk.f32.mxu1 %vm172_vm1, %v153_v62 }
  0x81   :  { %2104 = vmatmul.mubr.msk.f32.gmra.mrb[62].mxu0 %vm172_vm1, %v74_v63  ;;  %2224 = vmatmul.mubr.msk.f32.gmra.mrb[62].mxu1 %vm172_vm1, %v154_v0 }
  0x82   :  { %2106 = vmatprep.mubr.msk.f32.mxu0 %vm172_vm1, %v75_v1  ;;  %2226 = vmatprep.mubr.msk.f32.mxu1 %vm172_vm1, %v155_v2 }
  0x85   :  { %2107 = vmatmul.mubr.msk.f32.gmra.mrb[64].mxu0 %vm172_vm1, %v76_v3  ;;  %2227 = vmatmul.mubr.msk.f32.gmra.mrb[64].mxu1 %vm172_vm1, %v156_v4 }
  0x86   :  { %2109 = vmatprep.mubr.msk.f32.mxu0 %vm172_vm1, %v77_v5  ;;  %2229 = vmatprep.mubr.msk.f32.mxu1 %vm172_vm1, %v157_v6 }
  0x89   :  { %2110 = vmatmul.mubr.msk.f32.gmra.mrb[66].mxu0 %vm172_vm1, %v78_v7  ;;  %2230 = vmatmul.mubr.msk.f32.gmra.mrb[66].mxu1 %vm172_vm1, %v158_v8 }
  0x8a   :  { %2112 = vmatprep.mubr.msk.f32.mxu0 %vm172_vm1, %v79_v9  ;;  %2232 = vmatprep.mubr.msk.f32.mxu1 %vm172_vm1, %v159_v10 }
  0x8d   :  { %2113 = vmatmul.mubr.msk.f32.gmra.mrb[68].mxu0 %vm172_vm1, %v80_v11  ;;  %2233 = vmatmul.mubr.msk.f32.gmra.mrb[68].mxu1 %vm172_vm1, %v160_v12 }
  0x8e   :  { %2115 = vmatprep.mubr.msk.f32.mxu0 %vm172_vm1, %v81_v13  ;;  %2235 = vmatprep.mubr.msk.f32.mxu1 %vm172_vm1, %v161_v14 }
  0x91   :  { %2116 = vmatmul.mubr.msk.f32.gmra.mrb[70].mxu0 %vm172_vm1, %v82_v15  ;;  %2236 = vmatmul.mubr.msk.f32.gmra.mrb[70].mxu1 %vm172_vm1, %v162_v16 }
  0x92   :  { %2118 = vmatprep.mubr.msk.f32.mxu0 %vm172_vm1, %v83_v17  ;;  %2238 = vmatprep.mubr.msk.f32.mxu1 %vm172_vm1, %v163_v18 }
  0x95   :  { %2119 = vmatmul.mubr.msk.f32.gmra.mrb[72].mxu0 %vm172_vm1, %v84_v19  ;;  %2239 = vmatmul.mubr.msk.f32.gmra.mrb[72].mxu1 %vm172_vm1, %v164_v20 }
  0x96   :  { %2121 = vmatprep.mubr.msk.f32.mxu0 %vm172_vm1, %v85_v21  ;;  %2241 = vmatprep.mubr.msk.f32.mxu1 %vm172_vm1, %v165_v22 }
  0x99   :  { %2122 = vmatmul.mubr.msk.f32.gmra.mrb[74].mxu0 %vm172_vm1, %v86_v23  ;;  %2242 = vmatmul.mubr.msk.f32.gmra.mrb[74].mxu1 %vm172_vm1, %v166_v24 }
  0x9a   :  { %2124 = vmatprep.mubr.msk.f32.mxu0 %vm172_vm1, %v87_v25  ;;  %2244 = vmatprep.mubr.msk.f32.mxu1 %vm172_vm1, %v167_v26 }
  0x9d   :  { %2125 = vmatmul.mubr.msk.f32.gmra.mrb[76].mxu0 %vm172_vm1, %v88_v27  ;;  %2245 = vmatmul.mubr.msk.f32.gmra.mrb[76].mxu1 %vm172_vm1, %v168_v28 }
  0x9e   :  { %2127 = vmatprep.mubr.msk.f32.mxu0 %vm172_vm1, %v89_v29  ;;  %2247 = vmatprep.mubr.msk.f32.mxu1 %vm172_vm1, %v169_v30 }
  0xa1   :  { %2128 = vmatmul.mubr.msk.f32.gmra.mrb[78].mxu0 %vm172_vm1, %v90_v31  ;;  %2248 = vmatmul.mubr.msk.f32.gmra.mrb[78].mxu1 %vm172_vm1, %v170_v32 }
  0xd8   :  { %v2012_v33 = vpop.f32.mrb[0].mxu0  ;;  %v2132_v34 = vpop.f32.mrb[0].mxu1 }
  0xd9   :  { %1523 = vst [vmem:[%s3392_s2 + $0x8] sm:$0xff] %v2012_v33  ;;  %1603 = vst [vmem:[%s3392_s2 + $0x288] sm:$0xff] %v2132_v34  ;;  %v723_v35 = vpop.f32.mrb[1].mxu0  ;;  %v1123_v36 = vpop.f32.mrb[1].mxu1 }
  0xda   :  { %1522 = vst [vmem:[%s3392_s2] sm:$0xff] %v723_v35  ;;  %1602 = vst [vmem:[%s3392_s2 + $0x280] sm:$0xff] %v1123_v36 }
  0xdc   :  { %v2015_v37 = vpop.f32.mrb[2].mxu0  ;;  %v2135_v38 = vpop.f32.mrb[2].mxu1 }
  0xdd   :  { %1525 = vst [vmem:[%s3392_s2 + $0x18] sm:$0xff] %v2015_v37  ;;  %1605 = vst [vmem:[%s3392_s2 + $0x298] sm:$0xff] %v2135_v38  ;;  %v733_v39 = vpop.f32.mrb[3].mxu0  ;;  %v1133_v40 = vpop.f32.mrb[3].mxu1 }
  0xde   :  { %1524 = vst [vmem:[%s3392_s2 + $0x10] sm:$0xff] %v733_v39  ;;  %1604 = vst [vmem:[%s3392_s2 + $0x290] sm:$0xff] %v1133_v40 }
  0xe0   :  { %v2018_v41 = vpop.f32.mrb[4].mxu0  ;;  %v2138_v42 = vpop.f32.mrb[4].mxu1 }
  0xe1   :  { %1527 = vst [vmem:[%s3392_s2 + $0x28] sm:$0xff] %v2018_v41  ;;  %1607 = vst [vmem:[%s3392_s2 + $0x2a8] sm:$0xff] %v2138_v42  ;;  %v743_v43 = vpop.f32.mrb[5].mxu0  ;;  %v1143_v44 = vpop.f32.mrb[5].mxu1 }
  0xe2   :  { %1526 = vst [vmem:[%s3392_s2 + $0x20] sm:$0xff] %v743_v43  ;;  %1606 = vst [vmem:[%s3392_s2 + $0x2a0] sm:$0xff] %v1143_v44 }
  0xe4   :  { %v2021_v45 = vpop.f32.mrb[6].mxu0  ;;  %v2141_v46 = vpop.f32.mrb[6].mxu1 }
  0xe5   :  { %1529 = vst [vmem:[%s3392_s2 + $0x38] sm:$0xff] %v2021_v45  ;;  %1609 = vst [vmem:[%s3392_s2 + $0x2b8] sm:$0xff] %v2141_v46  ;;  %v753_v47 = vpop.f32.mrb[7].mxu0  ;;  %v1153_v48 = vpop.f32.mrb[7].mxu1 }
  0xe6   :  { %1528 = vst [vmem:[%s3392_s2 + $0x30] sm:$0xff] %v753_v47  ;;  %1608 = vst [vmem:[%s3392_s2 + $0x2b0] sm:$0xff] %v1153_v48 }
  0xe8   :  { %v2024_v49 = vpop.f32.mrb[8].mxu0  ;;  %v2144_v50 = vpop.f32.mrb[8].mxu1 }
  0xe9   :  { %1531 = vst [vmem:[%s3392_s2 + $0x48] sm:$0xff] %v2024_v49  ;;  %1611 = vst [vmem:[%s3392_s2 + $0x2c8] sm:$0xff] %v2144_v50  ;;  %v763_v51 = vpop.f32.mrb[9].mxu0  ;;  %v1163_v52 = vpop.f32.mrb[9].mxu1 }
  0xea   :  { %1530 = vst [vmem:[%s3392_s2 + $0x40] sm:$0xff] %v763_v51  ;;  %1610 = vst [vmem:[%s3392_s2 + $0x2c0] sm:$0xff] %v1163_v52 }
  0xec   :  { %v2027_v53 = vpop.f32.mrb[10].mxu0  ;;  %v2147_v54 = vpop.f32.mrb[10].mxu1 }
  0xed   :  { %1533 = vst [vmem:[%s3392_s2 + $0x58] sm:$0xff] %v2027_v53  ;;  %1613 = vst [vmem:[%s3392_s2 + $0x2d8] sm:$0xff] %v2147_v54  ;;  %v773_v55 = vpop.f32.mrb[11].mxu0  ;;  %v1173_v56 = vpop.f32.mrb[11].mxu1 }
  0xee   :  { %1532 = vst [vmem:[%s3392_s2 + $0x50] sm:$0xff] %v773_v55  ;;  %1612 = vst [vmem:[%s3392_s2 + $0x2d0] sm:$0xff] %v1173_v56 }
  0xf0   :  { %v2030_v57 = vpop.f32.mrb[12].mxu0  ;;  %v2150_v58 = vpop.f32.mrb[12].mxu1 }
  0xf1   :  { %1535 = vst [vmem:[%s3392_s2 + $0x68] sm:$0xff] %v2030_v57  ;;  %1615 = vst [vmem:[%s3392_s2 + $0x2e8] sm:$0xff] %v2150_v58  ;;  %v783_v59 = vpop.f32.mrb[13].mxu0  ;;  %v1183_v60 = vpop.f32.mrb[13].mxu1 }
  0xf2   :  { %1534 = vst [vmem:[%s3392_s2 + $0x60] sm:$0xff] %v783_v59  ;;  %1614 = vst [vmem:[%s3392_s2 + $0x2e0] sm:$0xff] %v1183_v60 }
  0xf4   :  { %v2033_v61 = vpop.f32.mrb[14].mxu0  ;;  %v2153_v62 = vpop.f32.mrb[14].mxu1 }
  0xf5   :  { %1537 = vst [vmem:[%s3392_s2 + $0x78] sm:$0xff] %v2033_v61  ;;  %1617 = vst [vmem:[%s3392_s2 + $0x2f8] sm:$0xff] %v2153_v62  ;;  %v793_v63 = vpop.f32.mrb[15].mxu0  ;;  %v1193_v0 = vpop.f32.mrb[15].mxu1 }
  0xf6   :  { %1536 = vst [vmem:[%s3392_s2 + $0x70] sm:$0xff] %v793_v63  ;;  %1616 = vst [vmem:[%s3392_s2 + $0x2f0] sm:$0xff] %v1193_v0 }
  0xf8   :  { %v2036_v1 = vpop.f32.mrb[16].mxu0  ;;  %v2156_v2 = vpop.f32.mrb[16].mxu1 }
  0xf9   :  { %1539 = vst [vmem:[%s3392_s2 + $0x88] sm:$0xff] %v2036_v1  ;;  %1619 = vst [vmem:[%s3392_s2 + $0x308] sm:$0xff] %v2156_v2  ;;  %v803_v3 = vpop.f32.mrb[17].mxu0  ;;  %v1203_v4 = vpop.f32.mrb[17].mxu1 }
  0xfa   :  { %1538 = vst [vmem:[%s3392_s2 + $0x80] sm:$0xff] %v803_v3  ;;  %1618 = vst [vmem:[%s3392_s2 + $0x300] sm:$0xff] %v1203_v4 }
  0xfc   :  { %v2039_v5 = vpop.f32.mrb[18].mxu0  ;;  %v2159_v6 = vpop.f32.mrb[18].mxu1 }
  0xfd   :  { %1541 = vst [vmem:[%s3392_s2 + $0x98] sm:$0xff] %v2039_v5  ;;  %1621 = vst [vmem:[%s3392_s2 + $0x318] sm:$0xff] %v2159_v6  ;;  %v813_v7 = vpop.f32.mrb[19].mxu0  ;;  %v1213_v8 = vpop.f32.mrb[19].mxu1 }
  0xfe   :  { %1540 = vst [vmem:[%s3392_s2 + $0x90] sm:$0xff] %v813_v7  ;;  %1620 = vst [vmem:[%s3392_s2 + $0x310] sm:$0xff] %v1213_v8 }
 0x100   :  { %v2042_v9 = vpop.f32.mrb[20].mxu0  ;;  %v2162_v10 = vpop.f32.mrb[20].mxu1 }
 0x101   :  { %1543 = vst [vmem:[%s3392_s2 + $0xa8] sm:$0xff] %v2042_v9  ;;  %1623 = vst [vmem:[%s3392_s2 + $0x328] sm:$0xff] %v2162_v10  ;;  %v823_v11 = vpop.f32.mrb[21].mxu0  ;;  %v1223_v12 = vpop.f32.mrb[21].mxu1 }
 0x102   :  { %1542 = vst [vmem:[%s3392_s2 + $0xa0] sm:$0xff] %v823_v11  ;;  %1622 = vst [vmem:[%s3392_s2 + $0x320] sm:$0xff] %v1223_v12 }
 0x104   :  { %v2045_v13 = vpop.f32.mrb[22].mxu0  ;;  %v2165_v14 = vpop.f32.mrb[22].mxu1 }
 0x105   :  { %1545 = vst [vmem:[%s3392_s2 + $0xb8] sm:$0xff] %v2045_v13  ;;  %1625 = vst [vmem:[%s3392_s2 + $0x338] sm:$0xff] %v2165_v14  ;;  %v833_v15 = vpop.f32.mrb[23].mxu0  ;;  %v1233_v16 = vpop.f32.mrb[23].mxu1 }
 0x106   :  { %1544 = vst [vmem:[%s3392_s2 + $0xb0] sm:$0xff] %v833_v15  ;;  %1624 = vst [vmem:[%s3392_s2 + $0x330] sm:$0xff] %v1233_v16 }
 0x108   :  { %v2048_v17 = vpop.f32.mrb[24].mxu0  ;;  %v2168_v18 = vpop.f32.mrb[24].mxu1 }
 0x109   :  { %1547 = vst [vmem:[%s3392_s2 + $0xc8] sm:$0xff] %v2048_v17  ;;  %1627 = vst [vmem:[%s3392_s2 + $0x348] sm:$0xff] %v2168_v18  ;;  %v843_v19 = vpop.f32.mrb[25].mxu0  ;;  %v1243_v20 = vpop.f32.mrb[25].mxu1 }
 0x10a   :  { %1546 = vst [vmem:[%s3392_s2 + $0xc0] sm:$0xff] %v843_v19  ;;  %1626 = vst [vmem:[%s3392_s2 + $0x340] sm:$0xff] %v1243_v20 }
 0x10c   :  { %v2051_v21 = vpop.f32.mrb[26].mxu0  ;;  %v2171_v22 = vpop.f32.mrb[26].mxu1 }
 0x10d   :  { %1549 = vst [vmem:[%s3392_s2 + $0xd8] sm:$0xff] %v2051_v21  ;;  %1629 = vst [vmem:[%s3392_s2 + $0x358] sm:$0xff] %v2171_v22  ;;  %v853_v23 = vpop.f32.mrb[27].mxu0  ;;  %v1253_v24 = vpop.f32.mrb[27].mxu1 }
 0x10e   :  { %1548 = vst [vmem:[%s3392_s2 + $0xd0] sm:$0xff] %v853_v23  ;;  %1628 = vst [vmem:[%s3392_s2 + $0x350] sm:$0xff] %v1253_v24 }
 0x110   :  { %v2054_v25 = vpop.f32.mrb[28].mxu0  ;;  %v2174_v26 = vpop.f32.mrb[28].mxu1 }
 0x111   :  { %1551 = vst [vmem:[%s3392_s2 + $0xe8] sm:$0xff] %v2054_v25  ;;  %1631 = vst [vmem:[%s3392_s2 + $0x368] sm:$0xff] %v2174_v26  ;;  %v863_v27 = vpop.f32.mrb[29].mxu0  ;;  %v1263_v28 = vpop.f32.mrb[29].mxu1 }
 0x112   :  { %1550 = vst [vmem:[%s3392_s2 + $0xe0] sm:$0xff] %v863_v27  ;;  %1630 = vst [vmem:[%s3392_s2 + $0x360] sm:$0xff] %v1263_v28 }
 0x114   :  { %v2057_v29 = vpop.f32.mrb[30].mxu0  ;;  %v2177_v30 = vpop.f32.mrb[30].mxu1 }
 0x115   :  { %1553 = vst [vmem:[%s3392_s2 + $0xf8] sm:$0xff] %v2057_v29  ;;  %1633 = vst [vmem:[%s3392_s2 + $0x378] sm:$0xff] %v2177_v30  ;;  %v873_v31 = vpop.f32.mrb[31].mxu0  ;;  %v1273_v32 = vpop.f32.mrb[31].mxu1 }
 0x116   :  { %1552 = vst [vmem:[%s3392_s2 + $0xf0] sm:$0xff] %v873_v31  ;;  %1632 = vst [vmem:[%s3392_s2 + $0x370] sm:$0xff] %v1273_v32 }
 0x118   :  { %v2060_v33 = vpop.f32.mrb[32].mxu0  ;;  %v2180_v34 = vpop.f32.mrb[32].mxu1 }
 0x119   :  { %1555 = vst [vmem:[%s3392_s2 + $0x108] sm:$0xff] %v2060_v33  ;;  %1635 = vst [vmem:[%s3392_s2 + $0x388] sm:$0xff] %v2180_v34  ;;  %v883_v35 = vpop.f32.mrb[33].mxu0  ;;  %v1283_v36 = vpop.f32.mrb[33].mxu1 }
 0x11a   :  { %1554 = vst [vmem:[%s3392_s2 + $0x100] sm:$0xff] %v883_v35  ;;  %1634 = vst [vmem:[%s3392_s2 + $0x380] sm:$0xff] %v1283_v36 }
 0x11c   :  { %v2063_v37 = vpop.f32.mrb[34].mxu0  ;;  %v2183_v38 = vpop.f32.mrb[34].mxu1 }
 0x11d   :  { %1557 = vst [vmem:[%s3392_s2 + $0x118] sm:$0xff] %v2063_v37  ;;  %1637 = vst [vmem:[%s3392_s2 + $0x398] sm:$0xff] %v2183_v38  ;;  %v893_v39 = vpop.f32.mrb[35].mxu0  ;;  %v1293_v40 = vpop.f32.mrb[35].mxu1 }
 0x11e   :  { %1556 = vst [vmem:[%s3392_s2 + $0x110] sm:$0xff] %v893_v39  ;;  %1636 = vst [vmem:[%s3392_s2 + $0x390] sm:$0xff] %v1293_v40 }
 0x120   :  { %v2066_v41 = vpop.f32.mrb[36].mxu0  ;;  %v2186_v42 = vpop.f32.mrb[36].mxu1 }
 0x121   :  { %1559 = vst [vmem:[%s3392_s2 + $0x128] sm:$0xff] %v2066_v41  ;;  %1639 = vst [vmem:[%s3392_s2 + $0x3a8] sm:$0xff] %v2186_v42  ;;  %v903_v43 = vpop.f32.mrb[37].mxu0  ;;  %v1303_v44 = vpop.f32.mrb[37].mxu1 }
 0x122   :  { %1558 = vst [vmem:[%s3392_s2 + $0x120] sm:$0xff] %v903_v43  ;;  %1638 = vst [vmem:[%s3392_s2 + $0x3a0] sm:$0xff] %v1303_v44 }
 0x124   :  { %v2069_v45 = vpop.f32.mrb[38].mxu0  ;;  %v2189_v46 = vpop.f32.mrb[38].mxu1 }
 0x125   :  { %1561 = vst [vmem:[%s3392_s2 + $0x138] sm:$0xff] %v2069_v45  ;;  %1641 = vst [vmem:[%s3392_s2 + $0x3b8] sm:$0xff] %v2189_v46  ;;  %v913_v47 = vpop.f32.mrb[39].mxu0  ;;  %v1313_v48 = vpop.f32.mrb[39].mxu1 }
 0x126   :  { %1560 = vst [vmem:[%s3392_s2 + $0x130] sm:$0xff] %v913_v47  ;;  %1640 = vst [vmem:[%s3392_s2 + $0x3b0] sm:$0xff] %v1313_v48 }
 0x128   :  { %v2072_v49 = vpop.f32.mrb[40].mxu0  ;;  %v2192_v50 = vpop.f32.mrb[40].mxu1 }
 0x129   :  { %1563 = vst [vmem:[%s3392_s2 + $0x148] sm:$0xff] %v2072_v49  ;;  %1643 = vst [vmem:[%s3392_s2 + $0x3c8] sm:$0xff] %v2192_v50  ;;  %v923_v51 = vpop.f32.mrb[41].mxu0  ;;  %v1323_v52 = vpop.f32.mrb[41].mxu1 }
 0x12a   :  { %1562 = vst [vmem:[%s3392_s2 + $0x140] sm:$0xff] %v923_v51  ;;  %1642 = vst [vmem:[%s3392_s2 + $0x3c0] sm:$0xff] %v1323_v52 }
 0x12c   :  { %v2075_v53 = vpop.f32.mrb[42].mxu0  ;;  %v2195_v54 = vpop.f32.mrb[42].mxu1 }
 0x12d   :  { %1565 = vst [vmem:[%s3392_s2 + $0x158] sm:$0xff] %v2075_v53  ;;  %1645 = vst [vmem:[%s3392_s2 + $0x3d8] sm:$0xff] %v2195_v54  ;;  %v933_v55 = vpop.f32.mrb[43].mxu0  ;;  %v1333_v56 = vpop.f32.mrb[43].mxu1 }
 0x12e   :  { %1564 = vst [vmem:[%s3392_s2 + $0x150] sm:$0xff] %v933_v55  ;;  %1644 = vst [vmem:[%s3392_s2 + $0x3d0] sm:$0xff] %v1333_v56 }
 0x130   :  { %v2078_v57 = vpop.f32.mrb[44].mxu0  ;;  %v2198_v58 = vpop.f32.mrb[44].mxu1 }
 0x131   :  { %1567 = vst [vmem:[%s3392_s2 + $0x168] sm:$0xff] %v2078_v57  ;;  %1647 = vst [vmem:[%s3392_s2 + $0x3e8] sm:$0xff] %v2198_v58  ;;  %v943_v59 = vpop.f32.mrb[45].mxu0  ;;  %v1343_v60 = vpop.f32.mrb[45].mxu1 }
 0x132   :  { %1566 = vst [vmem:[%s3392_s2 + $0x160] sm:$0xff] %v943_v59  ;;  %1646 = vst [vmem:[%s3392_s2 + $0x3e0] sm:$0xff] %v1343_v60 }
 0x134   :  { %v2081_v61 = vpop.f32.mrb[46].mxu0  ;;  %v2201_v62 = vpop.f32.mrb[46].mxu1 }
 0x135   :  { %1569 = vst [vmem:[%s3392_s2 + $0x178] sm:$0xff] %v2081_v61  ;;  %1649 = vst [vmem:[%s3392_s2 + $0x3f8] sm:$0xff] %v2201_v62  ;;  %v953_v63 = vpop.f32.mrb[47].mxu0  ;;  %v1353_v0 = vpop.f32.mrb[47].mxu1 }
 0x136   :  { %1568 = vst [vmem:[%s3392_s2 + $0x170] sm:$0xff] %v953_v63  ;;  %1648 = vst [vmem:[%s3392_s2 + $0x3f0] sm:$0xff] %v1353_v0 }
 0x138   :  { %v2084_v1 = vpop.f32.mrb[48].mxu0  ;;  %v2204_v2 = vpop.f32.mrb[48].mxu1 }
 0x139   :  { %1571 = vst [vmem:[%s3392_s2 + $0x188] sm:$0xff] %v2084_v1  ;;  %1651 = vst [vmem:[%s3392_s2 + $0x408] sm:$0xff] %v2204_v2  ;;  %v963_v3 = vpop.f32.mrb[49].mxu0  ;;  %v1363_v4 = vpop.f32.mrb[49].mxu1 }
 0x13a   :  { %1570 = vst [vmem:[%s3392_s2 + $0x180] sm:$0xff] %v963_v3  ;;  %1650 = vst [vmem:[%s3392_s2 + $0x400] sm:$0xff] %v1363_v4 }
 0x13c   :  { %v2087_v5 = vpop.f32.mrb[50].mxu0  ;;  %v2207_v6 = vpop.f32.mrb[50].mxu1 }
 0x13d   :  { %1573 = vst [vmem:[%s3392_s2 + $0x198] sm:$0xff] %v2087_v5  ;;  %1653 = vst [vmem:[%s3392_s2 + $0x418] sm:$0xff] %v2207_v6  ;;  %v973_v7 = vpop.f32.mrb[51].mxu0  ;;  %v1373_v8 = vpop.f32.mrb[51].mxu1 }
 0x13e   :  { %1572 = vst [vmem:[%s3392_s2 + $0x190] sm:$0xff] %v973_v7  ;;  %1652 = vst [vmem:[%s3392_s2 + $0x410] sm:$0xff] %v1373_v8 }
 0x140   :  { %v2090_v9 = vpop.f32.mrb[52].mxu0  ;;  %v2210_v10 = vpop.f32.mrb[52].mxu1 }
 0x141   :  { %1575 = vst [vmem:[%s3392_s2 + $0x1a8] sm:$0xff] %v2090_v9  ;;  %1655 = vst [vmem:[%s3392_s2 + $0x428] sm:$0xff] %v2210_v10  ;;  %v983_v11 = vpop.f32.mrb[53].mxu0  ;;  %v1383_v12 = vpop.f32.mrb[53].mxu1 }
 0x142   :  { %1574 = vst [vmem:[%s3392_s2 + $0x1a0] sm:$0xff] %v983_v11  ;;  %1654 = vst [vmem:[%s3392_s2 + $0x420] sm:$0xff] %v1383_v12 }
 0x144   :  { %v2093_v13 = vpop.f32.mrb[54].mxu0  ;;  %v2213_v14 = vpop.f32.mrb[54].mxu1 }
 0x145   :  { %1577 = vst [vmem:[%s3392_s2 + $0x1b8] sm:$0xff] %v2093_v13  ;;  %1657 = vst [vmem:[%s3392_s2 + $0x438] sm:$0xff] %v2213_v14  ;;  %v993_v15 = vpop.f32.mrb[55].mxu0  ;;  %v1393_v16 = vpop.f32.mrb[55].mxu1 }
 0x146   :  { %1576 = vst [vmem:[%s3392_s2 + $0x1b0] sm:$0xff] %v993_v15  ;;  %1656 = vst [vmem:[%s3392_s2 + $0x430] sm:$0xff] %v1393_v16 }
 0x148   :  { %v2096_v17 = vpop.f32.mrb[56].mxu0  ;;  %v2216_v18 = vpop.f32.mrb[56].mxu1 }
 0x149   :  { %1579 = vst [vmem:[%s3392_s2 + $0x1c8] sm:$0xff] %v2096_v17  ;;  %1659 = vst [vmem:[%s3392_s2 + $0x448] sm:$0xff] %v2216_v18  ;;  %v1003_v19 = vpop.f32.mrb[57].mxu0  ;;  %v1403_v20 = vpop.f32.mrb[57].mxu1 }
 0x14a   :  { %1578 = vst [vmem:[%s3392_s2 + $0x1c0] sm:$0xff] %v1003_v19  ;;  %1658 = vst [vmem:[%s3392_s2 + $0x440] sm:$0xff] %v1403_v20 }
 0x14c   :  { %v2099_v21 = vpop.f32.mrb[58].mxu0  ;;  %v2219_v22 = vpop.f32.mrb[58].mxu1 }
 0x14d   :  { %1581 = vst [vmem:[%s3392_s2 + $0x1d8] sm:$0xff] %v2099_v21  ;;  %1661 = vst [vmem:[%s3392_s2 + $0x458] sm:$0xff] %v2219_v22  ;;  %v1013_v23 = vpop.f32.mrb[59].mxu0  ;;  %v1413_v24 = vpop.f32.mrb[59].mxu1 }
 0x14e   :  { %1580 = vst [vmem:[%s3392_s2 + $0x1d0] sm:$0xff] %v1013_v23  ;;  %1660 = vst [vmem:[%s3392_s2 + $0x450] sm:$0xff] %v1413_v24 }
 0x150   :  { %v2102_v25 = vpop.f32.mrb[60].mxu0  ;;  %v2222_v26 = vpop.f32.mrb[60].mxu1 }
 0x151   :  { %1583 = vst [vmem:[%s3392_s2 + $0x1e8] sm:$0xff] %v2102_v25  ;;  %1663 = vst [vmem:[%s3392_s2 + $0x468] sm:$0xff] %v2222_v26  ;;  %v1023_v27 = vpop.f32.mrb[61].mxu0  ;;  %v1423_v28 = vpop.f32.mrb[61].mxu1 }
 0x152   :  { %1582 = vst [vmem:[%s3392_s2 + $0x1e0] sm:$0xff] %v1023_v27  ;;  %1662 = vst [vmem:[%s3392_s2 + $0x460] sm:$0xff] %v1423_v28 }
 0x154   :  { %v2105_v29 = vpop.f32.mrb[62].mxu0  ;;  %v2225_v30 = vpop.f32.mrb[62].mxu1 }
 0x155   :  { %1585 = vst [vmem:[%s3392_s2 + $0x1f8] sm:$0xff] %v2105_v29  ;;  %1665 = vst [vmem:[%s3392_s2 + $0x478] sm:$0xff] %v2225_v30  ;;  %v1033_v31 = vpop.f32.mrb[63].mxu0  ;;  %v1433_v32 = vpop.f32.mrb[63].mxu1 }
 0x156   :  { %1584 = vst [vmem:[%s3392_s2 + $0x1f0] sm:$0xff] %v1033_v31  ;;  %1664 = vst [vmem:[%s3392_s2 + $0x470] sm:$0xff] %v1433_v32 }
 0x158   :  { %v2108_v33 = vpop.f32.mrb[64].mxu0  ;;  %v2228_v34 = vpop.f32.mrb[64].mxu1 }
 0x159   :  { %1587 = vst [vmem:[%s3392_s2 + $0x208] sm:$0xff] %v2108_v33  ;;  %1667 = vst [vmem:[%s3392_s2 + $0x488] sm:$0xff] %v2228_v34  ;;  %v1043_v35 = vpop.f32.mrb[65].mxu0  ;;  %v1443_v36 = vpop.f32.mrb[65].mxu1 }
 0x15a   :  { %1586 = vst [vmem:[%s3392_s2 + $0x200] sm:$0xff] %v1043_v35  ;;  %1666 = vst [vmem:[%s3392_s2 + $0x480] sm:$0xff] %v1443_v36 }
 0x15c   :  { %v2111_v37 = vpop.f32.mrb[66].mxu0  ;;  %v2231_v38 = vpop.f32.mrb[66].mxu1 }
 0x15d   :  { %1589 = vst [vmem:[%s3392_s2 + $0x218] sm:$0xff] %v2111_v37  ;;  %1669 = vst [vmem:[%s3392_s2 + $0x498] sm:$0xff] %v2231_v38  ;;  %v1053_v39 = vpop.f32.mrb[67].mxu0  ;;  %v1453_v40 = vpop.f32.mrb[67].mxu1 }
 0x15e   :  { %1588 = vst [vmem:[%s3392_s2 + $0x210] sm:$0xff] %v1053_v39  ;;  %1668 = vst [vmem:[%s3392_s2 + $0x490] sm:$0xff] %v1453_v40 }
 0x160   :  { %v2114_v41 = vpop.f32.mrb[68].mxu0  ;;  %v2234_v42 = vpop.f32.mrb[68].mxu1 }
 0x161   :  { %1591 = vst [vmem:[%s3392_s2 + $0x228] sm:$0xff] %v2114_v41  ;;  %1671 = vst [vmem:[%s3392_s2 + $0x4a8] sm:$0xff] %v2234_v42  ;;  %v1063_v43 = vpop.f32.mrb[69].mxu0  ;;  %v1463_v44 = vpop.f32.mrb[69].mxu1 }
 0x162   :  { %1590 = vst [vmem:[%s3392_s2 + $0x220] sm:$0xff] %v1063_v43  ;;  %1670 = vst [vmem:[%s3392_s2 + $0x4a0] sm:$0xff] %v1463_v44 }
 0x164   :  { %v2117_v45 = vpop.f32.mrb[70].mxu0  ;;  %v2237_v46 = vpop.f32.mrb[70].mxu1 }
 0x165   :  { %1593 = vst [vmem:[%s3392_s2 + $0x238] sm:$0xff] %v2117_v45  ;;  %1673 = vst [vmem:[%s3392_s2 + $0x4b8] sm:$0xff] %v2237_v46  ;;  %v1073_v47 = vpop.f32.mrb[71].mxu0  ;;  %v1473_v48 = vpop.f32.mrb[71].mxu1 }
 0x166   :  { %1592 = vst [vmem:[%s3392_s2 + $0x230] sm:$0xff] %v1073_v47  ;;  %1672 = vst [vmem:[%s3392_s2 + $0x4b0] sm:$0xff] %v1473_v48 }
 0x168   :  { %v2120_v49 = vpop.f32.mrb[72].mxu0  ;;  %v2240_v50 = vpop.f32.mrb[72].mxu1 }
 0x169   :  { %1595 = vst [vmem:[%s3392_s2 + $0x248] sm:$0xff] %v2120_v49  ;;  %1675 = vst [vmem:[%s3392_s2 + $0x4c8] sm:$0xff] %v2240_v50  ;;  %v1083_v51 = vpop.f32.mrb[73].mxu0  ;;  %v1483_v52 = vpop.f32.mrb[73].mxu1 }
 0x16a   :  { %1594 = vst [vmem:[%s3392_s2 + $0x240] sm:$0xff] %v1083_v51  ;;  %1674 = vst [vmem:[%s3392_s2 + $0x4c0] sm:$0xff] %v1483_v52 }
 0x16c   :  { %v2123_v53 = vpop.f32.mrb[74].mxu0  ;;  %v2243_v54 = vpop.f32.mrb[74].mxu1 }
 0x16d   :  { %1597 = vst [vmem:[%s3392_s2 + $0x258] sm:$0xff] %v2123_v53  ;;  %1677 = vst [vmem:[%s3392_s2 + $0x4d8] sm:$0xff] %v2243_v54  ;;  %v1093_v55 = vpop.f32.mrb[75].mxu0  ;;  %v1493_v56 = vpop.f32.mrb[75].mxu1 }
 0x16e   :  { %1596 = vst [vmem:[%s3392_s2 + $0x250] sm:$0xff] %v1093_v55  ;;  %1676 = vst [vmem:[%s3392_s2 + $0x4d0] sm:$0xff] %v1493_v56 }
 0x170   :  { %v2126_v57 = vpop.f32.mrb[76].mxu0  ;;  %v2246_v58 = vpop.f32.mrb[76].mxu1 }
 0x171   :  { %1599 = vst [vmem:[%s3392_s2 + $0x268] sm:$0xff] %v2126_v57  ;;  %1679 = vst [vmem:[%s3392_s2 + $0x4e8] sm:$0xff] %v2246_v58  ;;  %v1103_v59 = vpop.f32.mrb[77].mxu0  ;;  %v1503_v60 = vpop.f32.mrb[77].mxu1 }
 0x172   :  { %1598 = vst [vmem:[%s3392_s2 + $0x260] sm:$0xff] %v1103_v59  ;;  %1678 = vst [vmem:[%s3392_s2 + $0x4e0] sm:$0xff] %v1503_v60 }
 0x174   :  { %v2129_v61 = vpop.f32.mrb[78].mxu0  ;;  %v2249_v62 = vpop.f32.mrb[78].mxu1 }
 0x175   :  { %1601 = vst [vmem:[%s3392_s2 + $0x278] sm:$0xff] %v2129_v61  ;;  %1681 = vst [vmem:[%s3392_s2 + $0x4f8] sm:$0xff] %v2249_v62  ;;  %v1113_v63 = vpop.f32.mrb[79].mxu0  ;;  %v1513_v0 = vpop.f32.mrb[79].mxu1 }
 0x176   :  { %1600 = vst [vmem:[%s3392_s2 + $0x270] sm:$0xff] %v1113_v63  ;;  %1680 = vst [vmem:[%s3392_s2 + $0x4f0] sm:$0xff] %v1513_v0 }

</bundles_post_ra>
